<compile_context>
chip_gen: v5e
topology: v5e:2x2
jax: 0.10.0
libtpu: 0.0.40
codegen_flags: <defaults>
</compile_context>

<pallas_src>
import math

import jax
import jax.numpy as jnp
import numpy as np
from jax.experimental import pallas as pl
from jax.experimental.pallas import tpu as pltpu

D_MODEL = 32
N_HEADS = 4
D_K = D_MODEL // N_HEADS
NUM_FEATURES = 3
NUM_CELLS = NUM_FEATURES + 1
MAX_SEQ_LEN = 16
LN_EPS = 1e-5


# ----------------------------- fused Pallas kernel --------------------------

def make_fused_kernel(*, R, Rout, D, n_heads, feat_scale, item_scale,
                      off_feat, off_item, off_w1, off_w2t, off_hw):
    HR = n_heads * R
    D2, D3, D4 = 2 * D, 3 * D, 4 * D
    inv_sqrt2 = 1.0 / math.sqrt(2.0)

    def kernel(vals_ref, row_ref, mask_ref, hl_ref, w_ref, vec_ref, out_ref):
        f32 = jnp.float32

        # ---- precomputed per-token encoder rows: [scale | bias | pos | tgt] ----
        sr = row_ref[...]                                   # (R, 4D)
        scale_row = sr[:, 0:D]
        bias_row = sr[:, D:D2]
        pos_row = sr[:, D2:D3]
        tgt_row = sr[:, D3:D4]                              # 1.0 on target cells

        v = vals_ref[...]                                   # (R, 1)
        nan_b = jnp.isnan(v) & (tgt_row > 0.5)              # (R, D) target NaNs
        vc = jnp.where(nan_b, 0.0, v)
        enc = jnp.where(nan_b, 0.0, vc * scale_row + bias_row) + pos_row

        # ---- precomputed masks / weights -----------------------------------
        masks = mask_ref[...]                               # (R, 2*HR)
        feat_mask = masks[:, 0:HR]
        item_mask = masks[:, HR:2 * HR]
        hl = hl_ref[...]                                    # (HR, D) head/lane 0-1
        wall = w_ref[...]                                   # (D, Wpad) weight slab
        vec = vec_ref[...]                                  # (8+Rout, LW) vectors+sel

        def layernorm(x, row):
            g = vec[row:row + 1, 0:D]
            b = vec[row:row + 1, D:D2]
            mu = jnp.mean(x, axis=-1, keepdims=True)
            xc = x - mu
            var = jnp.mean(xc * xc, axis=-1, keepdims=True)
            return xc * jax.lax.rsqrt(var + LN_EPS) * g + b

        def mha(x, base, scale, mask_wide):
            # fused QKV projection (one MXU pass); K/V weights were pre-tiled
            # to full width for the multiquery (shared-KV) layer.
            wqkv = wall[:, base:base + D3]                  # (D, 3D)
            wo = wall[:, base + D3:base + D4]               # (D, D)
            qkv = jnp.dot(x, wqkv, preferred_element_type=f32)
            q = qkv[:, 0:D]
            k = qkv[:, D:D2]
            vv = qkv[:, D2:D3]
            # block-diagonal (per-head) K / V: tile along sublanes, zero lanes
            # outside each head's d_k block via the precomputed head-lane mask.
            k_bd = jnp.concatenate([k] * n_heads, axis=0) * hl     # (HR, D)
            v_bd = jnp.concatenate([vv] * n_heads, axis=0) * hl    # (HR, D)
            # one lane-dense score matmul for ALL heads: (R, HR)
            s = jax.lax.dot_general(q, k_bd, (((1,), (1,)), ((), ())),
                                    preferred_element_type=f32) * scale
            # shared row max is a valid shift for every head block; masked
            # entries are zeroed after exp, so per-block softmax is exact.
            m = jnp.max(s, axis=-1, keepdims=True)
            p = jnp.exp(s - m) * mask_wide                          # (R, HR)
            denom = jnp.dot(p, hl, preferred_element_type=f32)      # (R, D)
            pv = jnp.dot(p, v_bd, preferred_element_type=f32)       # (R, D)
            return jnp.dot(pv / denom, wo, preferred_element_type=f32)

        # feature attention (multiquery) + residual + LN1
        enc = layernorm(enc + mha(enc, off_feat, feat_scale, feat_mask), 0)
        # item attention (full MHA) + residual + LN2
        enc = layernorm(enc + mha(enc, off_item, item_scale, item_mask), 1)

        # MLP: Linear -> exact GELU -> Linear, + residual + LN3
        w1 = wall[:, off_w1:off_w1 + D2]                    # (D, 2D)
        b1 = vec[3:4, 0:D2]
        w2t = wall[:, off_w2t:off_w2t + D2]                 # (D, 2D) == W2^T
        b2 = vec[4:5, 0:D]
        h = jnp.dot(enc, w1, preferred_element_type=f32) + b1
        h = 0.5 * h * (1.0 + jax.lax.erf(h * inv_sqrt2))
        y = jax.lax.dot_general(h, w2t, (((1,), (1,)), ((), ())),
                                preferred_element_type=f32) + b2
        enc = layernorm(enc + y, 2)

        # heads on the target cell of the test rows (precomputed one-hot sel)
        sel = vec[8:8 + Rout, 0:R]                          # (Rout, R)
        sel_enc = jnp.dot(sel, enc, preferred_element_type=f32)
        hw = wall[:, off_hw:off_hw + 2]                     # (D, 2)
        hb = vec[4:5, D:D + 2]                              # (1, 2)
        out_ref[...] = jnp.dot(sel_enc, hw, preferred_element_type=f32) + hb

    return kernel


# ----------------------- one-time preparation + forward ----------------------

def build_forward(params, B, train_len, test_len):
    """Hoists ALL static/parametric preparation out of the per-call path."""
    S = train_len + test_len
    C = NUM_CELLS
    D = D_MODEL
    R = B * S * C
    Rout = B * test_len
    nH, dk = N_HEADS, D_K

    def n(a):
        return np.asarray(a, np.float32)

    # ---- per-token encoder rows (constant-folded gathers) -------------------
    r = np.arange(R)
    cell = r % C
    row = (r // C) % S
    enc_scale = n(params["wenc"])[cell]                           # (R, D)
    enc_bias = n(params["benc"])[cell]                            # (R, D)
    pos = n(params["row_pos"])[row] + n(params["cell_pos"])[cell]  # (R, D)
    is_tgt = np.repeat((cell == C - 1).astype(np.float32)[:, None], D, axis=1)
    slab_row = np.concatenate([enc_scale, enc_bias, pos, is_tgt], axis=1)

    # ---- block-diagonal group masks, tiled over heads -----------------------
    gi, gj = r[:, None], r[None, :]
    feat = (gi // C) == (gj // C)                                  # same (b,row)
    item = ((gi // (S * C)) == (gj // (S * C))) & ((gi % C) == (gj % C))
    mask_slab = np.concatenate(
        [np.tile(feat.astype(np.float32), (1, nH)),
         np.tile(item.astype(np.float32), (1, nH))], axis=1)       # (R, 2*nH*R)

    # head/lane block mask: row block h keeps only head-h's d_k lanes
    headlane = ((np.arange(nH * R)[:, None] // R) ==
                (np.arange(D)[None, :] // dk)).astype(np.float32)  # (nH*R, D)

    # ---- weight slab (all D-row matrices concatenated along lanes) ----------
    fa, ia, m = params["feat_attn"], params["item_attn"], params["mlp"]
    fqkv = np.concatenate([n(fa["wq"]), np.tile(n(fa["wk"]), (1, nH)),
                           np.tile(n(fa["wv"]), (1, nH))], axis=1)  # multiquery
    iqkv = np.concatenate([n(ia["wq"]), n(ia["wk"]), n(ia["wv"])], axis=1)
    blocks = [fqkv, n(fa["wo"]), iqkv, n(ia["wo"]),
              n(m["w1"]), n(m["w2"]).T, n(params["head_w"])]
    offs, o = [], 0
    for blk in blocks:
        offs.append(o)
        o += blk.shape[1]
    w_slab = np.concatenate(blocks, axis=1)
    pad = (-w_slab.shape[1]) % 128
    if pad:
        w_slab = np.pad(w_slab, ((0, 0), (0, pad)))
    off_feat, _, off_item, _, off_w1, off_w2t, off_hw = offs

    # ---- vector slab: LN params, biases, head bias, selection matrix --------
    LW = max(2 * D, R, D + 2)
    vec_slab = np.zeros((8 + Rout, LW), np.float32)
    vec_slab[0, 0:D] = n(params["ln1_g"]); vec_slab[0, D:2 * D] = n(params["ln1_b"])
    vec_slab[1, 0:D] = n(params["ln2_g"]); vec_slab[1, D:2 * D] = n(params["ln2_b"])
    vec_slab[2, 0:D] = n(params["ln3_g"]); vec_slab[2, D:2 * D] = n(params["ln3_b"])
    vec_slab[3, 0:2 * D] = n(m["b1"])
    vec_slab[4, 0:D] = n(m["b2"]); vec_slab[4, D:D + 2] = n(params["head_b"])
    for b in range(B):
        for t in range(test_len):
            vec_slab[8 + b * test_len + t,
                     b * (S * C) + (train_len + t) * C + (C - 1)] = 1.0

    kernel = make_fused_kernel(
        R=R, Rout=Rout, D=D, n_heads=nH,
        feat_scale=float(fa["scale"]), item_scale=float(ia["scale"]),
        off_feat=off_feat, off_item=off_item,
        off_w1=off_w1, off_w2t=off_w2t, off_hw=off_hw)

    const_inputs = tuple(jnp.asarray(a) for a in
                         (slab_row, mask_slab, headlane, w_slab, vec_slab))

    def _fs(shape):
        nd = len(shape)
        return pl.BlockSpec(shape, lambda i, _nd=nd: (0,) * _nd)

    in_specs = [_fs((R, 1))] + [_fs(tuple(a.shape)) for a in const_inputs]

    call = pl.pallas_call(
        kernel,
        out_shape=jax.ShapeDtypeStruct((Rout, 2), jnp.float32),
        grid=(1,),
        in_specs=in_specs,
        out_specs=pl.BlockSpec((Rout, 2), lambda i: (0, 0)),
        compiler_params=pltpu.CompilerParams(
            dimension_semantics=("arbitrary",)),
        cost_estimate=pl.CostEstimate(
            flops=8_000_000, transcendentals=40_000, bytes_accessed=300_000),
    )

    def forward(x_train, y_train, x_test):
        # only the data-dependent value table is built per call
        x_comb = jnp.concatenate([x_train, x_test], axis=1)            # (B,S,F)
        y_ph = jnp.full((B, test_len, 1), jnp.nan, dtype=x_test.dtype)
        y_comb = jnp.concatenate([y_train, y_ph], axis=1)              # (B,S,1)
        vals = jnp.concatenate([x_comb, y_comb], axis=2).reshape(R, 1)
        out = call(vals, *const_inputs)
        return out[:, 0].reshape(B, test_len), out[:, 1].reshape(B, test_len)

    return forward


# ----------------------------- pure-JAX reference ----------------------------

def ref_forward(params, x_train, y_train, x_test):
    B, train_len, F = x_train.shape
    test_len = x_test.shape[1]
    S = train_len + test_len
    C = F + 1
    D = params["wenc"].shape[1]

    x_comb = jnp.concatenate([x_train, x_test], axis=1)
    y_ph = jnp.full((B, test_len, 1), jnp.nan, dtype=x_test.dtype)
    y_comb = jnp.concatenate([y_train, y_ph], axis=1)

    cells = []
    for f in range(F):
        cells.append(x_comb[:, :, f:f + 1] * params["wenc"][f][None, None, :]
                     + params["benc"][f][None, None, :])
    nan_mask = jnp.isnan(y_comb)
    y_clean = jnp.where(nan_mask, 0.0, y_comb)
    t = y_clean * params["wenc"][F][None, None, :] + params["benc"][F][None, None, :]
    t = jnp.where(nan_mask, 0.0, t)
    cells.append(t)
    enc = jnp.stack(cells, axis=2)
    enc = enc + params["row_pos"][:S][None, :, None, :]
    enc = enc + params["cell_pos"][None, None, :, :]

    def ln(x, g, b):
        mu = x.mean(-1, keepdims=True)
        var = ((x - mu) ** 2).mean(-1, keepdims=True)
        return (x - mu) / jnp.sqrt(var + LN_EPS) * g + b

    def mha_ref(z, wq, wk, wv, wo, scale, multiquery):
        N, L, _ = z.shape
        q = z @ wq
        k = z @ wk
        v = z @ wv
        q = q.reshape(N, L, N_HEADS, D_K).transpose(0, 2, 1, 3)
        if multiquery:
            k = jnp.broadcast_to(k[:, None], (N, N_HEADS, L, D_K))
            v = jnp.broadcast_to(v[:, None], (N, N_HEADS, L, D_K))
        else:
            k = k.reshape(N, L, N_HEADS, D_K).transpose(0, 2, 1, 3)
            v = v.reshape(N, L, N_HEADS, D_K).transpose(0, 2, 1, 3)
        scores = jnp.einsum("nhqd,nhkd->nhqk", q, k) * scale
        attn = jax.nn.softmax(scores, axis=-1)
        o = jnp.einsum("nhqk,nhkd->nhqd", attn, v)
        o = o.transpose(0, 2, 1, 3).reshape(N, L, D)
        return o @ wo

    fa = params["feat_attn"]
    a = mha_ref(enc.reshape(B * S, C, D), fa["wq"], fa["wk"], fa["wv"], fa["wo"],
                fa["scale"], True).reshape(B, S, C, D)
    enc = ln(enc + a, params["ln1_g"], params["ln1_b"])

    ia = params["item_attn"]
    outs = [mha_ref(enc[:, :, c, :], ia["wq"], ia["wk"], ia["wv"], ia["wo"],
                    ia["scale"], False) for c in range(C)]
    a2 = jnp.stack(outs, axis=2)
    enc = ln(enc + a2, params["ln2_g"], params["ln2_b"])

    m = params["mlp"]
    h = enc.reshape(-1, D) @ m["w1"] + m["b1"]
    h = jax.nn.gelu(h, approximate=False)
    y = h @ m["w2"] + m["b2"]
    enc = ln(enc + y.reshape(B, S, C, D), params["ln3_g"], params["ln3_b"])

    test_enc = enc[:, train_len:, -1, :]
    out = test_enc.reshape(-1, D) @ params["head_w"] + params["head_b"]
    return out[:, 0].reshape(B, test_len), out[:, 1].reshape(B, test_len)


# ----------------------------- parameter init --------------------------------

def init_params(key):
    ks = jax.random.split(key, 18)

    def rnd(k, shape, scale):
        return jax.random.normal(k, shape, dtype=jnp.float32) * scale

    return {
        # stacked Linear(1, d_model) encoders: rows 0..F-1 features, row F target
        "wenc": rnd(ks[0], (NUM_CELLS, D_MODEL), 0.2),
        "benc": rnd(ks[1], (NUM_CELLS, D_MODEL), 0.1),
        "row_pos": rnd(ks[2], (MAX_SEQ_LEN, D_MODEL), 0.1),
        "cell_pos": rnd(ks[3], (NUM_CELLS, D_MODEL), 0.1),
        "feat_attn": {   # multiquery: shared K/V of width d_k
            "wq": rnd(ks[4], (D_MODEL, D_MODEL), 0.1),
            "wk": rnd(ks[5], (D_MODEL, D_K), 0.1),
            "wv": rnd(ks[6], (D_MODEL, D_K), 0.1),
            "wo": rnd(ks[7], (D_MODEL, D_MODEL), 0.1),
            "scale": 1.0 / math.sqrt(D_K),
        },
        "item_attn": {   # full multi-head
            "wq": rnd(ks[8], (D_MODEL, D_MODEL), 0.1),
            "wk": rnd(ks[9], (D_MODEL, D_MODEL), 0.1),
            "wv": rnd(ks[10], (D_MODEL, D_MODEL), 0.1),
            "wo": rnd(ks[11], (D_MODEL, D_MODEL), 0.1),
            "scale": 1.0 / math.sqrt(D_K),
        },
        "ln1_g": jnp.ones((D_MODEL,), jnp.float32),
        "ln1_b": jnp.zeros((D_MODEL,), jnp.float32),
        "ln2_g": jnp.ones((D_MODEL,), jnp.float32),
        "ln2_b": jnp.zeros((D_MODEL,), jnp.float32),
        "ln3_g": jnp.ones((D_MODEL,), jnp.float32),
        "ln3_b": jnp.zeros((D_MODEL,), jnp.float32),
        "mlp": {
            "w1": rnd(ks[12], (D_MODEL, 2 * D_MODEL), 0.1),
            "b1": rnd(ks[13], (2 * D_MODEL,), 0.05),
            "w2": rnd(ks[14], (2 * D_MODEL, D_MODEL), 0.1),
            "b2": rnd(ks[15], (D_MODEL,), 0.05),
        },
        # columns: [mean_head, log_var_head]
        "head_w": rnd(ks[16], (D_MODEL, 2), 0.1),
        "head_b": rnd(ks[17], (2,), 0.05),
    }


# ----------------------------- main ------------------------------------------

if __name__ == "__main__":
    key = jax.random.PRNGKey(0)
    kx, ky, kt, kp = jax.random.split(key, 4)

    B, train_len, test_len = 2, 4, 4
    x_train = jax.random.normal(kx, (B, train_len, NUM_FEATURES), dtype=jnp.float32)
    y_train = jax.random.normal(ky, (B, train_len, 1), dtype=jnp.float32)
    x_test = jax.random.normal(kt, (B, test_len, NUM_FEATURES), dtype=jnp.float32)
    params = init_params(kp)

    # one-time parameter preparation (slab packing, constant folding)
    forward = build_forward(params, B, train_len, test_len)

    mean, log_var = forward(x_train, y_train, x_test)
    jax.block_until_ready((mean, log_var))

    mean_ref, log_var_ref = ref_forward(params, x_train, y_train, x_test)
    assert mean.shape == (B, test_len) and log_var.shape == (B, test_len)
    assert np.allclose(np.asarray(mean), np.asarray(mean_ref), rtol=1e-4, atol=1e-4)
    assert np.allclose(np.asarray(log_var), np.asarray(log_var_ref), rtol=1e-4, atol=1e-4)
    # TODO(synk): dropout is a no-op (eval mode); training-time dropout not implemented.
    print("KERNEL_OK")
</pallas_src>

<mosaic_0001>
module attributes {stable_mosaic.version = 11 : i64} {
  func.func @kernel(%arg0: i32, %arg1: memref<64x1xf32, #tpu.memory_space<vmem>>, %arg2: memref<64x128xf32, #tpu.memory_space<vmem>>, %arg3: memref<64x512xf32, #tpu.memory_space<vmem>>, %arg4: memref<256x32xf32, #tpu.memory_space<vmem>>, %arg5: memref<32x512xf32, #tpu.memory_space<vmem>>, %arg6: memref<16x64xf32, #tpu.memory_space<vmem>>, %arg7: memref<8x2xf32, #tpu.memory_space<vmem>>) attributes {dimension_semantics = [#tpu.dimension_semantics<arbitrary>], iteration_bounds = array<i64: 1>, scalar_prefetch = 0 : i64, scratch_operands = 0 : i64, tpu.core_type = #tpu.core_type<tc>, window_params = [{pipeline_mode = #tpu.pipeline_mode<synchronous>, transform_indices = @transform_0, window_bounds = array<i64: 64, 1>}, {pipeline_mode = #tpu.pipeline_mode<synchronous>, transform_indices = @transform_1, window_bounds = array<i64: 64, 128>}, {pipeline_mode = #tpu.pipeline_mode<synchronous>, transform_indices = @transform_2, window_bounds = array<i64: 64, 512>}, {pipeline_mode = #tpu.pipeline_mode<synchronous>, transform_indices = @transform_3, window_bounds = array<i64: 256, 32>}, {pipeline_mode = #tpu.pipeline_mode<synchronous>, transform_indices = @transform_4, window_bounds = array<i64: 32, 512>}, {pipeline_mode = #tpu.pipeline_mode<synchronous>, transform_indices = @transform_5, window_bounds = array<i64: 16, 64>}, {pipeline_mode = #tpu.pipeline_mode<synchronous>, transform_indices = @transform_6, window_bounds = array<i64: 8, 2>}]} {
    %c0 = arith.constant 0 : index
    %c0_0 = arith.constant 0 : index
    %0 = vector.load %arg2[%c0, %c0_0] : memref<64x128xf32, #tpu.memory_space<vmem>>, vector<64x128xf32>
    %1 = vector.extract_strided_slice %0 {offsets = [0, 0], sizes = [64, 32], strides = [1, 1]} : vector<64x128xf32> to vector<64x32xf32>
    %2 = vector.extract_strided_slice %0 {offsets = [0, 32], sizes = [64, 32], strides = [1, 1]} : vector<64x128xf32> to vector<64x32xf32>
    %3 = vector.extract_strided_slice %0 {offsets = [0, 64], sizes = [64, 32], strides = [1, 1]} : vector<64x128xf32> to vector<64x32xf32>
    %4 = vector.extract_strided_slice %0 {offsets = [0, 96], sizes = [64, 32], strides = [1, 1]} : vector<64x128xf32> to vector<64x32xf32>
    %c0_1 = arith.constant 0 : index
    %c0_2 = arith.constant 0 : index
    %5 = vector.load %arg1[%c0_1, %c0_2] : memref<64x1xf32, #tpu.memory_space<vmem>>, vector<64x1xf32>
    %6 = arith.cmpf one, %5, %5 : vector<64x1xf32>
    %cst = arith.constant 5.000000e-01 : f32
    %7 = vector.broadcast %cst : f32 to vector<64x32xf32>
    %8 = arith.cmpf ogt, %4, %7 : vector<64x32xf32>
    %9 = vector.broadcast %6 : vector<64x1xi1> to vector<64x32xi1>
    %10 = arith.andi %9, %8 : vector<64x32xi1>
    %cst_3 = arith.constant 0.000000e+00 : f32
    %11 = vector.broadcast %cst_3 : f32 to vector<64x32xf32>
    %12 = vector.shape_cast %5 : vector<64x1xf32> to vector<64x1xf32>
    %13 = vector.broadcast %12 : vector<64x1xf32> to vector<64x32xf32>
    %14 = arith.select %10, %11, %13 : vector<64x32xi1>, vector<64x32xf32>
    %15 = arith.mulf %14, %1 : vector<64x32xf32>
    %16 = arith.addf %15, %2 : vector<64x32xf32>
    %cst_4 = arith.constant 0.000000e+00 : f32
    %17 = vector.broadcast %cst_4 : f32 to vector<64x32xf32>
    %18 = arith.select %10, %17, %16 : vector<64x32xi1>, vector<64x32xf32>
    %19 = arith.addf %18, %3 : vector<64x32xf32>
    %c0_5 = arith.constant 0 : index
    %c0_6 = arith.constant 0 : index
    %20 = vector.load %arg3[%c0_5, %c0_6] : memref<64x512xf32, #tpu.memory_space<vmem>>, vector<64x512xf32>
    %21 = vector.extract_strided_slice %20 {offsets = [0, 0], sizes = [64, 256], strides = [1, 1]} : vector<64x512xf32> to vector<64x256xf32>
    %22 = vector.extract_strided_slice %20 {offsets = [0, 256], sizes = [64, 256], strides = [1, 1]} : vector<64x512xf32> to vector<64x256xf32>
    %c0_7 = arith.constant 0 : index
    %c0_8 = arith.constant 0 : index
    %23 = vector.load %arg4[%c0_7, %c0_8] : memref<256x32xf32, #tpu.memory_space<vmem>>, vector<256x32xf32>
    %c0_9 = arith.constant 0 : index
    %c0_10 = arith.constant 0 : index
    %24 = vector.load %arg5[%c0_9, %c0_10] : memref<32x512xf32, #tpu.memory_space<vmem>>, vector<32x512xf32>
    %c0_11 = arith.constant 0 : index
    %c0_12 = arith.constant 0 : index
    %25 = vector.load %arg6[%c0_11, %c0_12] : memref<16x64xf32, #tpu.memory_space<vmem>>, vector<16x64xf32>
    %26 = vector.extract_strided_slice %24 {offsets = [0, 0], sizes = [32, 96], strides = [1, 1]} : vector<32x512xf32> to vector<32x96xf32>
    %27 = vector.extract_strided_slice %24 {offsets = [0, 96], sizes = [32, 32], strides = [1, 1]} : vector<32x512xf32> to vector<32x32xf32>
    %cst_13 = arith.constant dense<0.000000e+00> : vector<64x96xf32>
    %28 = tpu.matmul %19, %26, %cst_13 {dimension_numbers = #tpu.dot_dimension_numbers<[1], [0], [0], [1], [0, 0, 1, 1], [], []>} : vector<64x32xf32>, vector<32x96xf32>, vector<64x96xf32> -> vector<64x96xf32>
    %29 = vector.extract_strided_slice %28 {offsets = [0, 0], sizes = [64, 32], strides = [1, 1]} : vector<64x96xf32> to vector<64x32xf32>
    %30 = vector.extract_strided_slice %28 {offsets = [0, 32], sizes = [64, 32], strides = [1, 1]} : vector<64x96xf32> to vector<64x32xf32>
    %31 = vector.extract_strided_slice %28 {offsets = [0, 64], sizes = [64, 32], strides = [1, 1]} : vector<64x96xf32> to vector<64x32xf32>
    %32 = tpu.concatenate %30, %30, %30, %30 in 0 : vector<64x32xf32>, vector<64x32xf32>, vector<64x32xf32>, vector<64x32xf32> -> vector<256x32xf32>
    %33 = arith.mulf %32, %23 : vector<256x32xf32>
    %34 = tpu.concatenate %31, %31, %31, %31 in 0 : vector<64x32xf32>, vector<64x32xf32>, vector<64x32xf32>, vector<64x32xf32> -> vector<256x32xf32>
    %35 = arith.mulf %34, %23 : vector<256x32xf32>
    %cst_14 = arith.constant dense<0.000000e+00> : vector<64x256xf32>
    %36 = tpu.matmul %29, %33, %cst_14 {dimension_numbers = #tpu.dot_dimension_numbers<[1], [1], [0], [0], [0, 0, 1, 0], [], []>} : vector<64x32xf32>, vector<256x32xf32>, vector<64x256xf32> -> vector<64x256xf32>
    %cst_15 = arith.constant 0.353553385 : f32
    %37 = vector.broadcast %cst_15 : f32 to vector<64x256xf32>
    %38 = arith.mulf %36, %37 : vector<64x256xf32>
    %cst_16 = arith.constant dense<0xFF800000> : vector<64xf32>
    %39 = vector.multi_reduction <maximumf>, %38, %cst_16 [1] : vector<64x256xf32> to vector<64xf32>
    %40 = vector.shape_cast %39 : vector<64xf32> to vector<64x1xf32>
    %41 = vector.broadcast %40 : vector<64x1xf32> to vector<64x256xf32>
    %42 = arith.subf %38, %41 : vector<64x256xf32>
    %43 = math.exp %42 : vector<64x256xf32>
    %44 = arith.mulf %43, %21 : vector<64x256xf32>
    %cst_17 = arith.constant dense<0.000000e+00> : vector<64x32xf32>
    %45 = tpu.matmul %44, %23, %cst_17 {dimension_numbers = #tpu.dot_dimension_numbers<[1], [0], [0], [1], [0, 0, 1, 1], [], []>} : vector<64x256xf32>, vector<256x32xf32>, vector<64x32xf32> -> vector<64x32xf32>
    %cst_18 = arith.constant dense<0.000000e+00> : vector<64x32xf32>
    %46 = tpu.matmul %44, %35, %cst_18 {dimension_numbers = #tpu.dot_dimension_numbers<[1], [0], [0], [1], [0, 0, 1, 1], [], []>} : vector<64x256xf32>, vector<256x32xf32>, vector<64x32xf32> -> vector<64x32xf32>
    %47 = arith.divf %46, %45 : vector<64x32xf32>
    %cst_19 = arith.constant dense<0.000000e+00> : vector<64x32xf32>
    %48 = tpu.matmul %47, %27, %cst_19 {dimension_numbers = #tpu.dot_dimension_numbers<[1], [0], [0], [1], [0, 0, 1, 1], [], []>} : vector<64x32xf32>, vector<32x32xf32>, vector<64x32xf32> -> vector<64x32xf32>
    %49 = arith.addf %19, %48 : vector<64x32xf32>
    %50 = vector.extract_strided_slice %25 {offsets = [0, 0], sizes = [1, 32], strides = [1, 1]} : vector<16x64xf32> to vector<1x32xf32>
    %51 = vector.extract_strided_slice %25 {offsets = [0, 32], sizes = [1, 32], strides = [1, 1]} : vector<16x64xf32> to vector<1x32xf32>
    %cst_20 = arith.constant dense<0.000000e+00> : vector<64xf32>
    %52 = vector.multi_reduction <add>, %49, %cst_20 [1] : vector<64x32xf32> to vector<64xf32>
    %53 = vector.shape_cast %52 : vector<64xf32> to vector<64x1xf32>
    %cst_21 = arith.constant 3.200000e+01 : f32
    %54 = vector.broadcast %cst_21 : f32 to vector<64x1xf32>
    %55 = arith.divf %53, %54 : vector<64x1xf32>
    %56 = vector.broadcast %55 : vector<64x1xf32> to vector<64x32xf32>
    %57 = arith.subf %49, %56 : vector<64x32xf32>
    %58 = arith.mulf %57, %57 : vector<64x32xf32>
    %cst_22 = arith.constant dense<0.000000e+00> : vector<64xf32>
    %59 = vector.multi_reduction <add>, %58, %cst_22 [1] : vector<64x32xf32> to vector<64xf32>
    %60 = vector.shape_cast %59 : vector<64xf32> to vector<64x1xf32>
    %cst_23 = arith.constant 3.200000e+01 : f32
    %61 = vector.broadcast %cst_23 : f32 to vector<64x1xf32>
    %62 = arith.divf %60, %61 : vector<64x1xf32>
    %cst_24 = arith.constant 9.99999974E-6 : f32
    %63 = vector.broadcast %cst_24 : f32 to vector<64x1xf32>
    %64 = arith.addf %62, %63 : vector<64x1xf32>
    %65 = math.rsqrt %64 : vector<64x1xf32>
    %66 = vector.broadcast %65 : vector<64x1xf32> to vector<64x32xf32>
    %67 = arith.mulf %57, %66 : vector<64x32xf32>
    %68 = vector.broadcast %50 : vector<1x32xf32> to vector<64x32xf32>
    %69 = arith.mulf %67, %68 : vector<64x32xf32>
    %70 = vector.broadcast %51 : vector<1x32xf32> to vector<64x32xf32>
    %71 = arith.addf %69, %70 : vector<64x32xf32>
    %72 = vector.extract_strided_slice %24 {offsets = [0, 128], sizes = [32, 96], strides = [1, 1]} : vector<32x512xf32> to vector<32x96xf32>
    %73 = vector.extract_strided_slice %24 {offsets = [0, 224], sizes = [32, 32], strides = [1, 1]} : vector<32x512xf32> to vector<32x32xf32>
    %cst_25 = arith.constant dense<0.000000e+00> : vector<64x96xf32>
    %74 = tpu.matmul %71, %72, %cst_25 {dimension_numbers = #tpu.dot_dimension_numbers<[1], [0], [0], [1], [0, 0, 1, 1], [], []>} : vector<64x32xf32>, vector<32x96xf32>, vector<64x96xf32> -> vector<64x96xf32>
    %75 = vector.extract_strided_slice %74 {offsets = [0, 0], sizes = [64, 32], strides = [1, 1]} : vector<64x96xf32> to vector<64x32xf32>
    %76 = vector.extract_strided_slice %74 {offsets = [0, 32], sizes = [64, 32], strides = [1, 1]} : vector<64x96xf32> to vector<64x32xf32>
    %77 = vector.extract_strided_slice %74 {offsets = [0, 64], sizes = [64, 32], strides = [1, 1]} : vector<64x96xf32> to vector<64x32xf32>
    %78 = tpu.concatenate %76, %76, %76, %76 in 0 : vector<64x32xf32>, vector<64x32xf32>, vector<64x32xf32>, vector<64x32xf32> -> vector<256x32xf32>
    %79 = arith.mulf %78, %23 : vector<256x32xf32>
    %80 = tpu.concatenate %77, %77, %77, %77 in 0 : vector<64x32xf32>, vector<64x32xf32>, vector<64x32xf32>, vector<64x32xf32> -> vector<256x32xf32>
    %81 = arith.mulf %80, %23 : vector<256x32xf32>
    %cst_26 = arith.constant dense<0.000000e+00> : vector<64x256xf32>
    %82 = tpu.matmul %75, %79, %cst_26 {dimension_numbers = #tpu.dot_dimension_numbers<[1], [1], [0], [0], [0, 0, 1, 0], [], []>} : vector<64x32xf32>, vector<256x32xf32>, vector<64x256xf32> -> vector<64x256xf32>
    %cst_27 = arith.constant 0.353553385 : f32
    %83 = vector.broadcast %cst_27 : f32 to vector<64x256xf32>
    %84 = arith.mulf %82, %83 : vector<64x256xf32>
    %cst_28 = arith.constant dense<0xFF800000> : vector<64xf32>
    %85 = vector.multi_reduction <maximumf>, %84, %cst_28 [1] : vector<64x256xf32> to vector<64xf32>
    %86 = vector.shape_cast %85 : vector<64xf32> to vector<64x1xf32>
    %87 = vector.broadcast %86 : vector<64x1xf32> to vector<64x256xf32>
    %88 = arith.subf %84, %87 : vector<64x256xf32>
    %89 = math.exp %88 : vector<64x256xf32>
    %90 = arith.mulf %89, %22 : vector<64x256xf32>
    %cst_29 = arith.constant dense<0.000000e+00> : vector<64x32xf32>
    %91 = tpu.matmul %90, %23, %cst_29 {dimension_numbers = #tpu.dot_dimension_numbers<[1], [0], [0], [1], [0, 0, 1, 1], [], []>} : vector<64x256xf32>, vector<256x32xf32>, vector<64x32xf32> -> vector<64x32xf32>
    %cst_30 = arith.constant dense<0.000000e+00> : vector<64x32xf32>
    %92 = tpu.matmul %90, %81, %cst_30 {dimension_numbers = #tpu.dot_dimension_numbers<[1], [0], [0], [1], [0, 0, 1, 1], [], []>} : vector<64x256xf32>, vector<256x32xf32>, vector<64x32xf32> -> vector<64x32xf32>
    %93 = arith.divf %92, %91 : vector<64x32xf32>
    %cst_31 = arith.constant dense<0.000000e+00> : vector<64x32xf32>
    %94 = tpu.matmul %93, %73, %cst_31 {dimension_numbers = #tpu.dot_dimension_numbers<[1], [0], [0], [1], [0, 0, 1, 1], [], []>} : vector<64x32xf32>, vector<32x32xf32>, vector<64x32xf32> -> vector<64x32xf32>
    %95 = arith.addf %71, %94 : vector<64x32xf32>
    %96 = vector.extract_strided_slice %25 {offsets = [1, 0], sizes = [1, 32], strides = [1, 1]} : vector<16x64xf32> to vector<1x32xf32>
    %97 = vector.extract_strided_slice %25 {offsets = [1, 32], sizes = [1, 32], strides = [1, 1]} : vector<16x64xf32> to vector<1x32xf32>
    %cst_32 = arith.constant dense<0.000000e+00> : vector<64xf32>
    %98 = vector.multi_reduction <add>, %95, %cst_32 [1] : vector<64x32xf32> to vector<64xf32>
    %99 = vector.shape_cast %98 : vector<64xf32> to vector<64x1xf32>
    %cst_33 = arith.constant 3.200000e+01 : f32
    %100 = vector.broadcast %cst_33 : f32 to vector<64x1xf32>
    %101 = arith.divf %99, %100 : vector<64x1xf32>
    %102 = vector.broadcast %101 : vector<64x1xf32> to vector<64x32xf32>
    %103 = arith.subf %95, %102 : vector<64x32xf32>
    %104 = arith.mulf %103, %103 : vector<64x32xf32>
    %cst_34 = arith.constant dense<0.000000e+00> : vector<64xf32>
    %105 = vector.multi_reduction <add>, %104, %cst_34 [1] : vector<64x32xf32> to vector<64xf32>
    %106 = vector.shape_cast %105 : vector<64xf32> to vector<64x1xf32>
    %cst_35 = arith.constant 3.200000e+01 : f32
    %107 = vector.broadcast %cst_35 : f32 to vector<64x1xf32>
    %108 = arith.divf %106, %107 : vector<64x1xf32>
    %cst_36 = arith.constant 9.99999974E-6 : f32
    %109 = vector.broadcast %cst_36 : f32 to vector<64x1xf32>
    %110 = arith.addf %108, %109 : vector<64x1xf32>
    %111 = math.rsqrt %110 : vector<64x1xf32>
    %112 = vector.broadcast %111 : vector<64x1xf32> to vector<64x32xf32>
    %113 = arith.mulf %103, %112 : vector<64x32xf32>
    %114 = vector.broadcast %96 : vector<1x32xf32> to vector<64x32xf32>
    %115 = arith.mulf %113, %114 : vector<64x32xf32>
    %116 = vector.broadcast %97 : vector<1x32xf32> to vector<64x32xf32>
    %117 = arith.addf %115, %116 : vector<64x32xf32>
    %118 = vector.extract_strided_slice %24 {offsets = [0, 256], sizes = [32, 64], strides = [1, 1]} : vector<32x512xf32> to vector<32x64xf32>
    %119 = vector.extract_strided_slice %25 {offsets = [3, 0], sizes = [1, 64], strides = [1, 1]} : vector<16x64xf32> to vector<1x64xf32>
    %120 = vector.extract_strided_slice %24 {offsets = [0, 320], sizes = [32, 64], strides = [1, 1]} : vector<32x512xf32> to vector<32x64xf32>
    %121 = vector.extract_strided_slice %25 {offsets = [4, 0], sizes = [1, 32], strides = [1, 1]} : vector<16x64xf32> to vector<1x32xf32>
    %cst_37 = arith.constant dense<0.000000e+00> : vector<64x64xf32>
    %122 = tpu.matmul %117, %118, %cst_37 {dimension_numbers = #tpu.dot_dimension_numbers<[1], [0], [0], [1], [0, 0, 1, 1], [], []>} : vector<64x32xf32>, vector<32x64xf32>, vector<64x64xf32> -> vector<64x64xf32>
    %123 = vector.broadcast %119 : vector<1x64xf32> to vector<64x64xf32>
    %124 = arith.addf %122, %123 : vector<64x64xf32>
    %cst_38 = arith.constant 5.000000e-01 : f32
    %125 = vector.broadcast %cst_38 : f32 to vector<64x64xf32>
    %126 = arith.mulf %125, %124 : vector<64x64xf32>
    %cst_39 = arith.constant 0.707106769 : f32
    %127 = vector.broadcast %cst_39 : f32 to vector<64x64xf32>
    %128 = arith.mulf %124, %127 : vector<64x64xf32>
    %129 = math.erf %128 : vector<64x64xf32>
    %cst_40 = arith.constant 1.000000e+00 : f32
    %130 = vector.broadcast %cst_40 : f32 to vector<64x64xf32>
    %131 = arith.addf %130, %129 : vector<64x64xf32>
    %132 = arith.mulf %126, %131 : vector<64x64xf32>
    %cst_41 = arith.constant dense<0.000000e+00> : vector<64x32xf32>
    %133 = tpu.matmul %132, %120, %cst_41 {dimension_numbers = #tpu.dot_dimension_numbers<[1], [1], [0], [0], [0, 0, 1, 0], [], []>} : vector<64x64xf32>, vector<32x64xf32>, vector<64x32xf32> -> vector<64x32xf32>
    %134 = vector.broadcast %121 : vector<1x32xf32> to vector<64x32xf32>
    %135 = arith.addf %133, %134 : vector<64x32xf32>
    %136 = arith.addf %117, %135 : vector<64x32xf32>
    %137 = vector.extract_strided_slice %25 {offsets = [2, 0], sizes = [1, 32], strides = [1, 1]} : vector<16x64xf32> to vector<1x32xf32>
    %138 = vector.extract_strided_slice %25 {offsets = [2, 32], sizes = [1, 32], strides = [1, 1]} : vector<16x64xf32> to vector<1x32xf32>
    %cst_42 = arith.constant dense<0.000000e+00> : vector<64xf32>
    %139 = vector.multi_reduction <add>, %136, %cst_42 [1] : vector<64x32xf32> to vector<64xf32>
    %140 = vector.shape_cast %139 : vector<64xf32> to vector<64x1xf32>
    %cst_43 = arith.constant 3.200000e+01 : f32
    %141 = vector.broadcast %cst_43 : f32 to vector<64x1xf32>
    %142 = arith.divf %140, %141 : vector<64x1xf32>
    %143 = vector.broadcast %142 : vector<64x1xf32> to vector<64x32xf32>
    %144 = arith.subf %136, %143 : vector<64x32xf32>
    %145 = arith.mulf %144, %144 : vector<64x32xf32>
    %cst_44 = arith.constant dense<0.000000e+00> : vector<64xf32>
    %146 = vector.multi_reduction <add>, %145, %cst_44 [1] : vector<64x32xf32> to vector<64xf32>
    %147 = vector.shape_cast %146 : vector<64xf32> to vector<64x1xf32>
    %cst_45 = arith.constant 3.200000e+01 : f32
    %148 = vector.broadcast %cst_45 : f32 to vector<64x1xf32>
    %149 = arith.divf %147, %148 : vector<64x1xf32>
    %cst_46 = arith.constant 9.99999974E-6 : f32
    %150 = vector.broadcast %cst_46 : f32 to vector<64x1xf32>
    %151 = arith.addf %149, %150 : vector<64x1xf32>
    %152 = math.rsqrt %151 : vector<64x1xf32>
    %153 = vector.broadcast %152 : vector<64x1xf32> to vector<64x32xf32>
    %154 = arith.mulf %144, %153 : vector<64x32xf32>
    %155 = vector.broadcast %137 : vector<1x32xf32> to vector<64x32xf32>
    %156 = arith.mulf %154, %155 : vector<64x32xf32>
    %157 = vector.broadcast %138 : vector<1x32xf32> to vector<64x32xf32>
    %158 = arith.addf %156, %157 : vector<64x32xf32>
    %159 = vector.extract_strided_slice %25 {offsets = [8, 0], sizes = [8, 64], strides = [1, 1]} : vector<16x64xf32> to vector<8x64xf32>
    %cst_47 = arith.constant dense<0.000000e+00> : vector<8x32xf32>
    %160 = tpu.matmul %159, %158, %cst_47 {dimension_numbers = #tpu.dot_dimension_numbers<[1], [0], [0], [1], [0, 0, 1, 1], [], []>} : vector<8x64xf32>, vector<64x32xf32>, vector<8x32xf32> -> vector<8x32xf32>
    %161 = vector.extract_strided_slice %24 {offsets = [0, 384], sizes = [32, 2], strides = [1, 1]} : vector<32x512xf32> to vector<32x2xf32>
    %162 = vector.extract_strided_slice %25 {offsets = [4, 32], sizes = [1, 2], strides = [1, 1]} : vector<16x64xf32> to vector<1x2xf32>
    %cst_48 = arith.constant dense<0.000000e+00> : vector<8x2xf32>
    %163 = tpu.matmul %160, %161, %cst_48 {dimension_numbers = #tpu.dot_dimension_numbers<[1], [0], [0], [1], [0, 0, 1, 1], [], []>} : vector<8x32xf32>, vector<32x2xf32>, vector<8x2xf32> -> vector<8x2xf32>
    %164 = vector.broadcast %162 : vector<1x2xf32> to vector<8x2xf32>
    %165 = arith.addf %163, %164 : vector<8x2xf32>
    %c0_49 = arith.constant 0 : index
    %c0_50 = arith.constant 0 : index
    %166 = vector.load %arg7[%c0_49, %c0_50] : memref<8x2xf32, #tpu.memory_space<vmem>>, vector<8x2xf32>
    tpu.vector_store %arg7[%c0_49, %c0_50], %165 {strides = array<i32>} : memref<8x2xf32, #tpu.memory_space<vmem>>, vector<8x2xf32>,
    return
  }
  func.func @transform_0(%arg0: i32) -> (i32, i32) {
    %c0_i32 = arith.constant 0 : i32
    %c0_i32_0 = arith.constant 0 : i32
    %c0_i32_1 = arith.constant 0 : i32
    return %c0_i32, %c0_i32_0 : i32, i32
  }
  func.func @transform_1(%arg0: i32) -> (i32, i32) {
    %c0_i32 = arith.constant 0 : i32
    %c0_i32_0 = arith.constant 0 : i32
    %c0_i32_1 = arith.constant 0 : i32
    return %c0_i32, %c0_i32_0 : i32, i32
  }
  func.func @transform_2(%arg0: i32) -> (i32, i32) {
    %c0_i32 = arith.constant 0 : i32
    %c0_i32_0 = arith.constant 0 : i32
    %c0_i32_1 = arith.constant 0 : i32
    return %c0_i32, %c0_i32_0 : i32, i32
  }
  func.func @transform_3(%arg0: i32) -> (i32, i32) {
    %c0_i32 = arith.constant 0 : i32
    %c0_i32_0 = arith.constant 0 : i32
    %c0_i32_1 = arith.constant 0 : i32
    return %c0_i32, %c0_i32_0 : i32, i32
  }
  func.func @transform_4(%arg0: i32) -> (i32, i32) {
    %c0_i32 = arith.constant 0 : i32
    %c0_i32_0 = arith.constant 0 : i32
    %c0_i32_1 = arith.constant 0 : i32
    return %c0_i32, %c0_i32_0 : i32, i32
  }
  func.func @transform_5(%arg0: i32) -> (i32, i32) {
    %c0_i32 = arith.constant 0 : i32
    %c0_i32_0 = arith.constant 0 : i32
    %c0_i32_1 = arith.constant 0 : i32
    return %c0_i32, %c0_i32_0 : i32, i32
  }
  func.func @transform_6(%arg0: i32) -> (i32, i32) {
    %c0_i32 = arith.constant 0 : i32
    %c0_i32_0 = arith.constant 0 : i32
    %c0_i32_1 = arith.constant 0 : i32
    return %c0_i32, %c0_i32_0 : i32, i32
  }
}

</mosaic_0001>

<bundles_post_ra>
// kernel: tpu_custom_call.1
= control target key start
LH: loop header
LB: loop body
LE: loop exit
PB: predicated region body
PF: predicated region fallthrough
CT: control target
= control target key end

     0   :  { %11 = vsyncpa [#allocation3], 0  ;;  %s7490_s0 = inlined_call_operand.vmem [shape: f32[64,1], index: 0, kind: input, shape index: {}]   ;;  %s7491_s1 = inlined_call_operand.hbm [shape: f32[64,128], index: 1, kind: input, shape index: {}]   ;;  %s7492_s2 = inlined_call_operand.vmem [shape: f32[64,512], index: 2, kind: input, shape index: {}]   ;;  %s7493_s3 = inlined_call_operand.vmem [shape: f32[256,32], index: 3, kind: input, shape index: {}]   ;;  %s7494_s4 = inlined_call_operand.vmem [shape: f32[32,512], index: 4, kind: input, shape index: {}]   ;;  %s7495_s5 = inlined_call_operand.hbm [shape: f32[16,64], index: 5, kind: input, shape index: {}]   ;;  %s7496_s6 = inlined_call_operand.vmem [shape: f32[8,2], index: 6, kind: output, shape index: {}]  }
   0x1   :  { %s19_s23 = sshll.u32 %s7491_s1, 4  ;;  %s20_s23 = int_to_ptr.hbm [resolvable:$true] %s19_s23 }
   0x2   :  { %12 = vsyncpa [#allocation5], 0  ;;  %s4782_s24 = smov [#allocation2]   ;;  %s38_s28 = sshll.u32 %s7495_s5, 4  ;;  %s39_s28 = int_to_ptr.hbm [resolvable:$true] %s38_s28 }
   0x3   :  { %s21_s25 = sshll.u32 %s4782_s24, 4  ;;  %s4783_s29 = smov 128   ;;  %s22_s25 = int_to_ptr.vmem [resolvable:$true] %s21_s25 }
   0x4   :  { %s4784_s30 = smov 8   ;;  %s4785_s7 = smov [#allocation4]  }
   0x5   :  { %27 = dma.hbm_to_vmem [thread:$0]  %s20_s23, 1024, %s22_s25, [#allocation3], %s4783_s29, %s4783_s29, %s4784_s30  }
   0x6   :  { %s40_s8 = sshll.u32 %s4785_s7, 4  ;;  %s41_s8 = int_to_ptr.vmem [resolvable:$true] %s40_s8 }
   0x7   :  { %46 = dma.hbm_to_vmem [thread:$0]  %s39_s28, 256, %s41_s8, [#allocation5], %s4783_s29, %s4783_s29, %s4784_s30  }
   0x8   :  { %4778 = dma.done.wait [#allocation3], 1024  }
   0x9   :  { %4779 = vsyncadd [#allocation3], 4294966272 }
   0xa   :  { %4780 = dma.done.wait [#allocation5], 256  }
   0xb   :  { %4781 = vsyncadd [#allocation5], 4294967040  ;;  %v4786_v0 = vmov 0   ;;  %v63_v1 = vld [vmem:[%s7490_s0] sm:$0xff]  ;;  %v64_v3 = vld [vmem:[%s7490_s0 + $0x8] sm:$0xff]  ;;  %s4787_s11 = smov 32  }
   0xc   :  { %4331 = vset.pattern.permute.xlu0 %v4786_v0  ;;  %4332 = vset.pattern.permute.xlu2 %v4786_v0  ;;  %v4838_v2 = vld [vmem:[#allocation2] sm:$0xff]  ;;  %s4788_s12 = smov 96   ;;  %vm71_vm0 = vcmp.ne.f32.partialorder %v63_v1, %v63_v1  ;;  %vm72_vm1 = vcmp.ne.f32.partialorder %v64_v3, %v64_v3  ;;  %s4789_s13 = smov 64   ;;  %v4851_v6 = vld [vmem:[#allocation2 + $0x8] sm:$0xff]  ;;  %v65_v7 = vld [vmem:[%s7490_s0 + $0x10] sm:$0xff] }
   0xd   :  { %4333 = vset.pattern.permute.xlu1 %v4786_v0  ;;  %137 = vperm.xlu0 %4331, %v63_v1   ;;  %v87_v4 = vsel %vm71_vm0, 1, %v4786_v0  ;;  %v88_v5 = vsel %vm72_vm1, 1, %v4786_v0  ;;  %vm73_vm2 = vcmp.ne.f32.partialorder %v65_v7, %v65_v7  ;;  %v66_v9 = vld [vmem:[%s7490_s0 + $0x18] sm:$0xff]  ;;  %v4866_v10 = vld [vmem:[#allocation2 + $0x10] sm:$0xff]  ;;  %v67_v13 = vld [vmem:[%s7490_s0 + $0x20] sm:$0xff]  ;;  %vm79_vm8 = vcmp.gt.f32.partialorder %v4838_v2, 0.5 }
   0xe   :  { %263 = vrot.lane.b32.xlu2 %v4838_v2, %s4787_s11  ;;  %191 = vrot.lane.b32.xlu1 %v4838_v2, %s4788_s12  ;;  %v89_v8 = vsel %vm73_vm2, 1, %v4786_v0  ;;  %vm74_vm3 = vcmp.ne.f32.partialorder %v66_v9, %v66_v9  ;;  %v4873_v12 = vld [vmem:[#allocation2 + $0x18] sm:$0xff]  ;;  %vm75_vm4 = vcmp.ne.f32.partialorder %v67_v13, %v67_v13  ;;  %v4887_v15 = vld [vmem:[#allocation2 + $0x20] sm:$0xff]  ;;  %v68_v16 = vld [vmem:[%s7490_s0 + $0x28] sm:$0xff]  ;;  %vm80_vm12 = vcmp.gt.f32.partialorder %v4851_v6, 0.5 }
   0xf   :  { %v90_v11 = vsel %vm74_vm3, 1, %v4786_v0  ;;  %v91_v14 = vsel %vm75_vm4, 1, %v4786_v0  ;;  %vm76_vm5 = vcmp.ne.f32.partialorder %v68_v16, %v68_v16  ;;  %v69_v18 = vld [vmem:[%s7490_s0 + $0x30] sm:$0xff]  ;;  %v4902_v19 = vld [vmem:[#allocation2 + $0x28] sm:$0xff]  ;;  %v70_v21 = vld [vmem:[%s7490_s0 + $0x38] sm:$0xff]  ;;  %vm81_vm14 = vcmp.gt.f32.partialorder %v4866_v10, 0.5 }
  0x10   :  { %v92_v17 = vsel %vm76_vm5, 1, %v4786_v0  ;;  %vm77_vm6 = vcmp.ne.f32.partialorder %v69_v18, %v69_v18  ;;  %v4914_v22 = vld [vmem:[#allocation2 + $0x30] sm:$0xff]  ;;  %vm78_vm7 = vcmp.ne.f32.partialorder %v70_v21, %v70_v21  ;;  %v4923_v25 = vld [vmem:[#allocation2 + $0x38] sm:$0xff]  ;;  %vm82_vm2 = vcmp.gt.f32.partialorder %v4873_v12, 0.5 }
  0x11   :  { %v93_v20 = vsel %vm77_vm6, 1, %v4786_v0  ;;  %v94_v23 = vsel %vm78_vm7, 1, %v4786_v0  ;;  %vm83_vm5 = vcmp.gt.f32.partialorder %v4887_v15, 0.5  ;;  %vm84_vm7 = vcmp.gt.f32.partialorder %v4902_v19, 0.5 }
  0x15   :  { %96 = vperm.xlu0 %4331, %v87_v4  }
  0x16   :  { %99 = vperm.xlu2 %4332, %v88_v5   ;;  %223 = vrot.lane.b32.xlu1 %v4838_v2, %s4789_s13 }
  0x1d   :  { %142 = vperm.xlu0 %4331, %v64_v3  }
  0x1e   :  { %225 = vrot.lane.b32.xlu2 %v4851_v6, %s4789_s13  ;;  %193 = vrot.lane.b32.xlu1 %v4851_v6, %s4788_s12 }
  0x25   :  { %102 = vperm.xlu0 %4331, %v89_v8   ;;  %v4963_v8 = vld [vmem:[%s7493_s3 + $0xf8] sm:$0xff] }
  0x26   :  { %147 = vperm.xlu2 %4332, %v65_v7   ;;  %265 = vrot.lane.b32.xlu1 %v4851_v6, %s4787_s11 }
  0x27   :  { %1158 = vmatpush.msra.mxu0 %v4963_v8 }
  0x2d   :  { %195 = vrot.lane.b32.xlu0 %v4866_v10, %s4788_s12 }
  0x2e   :  { %105 = vperm.xlu2 %4332, %v90_v11   ;;  %227 = vrot.lane.b32.xlu1 %v4866_v10, %s4789_s13 }
  0x35   :  { %267 = vrot.lane.b32.xlu0 %v4866_v10, %s4787_s11 }
  0x36   :  { %197 = vrot.lane.b32.xlu2 %v4873_v12, %s4788_s12  ;;  %152 = vperm.xlu1 %4333, %v66_v9  }
  0x3d   :  { %229 = vrot.lane.b32.xlu0 %v4873_v12, %s4789_s13 }
  0x3e   :  { %269 = vrot.lane.b32.xlu2 %v4873_v12, %s4787_s11  ;;  %108 = vperm.xlu1 %4333, %v91_v14  }
  0x45   :  { %157 = vperm.xlu0 %4331, %v67_v13  }
  0x46   :  { %231 = vrot.lane.b32.xlu2 %v4887_v15, %s4789_s13  ;;  %199 = vrot.lane.b32.xlu1 %v4887_v15, %s4788_s12 }
  0x4d   :  { %111 = vperm.xlu0 %4331, %v92_v17  }
  0x4e   :  { %162 = vperm.xlu2 %4332, %v68_v16   ;;  %271 = vrot.lane.b32.xlu1 %v4887_v15, %s4787_s11 }
  0x55   :  { %201 = vrot.lane.b32.xlu0 %v4902_v19, %s4788_s12 }
  0x56   :  { %114 = vperm.xlu2 %4332, %v93_v20   ;;  %233 = vrot.lane.b32.xlu1 %v4902_v19, %s4789_s13 }
  0x5d   :  { %273 = vrot.lane.b32.xlu0 %v4902_v19, %s4787_s11  ;;  %v4980_v19 = vld [vmem:[%s7493_s3 + $0xe8] sm:$0xff] }
  0x5e   :  { %167 = vperm.xlu2 %4332, %v69_v18   ;;  %235 = vrot.lane.b32.xlu1 %v4914_v22, %s4789_s13 }
  0x65   :  { %203 = vrot.lane.b32.xlu0 %v4914_v22, %s4788_s12 }
  0x66   :  { %117 = vperm.xlu2 %4332, %v94_v23  }
  0x68   :  { %v264_v24 = vpop.permute.xlu2 %263 }
  0x6d   :  { %275 = vrot.lane.b32.xlu0 %v4914_v22, %s4787_s11 }
  0x6e   :  { %172 = vperm.xlu2 %4332, %v70_v21   ;;  %v4974_v21 = vld [vmem:[%s7493_s3 + $0xf0] sm:$0xff] }
  0x6f   :  { %1159 = vmatpush.msra.mxu0 %v4974_v21 }
  0x70   :  { %v100_v26 = vpop.permute.xlu2 %99 }
  0x71   :  { %vm120_vm11 = vcmp.eq.s32.totalorder %v100_v26, 1  ;;  %1160 = vmatpush.msra.mxu0 %v4980_v19 }
  0x72   :  { %vm4931_vm13 = vmand %vm120_vm11, %vm80_vm12  ;;  %vm85_vm11 = vcmp.gt.f32.partialorder %v4914_v22, 0.5  ;;  %v5004_v22 = vld [vmem:[%s7494_s4 + $0x40] sm:$0xff] }
  0x75   :  { %205 = vrot.lane.b32.xlu0 %v4923_v25, %s4788_s12 }
  0x76   :  { %277 = vrot.lane.b32.xlu2 %v4923_v25, %s4787_s11 }
  0x78   :  { %v226_v29 = vpop.permute.xlu2 %225 }
  0x7f   :  { %v138_v27 = vpop.permute.xlu0 %137 }
  0x80   :  { %v192_v28 = vpop.permute.xlu1 %191  ;;  %v148_v36 = vpop.permute.xlu2 %147 }
  0x87   :  { %v97_v30 = vpop.permute.xlu0 %96 }
  0x88   :  { %vm119_vm9 = vcmp.eq.s32.totalorder %v97_v30, 1  ;;  %v224_v31 = vpop.permute.xlu1 %223  ;;  %v106_v45 = vpop.permute.xlu2 %105 }
  0x89   :  { %vm127_vm10 = vmand %vm119_vm9, %vm79_vm8  ;;  %vm122_vm1 = vcmp.eq.s32.totalorder %v106_v45, 1  ;;  %v5044_v45 = vld [vmem:[%s7493_s3 + $0xd0] sm:$0xff] }
  0x8a   :  { %v175_v32 = vsel %vm127_vm10, 0.0, %v138_v27  ;;  %vm130_vm3 = vmand %vm122_vm1, %vm82_vm2 }
  0x8b   :  { %v215_v33 = vmul.f32 %v192_v28, %v175_v32 }
  0x8d   :  { %v247_v34 = vadd.f32 %v224_v31, %v215_v33 }
  0x8f   :  { %v255_v37 = vsel %vm127_vm10, 0.0, %v247_v34  ;;  %v143_v38 = vpop.permute.xlu0 %142  ;;  %v4999_v34 = vld [vmem:[%s7494_s4 + $0x60] sm:$0xff] }
  0x90   :  { %v176_v39 = vsel %vm4931_vm13, 0.0, %v143_v38  ;;  %v194_v40 = vpop.permute.xlu1 %193  ;;  %v4937_v41 = vadd.f32 %v264_v24, %v255_v37  ;;  %v198_v53 = vpop.permute.xlu2 %197  ;;  %430 = vmatpush.msra.mxu1 %v4999_v34  ;;  %v5012_v37 = vld [vmem:[%s7494_s4 + $0x20] sm:$0xff] }
  0x91   :  { %v216_v42 = vmul.f32 %v194_v40, %v176_v39 }
  0x92   :  { %385 = vrot.lane.b32.xlu1 %v4937_v41, %s4787_s11  ;;  %431 = vmatpush.msra.mxu1 %v5004_v22 }
  0x93   :  { %v248_v43 = vadd.f32 %v226_v29, %v216_v42  ;;  %v5027_v42 = vld [vmem:[%s7494_s4] sm:$0xff]  ;;  %v5238_v29 = vld [vmem:[%s7493_s3 + $0x18] sm:$0xff] }
  0x94   :  { %432 = vmatpush.msra.mxu1 %v5012_v37 }
  0x95   :  { %v256_v46 = vsel %vm4931_vm13, 0.0, %v248_v43  ;;  %vm401_vm13 = vcmask 261120  }
  0x96   :  { %433 = vmatpush.msra.mxu1 %v5027_v42 }
  0x97   :  { %v103_v44 = vpop.permute.xlu0 %102 }
  0x98   :  { %v266_v47 = vpop.permute.xlu1 %265  ;;  %vm121_vm15 = vcmp.eq.s32.totalorder %v103_v44, 1  ;;  %v270_v60 = vpop.permute.xlu2 %269  ;;  %v5035_v44 = vld [vmem:[%s7493_s3 + $0x68] sm:$0xff] }
  0x99   :  { %v4944_v48 = vadd.f32 %v266_v47, %v256_v46  ;;  %vm129_vm0 = vmand %vm121_vm15, %vm81_vm14  ;;  %v5049_v46 = vld [vmem:[%s7493_s3 + $0x70] sm:$0xff]  ;;  %vm86_vm15 = vcmp.gt.f32.partialorder %v4923_v25, 0.5 }
  0x9a   :  { %v177_v50 = vsel %vm129_vm0, 0.0, %v148_v36  ;;  %v5058_v47 = vld [vmem:[%s7493_s3 + $0x50] sm:$0xff] }
  0x9b   :  { %387 = vrot.lane.b32.xlu1 %v4944_v48, %s4787_s11 }
  0x9f   :  { %v196_v49 = vpop.permute.xlu0 %195 }
  0xa0   :  { %v217_v51 = vmul.f32 %v196_v49, %v177_v50  ;;  %v228_v52 = vpop.permute.xlu1 %227  ;;  %v232_v3 = vpop.permute.xlu2 %231  ;;  %v5063_v49 = vld [vmem:[%s7493_s3 + $0xd8] sm:$0xff] }
  0xa1   :  { %v5072_v50 = vld [vmem:[%s7493_s3 + $0xb8] sm:$0xff] }
  0xa2   :  { %v249_v54 = vadd.f32 %v228_v52, %v217_v51  ;;  %v5077_v51 = vld [vmem:[%s7493_s3 + $0x58] sm:$0xff] }
  0xa3   :  { %237 = vrot.lane.b32.xlu1 %v4923_v25, %s4789_s13  ;;  %v5086_v52 = vld [vmem:[%s7493_s3 + $0x78] sm:$0xff]  ;;  %v5133_v25 = vld [vmem:[%s7493_s3 + $0x60] sm:$0xff] }
  0xa4   :  { %v257_v56 = vsel %vm129_vm0, 0.0, %v249_v54  ;;  %1117 = vmatpush.msra.mxu3 %v5086_v52 }
  0xa6   :  { %1118 = vmatpush.msra.mxu3 %v5049_v46 }
  0xa7   :  { %v268_v55 = vpop.permute.xlu0 %267 }
  0xa8   :  { %v4951_v57 = vadd.f32 %v268_v55, %v257_v56  ;;  %v153_v58 = vpop.permute.xlu1 %152  ;;  %v163_v11 = vpop.permute.xlu2 %162  ;;  %v5094_v55 = vld [vmem:[%s7493_s3 + $0x38] sm:$0xff]  ;;  %v5099_v56 = vld [vmem:[%s7493_s3 + $0xc0] sm:$0xff]  ;;  %1119 = vmatpush.msra.mxu3 %v5035_v44 }
  0xa9   :  { %v178_v59 = vsel %vm130_vm3, 0.0, %v153_v58  ;;  %v5109_v58 = vld [vmem:[%s7493_s3 + $0xe0] sm:$0xff] }
  0xaa   :  { %389 = vrot.lane.b32.xlu0 %v4951_v57, %s4787_s11  ;;  %v218_v61 = vmul.f32 %v198_v53, %v178_v59  ;;  %1161 = vmatpush.msra.mxu0 %v5109_v58 }
  0xab   :  { %1120 = vmatpush.msra.mxu3 %v5133_v25 }
  0xac   :  { %1162 = vmatpush.msra.mxu0 %v5063_v49 }
  0xad   :  { %1121 = vmatpush.msra.mxu3 %v5077_v51 }
  0xae   :  { %1163 = vmatpush.msra.mxu0 %v5044_v45 }
  0xaf   :  { %v230_v62 = vpop.permute.xlu0 %229  ;;  %1122 = vmatpush.msra.mxu3 %v5058_v47 }
  0xb0   :  { %v250_v63 = vadd.f32 %v230_v62, %v218_v61  ;;  %v109_v0 = vpop.permute.xlu1 %108  ;;  %v115_v20 = vpop.permute.xlu2 %114  ;;  %v5123_v61 = vld [vmem:[%s7493_s3 + $0x40] sm:$0xff] }
  0xb1   :  { %vm123_vm4 = vcmp.eq.s32.totalorder %v109_v0, 1  ;;  %vm125_vm10 = vcmp.eq.s32.totalorder %v115_v20, 1 }
  0xb2   :  { %v258_v1 = vsel %vm130_vm3, 0.0, %v250_v63  ;;  %vm131_vm6 = vmand %vm123_vm4, %vm83_vm5 }
  0xb3   :  { %v4956_v2 = vadd.f32 %v270_v60, %v258_v1  ;;  %vm4988_vm12 = vmand %vm125_vm10, %vm85_vm11  ;;  %v5118_v60 = vld [vmem:[%s7493_s3 + $0x30] sm:$0xff] }
  0xb5   :  { %391 = vrot.lane.b32.xlu1 %v4956_v2, %s4787_s11 }
  0xb7   :  { %v158_v4 = vpop.permute.xlu0 %157 }
  0xb8   :  { %v179_v5 = vsel %vm131_vm6, 0.0, %v158_v4  ;;  %v200_v6 = vpop.permute.xlu1 %199  ;;  %v168_v28 = vpop.permute.xlu2 %167 }
  0xb9   :  { %v219_v7 = vmul.f32 %v200_v6, %v179_v5  ;;  %v181_v30 = vsel %vm4988_vm12, 0.0, %v168_v28  ;;  %v5140_v5 = vld [vmem:[%s7493_s3 + $0x28] sm:$0xff] }
  0xba   :  { %v5145_v6 = vld [vmem:[%s7493_s3 + $0xa8] sm:$0xff] }
  0xbb   :  { %v251_v9 = vadd.f32 %v232_v3, %v219_v7  ;;  %v5226_v28 = vld [vmem:[%s7493_s3 + $0x88] sm:$0xff] }
  0xbd   :  { %v259_v12 = vsel %vm131_vm6, 0.0, %v251_v9 }
  0xbf   :  { %v112_v10 = vpop.permute.xlu0 %111 }
  0xc0   :  { %v272_v13 = vpop.permute.xlu1 %271  ;;  %vm124_vm8 = vcmp.eq.s32.totalorder %v112_v10, 1  ;;  %v118_v54 = vpop.permute.xlu2 %117 }
  0xc1   :  { %v4967_v14 = vadd.f32 %v272_v13, %v259_v12  ;;  %vm132_vm9 = vmand %vm124_vm8, %vm84_vm7  ;;  %vm126_vm14 = vcmp.eq.s32.totalorder %v118_v54, 1  ;;  %v5164_v12 = vld [vmem:[%s7493_s3 + $0x48] sm:$0xff] }
  0xc2   :  { %v180_v16 = vsel %vm132_vm9, 0.0, %v163_v11  ;;  %vm134_vm0 = vmand %vm126_vm14, %vm86_vm15  ;;  %v5157_v11 = vld [vmem:[%s7493_s3 + $0xc8] sm:$0xff]  ;;  %1123 = vmatpush.msra.mxu3 %v5164_v12 }
  0xc3   :  { %393 = vrot.lane.b32.xlu2 %v4967_v14, %s4787_s11  ;;  %1164 = vmatpush.msra.mxu0 %v5157_v11 }
  0xc4   :  { %1124 = vmatpush.msra.mxu3 %v5123_v61 }
  0xc5   :  { %1165 = vmatpush.msra.mxu0 %v5099_v56 }
  0xc6   :  { %1125 = vmatpush.msra.mxu3 %v5094_v55 }
  0xc7   :  { %v202_v15 = vpop.permute.xlu0 %201  ;;  %1166 = vmatpush.msra.mxu0 %v5072_v50 }
  0xc8   :  { %v220_v17 = vmul.f32 %v202_v15, %v180_v16  ;;  %v234_v18 = vpop.permute.xlu1 %233  ;;  %v173_v62 = vpop.permute.xlu2 %172  ;;  %v5174_v15 = vld [vmem:[%s7493_s3 + $0x90] sm:$0xff]  ;;  %v5179_v16 = vld [vmem:[%s7493_s3 + $0xa0] sm:$0xff]  ;;  %1126 = vmatpush.msra.mxu3 %v5118_v60 }
  0xc9   :  { %v182_v0 = vsel %vm134_vm0, 0.0, %v173_v62 }
  0xca   :  { %v252_v23 = vadd.f32 %v234_v18, %v220_v17  ;;  %v5193_v17 = vld [vmem:[%s7493_s3 + $0xb0] sm:$0xff]  ;;  %1127 = vmatpush.msra.mxu3 %v5140_v5  ;;  %v5199_v18 = vld [vmem:[%s7493_s3 + $0x20] sm:$0xff] }
  0xcb   :  { %1167 = vmatpush.msra.mxu0 %v5193_v17 }
  0xcc   :  { %v260_v26 = vsel %vm132_vm9, 0.0, %v252_v23  ;;  %v5205_v23 = vld [vmem:[%s7493_s3 + $0x10] sm:$0xff]  ;;  %1128 = vmatpush.msra.mxu3 %v5199_v18 }
  0xcd   :  { %1168 = vmatpush.msra.mxu0 %v5145_v6 }
  0xce   :  { %1129 = vmatpush.msra.mxu3 %v5238_v29 }
  0xcf   :  { %v274_v24 = vpop.permute.xlu0 %273  ;;  %1169 = vmatpush.msra.mxu0 %v5179_v16 }
  0xd0   :  { %v4983_v27 = vadd.f32 %v274_v24, %v260_v26  ;;  %v236_v33 = vpop.permute.xlu1 %235  ;;  %v278_v7 = vpop.permute.xlu2 %277  ;;  %v5220_v24 = vld [vmem:[%s7493_s3 + $0x98] sm:$0xff]  ;;  %1130 = vmatpush.msra.mxu3 %v5205_v23 }
  0xd1   :  { %1170 = vmatpush.msra.mxu0 %v5220_v24 }
  0xd2   :  { %395 = vrot.lane.b32.xlu0 %v4983_v27, %s4787_s11 }
  0xd3   :  { %1171 = vmatpush.msra.mxu0 %v5174_v15 }
  0xd5   :  { %1172 = vmatpush.msra.mxu0 %v5226_v28 }
  0xd7   :  { %v204_v31 = vpop.permute.xlu0 %203 }
  0xd8   :  { %v221_v32 = vmul.f32 %v204_v31, %v181_v30  ;;  %v5244_v30 = vld [vmem:[%s7493_s3 + $0x8] sm:$0xff]  ;;  %v5255_v31 = vld [vmem:[%s7493_s3 + $0x80] sm:$0xff] }
  0xd9   :  { %1131 = vmatpush.msra.mxu3 %v5244_v30  ;;  %1173 = vmatpush.msra.mxu0 %v5255_v31 }
  0xda   :  { %553 = vrot.lane.b32.xlu0 %v4963_v8, %s4787_s11  ;;  %v253_v35 = vadd.f32 %v236_v33, %v221_v32 }
  0xdc   :  { %v261_v39 = vsel %vm4988_vm12, 0.0, %v253_v35 }
  0xdf   :  { %v276_v38 = vpop.permute.xlu0 %275 }
  0xe0   :  { %v5018_v40 = vadd.f32 %v276_v38, %v261_v39 }
  0xe2   :  { %7544 = vst [vmem:[#allocation8_spill] sm:$0xff] %v5018_v40  ;;  %549 = vrot.lane.b32.xlu0 %v4980_v19, %s4787_s11  ;;  %397 = vrot.lane.b32.xlu1 %v5018_v40, %s4787_s11 }
  0xe7   :  { %v206_v63 = vpop.permute.xlu0 %205 }
  0xe8   :  { %v222_v1 = vmul.f32 %v206_v63, %v182_v0 }
  0xea   :  { %517 = vrot.lane.b32.xlu0 %v5035_v44, %s4787_s11  ;;  %551 = vrot.lane.b32.xlu1 %v4974_v21, %s4787_s11 }
  0xf2   :  { %543 = vrot.lane.b32.xlu0 %v5044_v45, %s4787_s11  ;;  %519 = vrot.lane.b32.xlu1 %v5049_v46, %s4787_s11 }
  0xfa   :  { %511 = vrot.lane.b32.xlu0 %v5058_v47, %s4787_s11  ;;  %545 = vrot.lane.b32.xlu1 %v5063_v49, %s4787_s11 }
 0x102   :  { %537 = vrot.lane.b32.xlu0 %v5072_v50, %s4787_s11  ;;  %513 = vrot.lane.b32.xlu1 %v5077_v51, %s4787_s11 }
 0x104   :  { %v386_v53 = vpop.permute.xlu1 %385 }
 0x105   :  { %4148 = vmatmul.msk.f32.vlgmr.msra.gmra.mxu1 %vm401_vm13, %v386_v53 }
 0x10a   :  { %505 = vrot.lane.b32.xlu0 %v5094_v55, %s4787_s11  ;;  %539 = vrot.lane.b32.xlu1 %v5099_v56, %s4787_s11 }
 0x10d   :  { %v388_v59 = vpop.permute.xlu1 %387 }
 0x10e   :  { %4149 = vmatmul.msk.f32.gmra.mxu1 %vm401_vm13, %v388_v59 }
 0x112   :  { %503 = vrot.lane.b32.xlu0 %v5118_v60, %s4787_s11  ;;  %507 = vrot.lane.b32.xlu1 %v5123_v61, %s4787_s11 }
 0x115   :  { %v238_v3 = vpop.permute.xlu1 %237 }
 0x116   :  { %v254_v4 = vadd.f32 %v238_v3, %v222_v1 }
 0x118   :  { %v262_v9 = vsel %vm134_vm0, 0.0, %v254_v4 }
 0x119   :  { %v5148_v10 = vadd.f32 %v278_v7, %v262_v9 }
 0x11a   :  { %501 = vrot.lane.b32.xlu0 %v5140_v5, %s4787_s11  ;;  %533 = vrot.lane.b32.xlu1 %v5145_v6, %s4787_s11 }
 0x11b   :  { %7545 = vst [vmem:[#allocation9_spill] sm:$0xff] %v5148_v10  ;;  %399 = vrot.lane.b32.xlu2 %v5148_v10, %s4787_s11 }
 0x11c   :  { %v390_v13 = vpop.permute.xlu0 %389 }
 0x11d   :  { %4150 = vmatmul.msk.f32.gmra.mxu1 %vm401_vm13, %v390_v13  ;;  %v394_v26 = vpop.permute.xlu2 %393 }
 0x122   :  { %527 = vrot.lane.b32.xlu0 %v5174_v15, %s4787_s11  ;;  %531 = vrot.lane.b32.xlu1 %v5179_v16, %s4787_s11 }
 0x123   :  { %521 = vrot.lane.b32.xlu2 %v5086_v52, %s4787_s11 }
 0x127   :  { %v392_v20 = vpop.permute.xlu1 %391 }
 0x128   :  { %4151 = vmatmul.msk.f32.gmra.mxu1 %vm401_vm13, %v392_v20 }
 0x12a   :  { %495 = vrot.lane.b32.xlu0 %v5205_v23, %s4787_s11  ;;  %499 = vrot.lane.b32.xlu1 %v5199_v18, %s4787_s11 }
 0x12b   :  { %547 = vrot.lane.b32.xlu2 %v5109_v58, %s4787_s11 }
 0x130   :  { %4152 = vmatmul.msk.f32.gmra.mxu1 %vm401_vm13, %v394_v26 }
 0x132   :  { %525 = vrot.lane.b32.xlu1 %v5226_v28, %s4787_s11 }
 0x133   :  { %515 = vrot.lane.b32.xlu2 %v5133_v25, %s4787_s11 }
 0x13a   :  { %493 = vrot.lane.b32.xlu1 %v5244_v30, %s4787_s11 }
 0x13b   :  { %541 = vrot.lane.b32.xlu2 %v5157_v11, %s4787_s11 }
 0x143   :  { %509 = vrot.lane.b32.xlu2 %v5164_v12, %s4787_s11 }
 0x144   :  { %v396_v32 = vpop.permute.xlu0 %395 }
 0x145   :  { %4153 = vmatmul.msk.f32.gmra.mxu1 %vm401_vm13, %v396_v32 }
 0x14b   :  { %535 = vrot.lane.b32.xlu2 %v5193_v17, %s4787_s11 }
 0x14c   :  { %v5271_v38 = vpop.permute.xlu0 %553 }
 0x153   :  { %529 = vrot.lane.b32.xlu2 %v5220_v24, %s4787_s11 }
 0x154   :  { %v398_v33 = vpop.permute.xlu1 %397  ;;  %v5273_v39 = vpop.permute.xlu0 %549 }
 0x155   :  { %4154 = vmatmul.msk.f32.gmra.mxu1 %vm401_vm13, %v398_v33  ;;  %7546 = vst [vmem:[#allocation10_spill] sm:$0xff] %v5273_v39 }
 0x15b   :  { %497 = vrot.lane.b32.xlu2 %v5238_v29, %s4787_s11 }
 0x15c   :  { %v5277_v54 = vpop.permute.xlu0 %517  ;;  %v5279_v59 = vpop.permute.xlu1 %551 }
 0x15d   :  { %7547 = vst [vmem:[#allocation11_spill] sm:$0xff] %v5277_v54 }
 0x15e   :  { %7548 = vst [vmem:[#allocation12_spill] sm:$0xff] %v5279_v59 }
 0x163   :  { %523 = vrot.lane.b32.xlu2 %v5255_v31, %s4787_s11 }
 0x164   :  { %v5283_v63 = vpop.permute.xlu0 %543  ;;  %v5287_v1 = vpop.permute.xlu1 %519 }
 0x165   :  { %7549 = vst [vmem:[#allocation13_spill] sm:$0xff] %v5283_v63 }
 0x166   :  { %7550 = vst [vmem:[#allocation14_spill] sm:$0xff] %v5287_v1 }
 0x16c   :  { %v5294_v7 = vpop.permute.xlu1 %545  ;;  %v5317_v43 = vpop.permute.xlu0 %511 }
 0x16d   :  { %7552 = vst [vmem:[#allocation16_spill] sm:$0xff] %v5294_v7 }
 0x175   :  { %v400_v35 = vpop.permute.xlu2 %399 }
 0x176   :  { %4155 = vmatmul.msk.f32.gmra.mxu1 %vm401_vm13, %v400_v35 }
 0x17d   :  { %v5292_v4 = vpop.permute.xlu2 %521 }
 0x17e   :  { %7551 = vst [vmem:[#allocation15_spill] sm:$0xff] %v5292_v4 }
 0x182   :  { %v5275_v53 = vpop.f32.mrf.mxu1 }
 0x185   :  { %v5301_v20 = vpop.permute.xlu2 %547 }
 0x186   :  { %7553 = vst [vmem:[#allocation17_spill] sm:$0xff] %v5301_v20 }
 0x18b   :  { %v5281_v62 = vpop.f32.mrf.mxu1 }
 0x18d   :  { %v5308_v33 = vpop.permute.xlu2 %515 }
 0x18e   :  { %7554 = vst [vmem:[#allocation18_spill] sm:$0xff] %v5308_v33 }
 0x19a   :  { %v5285_v0 = vpop.f32.mrf.mxu1 }
 0x19b   :  { %v613_v3 = vmul.f32 %v5283_v63, %v5285_v0  ;;  %v5325_v63 = vpop.permute.xlu0 %537 }
 0x19c   :  { %7555 = vst [vmem:[#allocation19_spill] sm:$0xff] %v5325_v63 }
 0x19d   :  { %831 = vrot.lane.b32.xlu0 %v613_v3, %s4788_s12 }
 0x1a5   :  { %v5296_v9 = vpop.f32.mrf.mxu1 }
 0x1a6   :  { %v614_v13 = vmul.f32 %v5294_v7, %v5296_v9  ;;  %v5327_v7 = vpop.permute.xlu2 %541 }
 0x1a7   :  { %7556 = vst [vmem:[#allocation20_spill] sm:$0xff] %v5327_v7 }
 0x1a8   :  { %833 = vrot.lane.b32.xlu2 %v614_v13, %s4788_s12 }
 0x1ad   :  { %v5303_v26 = vpop.f32.mrf.mxu1 }
 0x1ae   :  { %v615_v32 = vmul.f32 %v5301_v20, %v5303_v26  ;;  %v599_v35 = vmul.f32 %v5308_v33, %v5303_v26 }
 0x1b0   :  { %835 = vrot.lane.b32.xlu1 %v615_v32, %s4788_s12  ;;  %v5322_v32 = vpop.permute.xlu1 %513 }
 0x1b8   :  { %803 = vrot.lane.b32.xlu1 %v599_v35, %s4788_s12 }
 0x1c2   :  { %v5313_v3 = vpop.f32.mrf.mxu1 }
 0x1c3   :  { %v616_v13 = vmul.f32 %v5273_v39, %v5313_v3  ;;  %v600_v36 = vmul.f32 %v5277_v54, %v5313_v3  ;;  %v612_v39 = vmul.f32 %v5327_v7, %v5281_v62  ;;  %v5345_v54 = vpop.permute.xlu0 %505 }
 0x1c4   :  { %7558 = vst [vmem:[#allocation22_spill] sm:$0xff] %v5345_v54 }
 0x1c5   :  { %837 = vrot.lane.b32.xlu0 %v616_v13, %s4788_s12  ;;  %v5337_v13 = vpop.permute.xlu1 %539 }
 0x1c6   :  { %7557 = vst [vmem:[#allocation21_spill] sm:$0xff] %v5337_v13 }
 0x1cd   :  { %805 = vrot.lane.b32.xlu0 %v600_v36, %s4788_s12  ;;  %v5342_v36 = vld [vmem:[%s7493_s3] sm:$0xff] }
 0x1ce   :  { %1132 = vmatpush.msra.mxu3 %v5342_v36 }
 0x1d2   :  { %v5329_v35 = vpop.f32.mrf.mxu1 }
 0x1d3   :  { %v617_v20 = vmul.f32 %v5279_v59, %v5329_v35  ;;  %v601_v7 = vmul.f32 %v5287_v1, %v5329_v35  ;;  %v611_v59 = vmul.f32 %v5337_v13, %v5275_v53 }
 0x1d5   :  { %829 = vrot.lane.b32.xlu0 %v612_v39, %s4788_s12  ;;  %839 = vrot.lane.b32.xlu2 %v617_v20, %s4788_s12  ;;  %v5353_v39 = vpop.permute.xlu1 %507  ;;  %v5355_v20 = vpop.permute.xlu0 %503 }
 0x1d6   :  { %7559 = vst [vmem:[#allocation23_spill] sm:$0xff] %v5353_v39  ;;  %v595_v33 = vmul.f32 %v5353_v39, %v5275_v53 }
 0x1dd   :  { %807 = vrot.lane.b32.xlu2 %v601_v7, %s4788_s12  ;;  %827 = vrot.lane.b32.xlu0 %v611_v59, %s4788_s12  ;;  %v5360_v10 = vpop.permute.xlu1 %533  ;;  %v5364_v40 = vpop.permute.xlu0 %501 }
 0x1de   :  { %7560 = vst [vmem:[#allocation24_spill] sm:$0xff] %v5360_v10  ;;  %v608_v1 = vmul.f32 %v5360_v10, %v5313_v3  ;;  %v592_v59 = vmul.f32 %v5364_v40, %v5313_v3  ;;  %v598_v10 = vmul.f32 %v5322_v32, %v5296_v9 }
 0x1df   :  { %7561 = vst [vmem:[#allocation25_spill] sm:$0xff] %v5364_v40  ;;  %v5390_v40 = vpop.permute.xlu2 %509 }
 0x1e5   :  { %795 = vrot.lane.b32.xlu0 %v595_v33, %s4788_s12  ;;  %v5376_v39 = vpop.permute.xlu0 %527 }
 0x1e6   :  { %7562 = vst [vmem:[#allocation26_spill] sm:$0xff] %v5376_v39 }
 0x1ed   :  { %821 = vrot.lane.b32.xlu0 %v608_v1, %s4788_s12  ;;  %v605_v1 = vmul.f32 %v5376_v39, %v5285_v0  ;;  %v597_v39 = vmul.f32 %v5317_v43, %v5285_v0 }
 0x1f3   :  { %v5367_v7 = vpop.f32.mrf.mxu1 }
 0x1f4   :  { %v602_v13 = vmul.f32 %v5292_v4, %v5367_v7  ;;  %v618_v33 = vmul.f32 %v5271_v38, %v5367_v7 }
 0x1f5   :  { %789 = vrot.lane.b32.xlu0 %v592_v59, %s4788_s12  ;;  %v5388_v59 = vpop.permute.xlu0 %495 }
 0x1f6   :  { %809 = vrot.lane.b32.xlu1 %v602_v13, %s4788_s12  ;;  %841 = vrot.lane.b32.xlu2 %v618_v33, %s4788_s12  ;;  %7563 = vst [vmem:[#allocation27_spill] sm:$0xff] %v5388_v59  ;;  %v589_v13 = vmul.f32 %v5388_v59, %v5285_v0  ;;  %v596_v33 = vmul.f32 %v5390_v40, %v5281_v62 }
 0x1fd   :  { %815 = vrot.lane.b32.xlu0 %v605_v1, %s4788_s12  ;;  %v5403_v1 = vpop.permute.xlu2 %535 }
 0x1fe   :  { %491 = vrot.lane.b32.xlu1 %v5342_v36, %s4787_s11  ;;  %801 = vrot.lane.b32.xlu2 %v598_v10, %s4788_s12  ;;  %v5401_v10 = vpop.permute.xlu1 %531  ;;  %7565 = vst [vmem:[#allocation29_spill] sm:$0xff] %v5403_v1  ;;  %v609_v4 = vmul.f32 %v5403_v1, %v5329_v35 }
 0x1ff   :  { %7564 = vst [vmem:[#allocation28_spill] sm:$0xff] %v5401_v10  ;;  %v607_v59 = vmul.f32 %v5401_v10, %v5303_v26 }
 0x205   :  { %783 = vrot.lane.b32.xlu0 %v589_v13, %s4788_s12  ;;  %v593_v13 = vmul.f32 %v5355_v20, %v5329_v35 }
 0x206   :  { %797 = vrot.lane.b32.xlu1 %v596_v33, %s4788_s12  ;;  %799 = vrot.lane.b32.xlu2 %v597_v39, %s4788_s12  ;;  %v610_v39 = vmul.f32 %v5325_v63, %v5367_v7  ;;  %v5415_v33 = vpop.permute.xlu2 %529  ;;  %v5423_v10 = vpop.permute.xlu1 %499 }
 0x207   :  { %7566 = vst [vmem:[#allocation30_spill] sm:$0xff] %v5415_v33  ;;  %v606_v1 = vmul.f32 %v5415_v33, %v5296_v9 }
 0x20e   :  { %823 = vrot.lane.b32.xlu1 %v609_v4, %s4788_s12  ;;  %819 = vrot.lane.b32.xlu2 %v607_v59, %s4788_s12  ;;  %v594_v4 = vmul.f32 %v5345_v54, %v5367_v7  ;;  %v5427_v59 = vpop.permute.xlu2 %497 }
 0x20f   :  { %7567 = vst [vmem:[#allocation31_spill] sm:$0xff] %v5427_v59  ;;  %v590_v63 = vmul.f32 %v5427_v59, %v5296_v9 }
 0x216   :  { %791 = vrot.lane.b32.xlu1 %v593_v13, %s4788_s12  ;;  %825 = vrot.lane.b32.xlu2 %v610_v39, %s4788_s12  ;;  %v591_v13 = vmul.f32 %v5423_v10, %v5303_v26  ;;  %v5435_v39 = vpop.permute.xlu1 %525  ;;  %v5437_v33 = vpop.permute.xlu2 %523 }
 0x217   :  { %7568 = vst [vmem:[#allocation32_spill] sm:$0xff] %v5435_v39 }
 0x21e   :  { %817 = vrot.lane.b32.xlu1 %v606_v1, %s4788_s12  ;;  %793 = vrot.lane.b32.xlu2 %v594_v4, %s4788_s12  ;;  %v604_v1 = vmul.f32 %v5435_v39, %v5281_v62  ;;  %v603_v4 = vmul.f32 %v5437_v33, %v5275_v53  ;;  %v5445_v59 = vpop.permute.xlu1 %493 }
 0x226   :  { %785 = vrot.lane.b32.xlu1 %v590_v63, %s4788_s12  ;;  %787 = vrot.lane.b32.xlu2 %v591_v13, %s4788_s12  ;;  %v588_v63 = vmul.f32 %v5445_v59, %v5281_v62  ;;  %v834_v13 = vpop.permute.xlu2 %833 }
 0x22e   :  { %811 = vrot.lane.b32.xlu1 %v603_v4, %s4788_s12  ;;  %813 = vrot.lane.b32.xlu2 %v604_v1, %s4788_s12  ;;  %v832_v4 = vpop.permute.xlu0 %831 }
 0x22f   :  { %v840_v54 = vpop.permute.xlu2 %839 }
 0x236   :  { %679 = vrot.lane.b32.xlu1 %v4974_v21, %s4789_s13  ;;  %781 = vrot.lane.b32.xlu2 %v588_v63, %s4788_s12 }
 0x237   :  { %v808_v1 = vpop.permute.xlu2 %807  ;;  %v838_v39 = vpop.permute.xlu0 %837 }
 0x23e   :  { %637 = vrot.lane.b32.xlu1 %v5164_v12, %s4789_s13  ;;  %649 = vrot.lane.b32.xlu2 %v5086_v52, %s4789_s13  ;;  %v836_v52 = vpop.permute.xlu1 %835 }
 0x23f   :  { %v806_v12 = vpop.permute.xlu0 %805 }
 0x246   :  { %635 = vrot.lane.b32.xlu1 %v5123_v61, %s4789_s13  ;;  %677 = vrot.lane.b32.xlu2 %v4980_v19, %s4789_s13 }
 0x24e   :  { %633 = vrot.lane.b32.xlu1 %v5094_v55, %s4789_s13  ;;  %675 = vrot.lane.b32.xlu2 %v5109_v58, %s4789_s13  ;;  %v830_v55 = vpop.permute.xlu0 %829  ;;  %v804_v58 = vpop.permute.xlu1 %803 }
 0x250   :  { %v842_v21 = vpop.permute.xlu2 %841 }
 0x251   :  { %4180 = vmatpush.xpose.msk.msra.mxu2 %vm401_vm13, %v842_v21 }
 0x255   :  { %4181 = vmatpush.xpose.msk.msra.mxu2 %vm401_vm13, %v840_v54 }
 0x256   :  { %631 = vrot.lane.b32.xlu1 %v5118_v60, %s4789_s13  ;;  %673 = vrot.lane.b32.xlu2 %v5063_v49, %s4789_s13  ;;  %v828_v54 = vpop.permute.xlu0 %827 }
 0x258   :  { %v802_v19 = vpop.permute.xlu2 %801 }
 0x259   :  { %4182 = vmatpush.xpose.msk.msra.mxu2 %vm401_vm13, %v838_v39 }
 0x25d   :  { %4183 = vmatpush.xpose.msk.msra.mxu2 %vm401_vm13, %v836_v52 }
 0x25e   :  { %629 = vrot.lane.b32.xlu1 %v5140_v5, %s4789_s13  ;;  %671 = vrot.lane.b32.xlu2 %v5044_v45, %s4789_s13 }
 0x260   :  { %v800_v61 = vpop.permute.xlu2 %799 }
 0x261   :  { %4184 = vmatpush.xpose.msk.msra.mxu2 %vm401_vm13, %v834_v13 }
 0x265   :  { %4185 = vmatpush.xpose.msk.msra.mxu2 %vm401_vm13, %v832_v4 }
 0x266   :  { %665 = vrot.lane.b32.xlu1 %v5072_v50, %s4789_s13  ;;  %669 = vrot.lane.b32.xlu2 %v5157_v11, %s4789_s13  ;;  %v796_v11 = vpop.permute.xlu0 %795 }
 0x268   :  { %v820_v49 = vpop.permute.xlu2 %819  ;;  %v810_v60 = vpop.permute.xlu1 %809 }
 0x269   :  { %4156 = vmatpush.xpose.msk.msrb.mxu1 %vm401_vm13, %v810_v60  ;;  %4186 = vmatpush.xpose.msk.msra.mxu2 %vm401_vm13, %v830_v55 }
 0x26d   :  { %4157 = vmatpush.xpose.msk.msrb.mxu1 %vm401_vm13, %v808_v1  ;;  %4187 = vmatpush.xpose.msk.msra.mxu2 %vm401_vm13, %v828_v54 }
 0x26e   :  { %663 = vrot.lane.b32.xlu1 %v5193_v17, %s4789_s13  ;;  %667 = vrot.lane.b32.xlu2 %v5099_v56, %s4789_s13  ;;  %v822_v39 = vpop.permute.xlu0 %821 }
 0x270   :  { %v826_v45 = vpop.permute.xlu2 %825  ;;  %v5490_v50 = vpop.permute.xlu1 %491 }
 0x271   :  { %v587_v5 = vmul.f32 %v5490_v50, %v5275_v53  ;;  %4158 = vmatpush.xpose.msk.msrb.mxu1 %vm401_vm13, %v806_v12  ;;  %4188 = vmatpush.xpose.msk.msra.mxu2 %vm401_vm13, %v826_v45 }
 0x273   :  { %779 = vrot.lane.b32.xlu0 %v587_v5, %s4788_s12 }
 0x275   :  { %4159 = vmatpush.xpose.msk.msrb.mxu1 %vm401_vm13, %v804_v58 }
 0x276   :  { %661 = vrot.lane.b32.xlu1 %v5145_v6, %s4789_s13  ;;  %625 = vrot.lane.b32.xlu2 %v5238_v29, %s4789_s13 }
 0x278   :  { %v794_v56 = vpop.permute.xlu2 %793  ;;  %v798_v17 = vpop.permute.xlu1 %797 }
 0x279   :  { %4160 = vmatpush.xpose.msk.msrb.mxu1 %vm401_vm13, %v802_v19 }
 0x27b   :  { %647 = vrot.lane.b32.xlu0 %v5049_v46, %s4789_s13  ;;  %v790_v46 = vpop.permute.xlu0 %789 }
 0x27d   :  { %4161 = vmatpush.xpose.msk.msrb.mxu1 %vm401_vm13, %v800_v61 }
 0x27e   :  { %659 = vrot.lane.b32.xlu1 %v5179_v16, %s4789_s13  ;;  %623 = vrot.lane.b32.xlu2 %v5205_v23, %s4789_s13 }
 0x280   :  { %v788_v6 = vpop.permute.xlu2 %787  ;;  %v824_v63 = vpop.permute.xlu1 %823 }
 0x281   :  { %4162 = vmatpush.xpose.msk.msrb.mxu1 %vm401_vm13, %v798_v17  ;;  %4189 = vmatpush.xpose.msk.msra.mxu2 %vm401_vm13, %v824_v63 }
 0x283   :  { %645 = vrot.lane.b32.xlu0 %v5035_v44, %s4789_s13 }
 0x285   :  { %4163 = vmatpush.xpose.msk.msrb.mxu1 %vm401_vm13, %v796_v11  ;;  %4190 = vmatpush.xpose.msk.msra.mxu2 %vm401_vm13, %v822_v39 }
 0x286   :  { %657 = vrot.lane.b32.xlu1 %v5220_v24, %s4789_s13  ;;  %621 = vrot.lane.b32.xlu2 %v5244_v30, %s4789_s13  ;;  %v816_v24 = vpop.permute.xlu0 %815 }
 0x288   :  { %v814_v16 = vpop.permute.xlu2 %813  ;;  %v792_v23 = vpop.permute.xlu1 %791 }
 0x289   :  { %4164 = vmatpush.xpose.msk.msrb.mxu1 %vm401_vm13, %v794_v56  ;;  %4191 = vmatpush.xpose.msk.msra.mxu2 %vm401_vm13, %v820_v49 }
 0x28b   :  { %643 = vrot.lane.b32.xlu0 %v5133_v25, %s4789_s13 }
 0x28d   :  { %4165 = vmatpush.xpose.msk.msrb.mxu1 %vm401_vm13, %v792_v23 }
 0x28e   :  { %653 = vrot.lane.b32.xlu1 %v5226_v28, %s4789_s13  ;;  %619 = vrot.lane.b32.xlu2 %v5342_v36, %s4789_s13  ;;  %v784_v28 = vpop.permute.xlu0 %783 }
 0x290   :  { %v818_v44 = vpop.permute.xlu1 %817  ;;  %v782_v29 = vpop.permute.xlu2 %781 }
 0x291   :  { %4166 = vmatpush.xpose.msk.msrb.mxu1 %vm401_vm13, %v790_v46  ;;  %4192 = vmatpush.xpose.msk.msra.mxu2 %vm401_vm13, %v818_v44 }
 0x293   :  { %681 = vrot.lane.b32.xlu0 %v4963_v8, %s4789_s13 }
 0x295   :  { %4167 = vmatpush.xpose.msk.msrb.mxu1 %vm401_vm13, %v788_v6  ;;  %4193 = vmatpush.xpose.msk.msra.mxu2 %vm401_vm13, %v816_v24 }
 0x296   :  { %651 = vrot.lane.b32.xlu1 %v5255_v31, %s4789_s13  ;;  %655 = vrot.lane.b32.xlu2 %v5174_v15, %s4789_s13 }
 0x298   :  { %v786_v25 = vpop.permute.xlu1 %785  ;;  %v5543_v8 = vpop.permute.xlu2 %649 }
 0x299   :  { %4168 = vmatpush.xpose.msk.msrb.mxu1 %vm401_vm13, %v786_v25  ;;  %4194 = vmatpush.xpose.msk.msra.mxu2 %vm401_vm13, %v814_v16  ;;  %v730_v63 = vmul.f32 %v5543_v8, %v5367_v7 }
 0x29b   :  { %641 = vrot.lane.b32.xlu0 %v5077_v51, %s4789_s13 }
 0x29d   :  { %4169 = vmatpush.xpose.msk.msrb.mxu1 %vm401_vm13, %v784_v28 }
 0x2a0   :  { %v812_v30 = vpop.permute.xlu1 %811  ;;  %v5552_v15 = vpop.permute.xlu2 %677 }
 0x2a1   :  { %4170 = vmatpush.xpose.msk.msrb.mxu1 %vm401_vm13, %v782_v29  ;;  %4195 = vmatpush.xpose.msk.msra.mxu2 %vm401_vm13, %v812_v30  ;;  %7569 = vst [vmem:[#allocation33_spill] sm:$0xff] %v5552_v15 }
 0x2a3   :  { %639 = vrot.lane.b32.xlu0 %v5058_v47, %s4789_s13  ;;  %v744_v47 = vmul.f32 %v5552_v15, %v5313_v3 }
 0x2a4   :  { %4196 = vmatmul.msk.f32.vlgmr.msra.gmra.mxu2 %vm401_vm13, %v5275_v53 }
 0x2a8   :  { %v5554_v31 = vpop.permute.xlu1 %679  ;;  %v5560_v51 = vpop.permute.xlu2 %675 }
 0x2a9   :  { %7570 = vst [vmem:[#allocation34_spill] sm:$0xff] %v5554_v31  ;;  %v743_v25 = vmul.f32 %v5560_v51, %v5303_v26 }
 0x2ab   :  { %627 = vrot.lane.b32.xlu0 %v5199_v18, %s4789_s13 }
 0x2ac   :  { %4197 = vmatmul.msk.f32.gmra.mxu2 %vm401_vm13, %v5281_v62 }
 0x2b0   :  { %v5562_v36 = vpop.permute.xlu1 %637  ;;  %v5573_v1 = vpop.permute.xlu2 %673 }
 0x2b1   :  { %7571 = vst [vmem:[#allocation35_spill] sm:$0xff] %v5562_v36  ;;  %v724_v13 = vmul.f32 %v5562_v36, %v5281_v62 }
 0x2b3   :  { %v4354_v4 = vpack.i.bf16 %v724_v13, %v744_v47  ;;  %v742_v47 = vmul.f32 %v5573_v1, %v5296_v9 }
 0x2b4   :  { %4198 = vmatmul.msk.f32.gmra.mxu2 %vm401_vm13, %v5285_v0 }
 0x2b5   :  { %4355 = vrot.lane.b32.xlu2 %v4354_v4, %s4789_s13 }
 0x2b8   :  { %v5571_v18 = vpop.permute.xlu1 %635  ;;  %v5579_v12 = vpop.permute.xlu2 %671 }
 0x2b9   :  { %7572 = vst [vmem:[#allocation36_spill] sm:$0xff] %v5571_v18  ;;  %v723_v29 = vmul.f32 %v5571_v18, %v5275_v53 }
 0x2ba   :  { %7574 = vst [vmem:[#allocation38_spill] sm:$0xff] %v5579_v12 }
 0x2bb   :  { %v4359_v28 = vpack.i.bf16 %v723_v29, %v743_v25 }
 0x2bc   :  { %4199 = vmatmul.msk.f32.gmra.mxu2 %vm401_vm13, %v5296_v9 }
 0x2c0   :  { %v5577_v21 = vpop.permute.xlu1 %633  ;;  %v5587_v19 = vpop.permute.xlu2 %669 }
 0x2c1   :  { %7573 = vst [vmem:[#allocation37_spill] sm:$0xff] %v5577_v21  ;;  %v740_v58 = vmul.f32 %v5587_v19, %v5281_v62  ;;  %v722_v30 = vmul.f32 %v5577_v21, %v5367_v7 }
 0x2c2   :  { %7576 = vst [vmem:[#allocation40_spill] sm:$0xff] %v5587_v19 }
 0x2c4   :  { %4200 = vmatmul.msk.f32.gmra.mxu2 %vm401_vm13, %v5303_v26 }
 0x2c8   :  { %v5583_v52 = vpop.permute.xlu1 %631  ;;  %v5649_v13 = vpop.permute.xlu2 %667 }
 0x2c9   :  { %7575 = vst [vmem:[#allocation39_spill] sm:$0xff] %v5583_v52 }
 0x2ca   :  { %7579 = vst [vmem:[#allocation43_spill] sm:$0xff] %v5649_v13 }
 0x2cc   :  { %4201 = vmatmul.msk.f32.gmra.mxu2 %vm401_vm13, %v5313_v3 }
 0x2d0   :  { %v5589_v55 = vpop.permute.xlu1 %629 }
 0x2d1   :  { %7577 = vst [vmem:[#allocation41_spill] sm:$0xff] %v5589_v55  ;;  %v720_v61 = vmul.f32 %v5589_v55, %v5313_v3 }
 0x2d3   :  { %v4374_v49 = vpack.i.bf16 %v720_v61, %v740_v58  ;;  %v4364_v58 = vpack.i.bf16 %v722_v30, %v742_v47  ;;  %v721_v61 = vmul.f32 %v5583_v52, %v5329_v35 }
 0x2d4   :  { %4202 = vmatmul.msk.f32.gmra.mxu2 %vm401_vm13, %v5329_v35 }
 0x2d5   :  { %4375 = vrot.lane.b32.xlu2 %v4374_v49, %s4789_s13  ;;  %v741_v49 = vmul.f32 %v5579_v12, %v5285_v0 }
 0x2dc   :  { %4203 = vmatmul.msk.f32.gmra.mxu2 %vm401_vm13, %v5367_v7 }
 0x2e5   :  { %v780_v60 = vpop.permute.xlu0 %779 }
 0x2e6   :  { %4171 = vmatpush.xpose.msk.msrb.mxu1 %vm401_vm13, %v780_v60  ;;  %v5660_v60 = vpop.permute.xlu1 %665 }
 0x2e7   :  { %7581 = vst [vmem:[#allocation45_spill] sm:$0xff] %v5660_v60 }
 0x2e9   :  { %4172 = vmatmul.msk.f32.vlgmr.msrb.gmra.mxu1 %vm401_vm13, %v5275_v53 }
 0x2ed   :  { %v5603_v54 = vpop.permute.xlu0 %647 }
 0x2ee   :  { %7578 = vst [vmem:[#allocation42_spill] sm:$0xff] %v5603_v54  ;;  %v729_v39 = vmul.f32 %v5603_v54, %v5329_v35 }
 0x2f0   :  { %v4339_v46 = vpack.i.bf16 %v729_v39, %v730_v63  ;;  %v739_v63 = vmul.f32 %v5649_v13, %v5275_v53 }
 0x2f1   :  { %4173 = vmatmul.msk.f32.gmra.mxu1 %vm401_vm13, %v5281_v62 }
 0x2f5   :  { %v5607_v45 = vpop.permute.xlu0 %645 }
 0x2f6   :  { %v728_v11 = vmul.f32 %v5607_v45, %v5313_v3 }
 0x2f9   :  { %4174 = vmatmul.msk.f32.gmra.mxu1 %vm401_vm13, %v5285_v0 }
 0x2fd   :  { %v5611_v5 = vpop.permute.xlu0 %643 }
 0x2fe   :  { %v727_v56 = vmul.f32 %v5611_v5, %v5303_v26 }
 0x300   :  { %v4334_v17 = vpack.i.bf16 %v727_v56, %v728_v11  ;;  %v4369_v11 = vpack.i.bf16 %v721_v61, %v741_v49  ;;  %v5662_v56 = vpop.permute.xlu2 %625 }
 0x301   :  { %4175 = vmatmul.msk.f32.gmra.mxu1 %vm401_vm13, %v5296_v9  ;;  %7582 = vst [vmem:[#allocation46_spill] sm:$0xff] %v5662_v56 }
 0x302   :  { %4335 = vrot.lane.b32.xlu1 %v4334_v17, %s4789_s13 }
 0x305   :  { %v5622_v6 = vpop.permute.xlu0 %681 }
 0x306   :  { %v746_v23 = vmul.f32 %v5622_v6, %v5367_v7 }
 0x309   :  { %4176 = vmatmul.msk.f32.gmra.mxu1 %vm401_vm13, %v5303_v26 }
 0x30a   :  { %4340 = vrot.lane.b32.xlu1 %v4339_v46, %s4789_s13 }
 0x30d   :  { %v5629_v16 = vpop.permute.xlu0 %641 }
 0x30e   :  { %v726_v44 = vmul.f32 %v5629_v16, %v5296_v9 }
 0x310   :  { %v4344_v24 = vpack.i.bf16 %v726_v44, %v746_v23  ;;  %v5671_v23 = vpop.permute.xlu1 %663  ;;  %v5674_v44 = vpop.permute.xlu2 %623 }
 0x311   :  { %4177 = vmatmul.msk.f32.gmra.mxu1 %vm401_vm13, %v5313_v3  ;;  %7584 = vst [vmem:[#allocation48_spill] sm:$0xff] %v5671_v23  ;;  %v717_v29 = vmul.f32 %v5674_v44, %v5285_v0 }
 0x312   :  { %4345 = vrot.lane.b32.xlu0 %v4344_v24, %s4789_s13  ;;  %7585 = vst [vmem:[#allocation49_spill] sm:$0xff] %v5674_v44  ;;  %v737_v24 = vmul.f32 %v5671_v23, %v5329_v35 }
 0x314   :  { %v4389_v25 = vpack.i.bf16 %v717_v29, %v737_v24 }
 0x315   :  { %v5651_v4 = vpop.permute.xlu0 %639 }
 0x316   :  { %7580 = vst [vmem:[#allocation44_spill] sm:$0xff] %v5651_v4 }
 0x319   :  { %4178 = vmatmul.msk.f32.gmra.mxu1 %vm401_vm13, %v5329_v35 }
 0x31a   :  { %4360 = vrot.lane.b32.xlu0 %v4359_v28, %s4789_s13  ;;  %v5681_v28 = vpop.permute.xlu1 %661 }
 0x31d   :  { %v5664_v17 = vpop.permute.xlu0 %627 }
 0x31e   :  { %7583 = vst [vmem:[#allocation47_spill] sm:$0xff] %v5664_v17  ;;  %v719_v39 = vmul.f32 %v5664_v17, %v5303_v26 }
 0x320   :  { %v4379_v46 = vpack.i.bf16 %v719_v39, %v739_v63 }
 0x321   :  { %4179 = vmatmul.msk.f32.gmra.mxu1 %vm401_vm13, %v5367_v7 }
 0x322   :  { %4365 = vrot.lane.b32.xlu0 %v4364_v58, %s4789_s13  ;;  %v5683_v30 = vpop.permute.xlu1 %659 }
 0x327   :  { %v989_v58 = vpop.f32.mrf.mxu2 }
 0x328   :  { %v5689_v39 = vmul.f32 0.35355338, %v989_v58 }
 0x32a   :  { %4370 = vrot.lane.b32.xlu0 %v4369_v11, %s4789_s13  ;;  %v5685_v47 = vpop.permute.xlu1 %657 }
 0x32f   :  { %v992_v49 = vpop.f32.mrf.mxu2 }
 0x330   :  { %v5697_v44 = vmul.f32 0.35355338, %v992_v49 }
 0x332   :  { %4380 = vrot.lane.b32.xlu0 %v4379_v46, %s4789_s13  ;;  %v5687_v61 = vpop.permute.xlu1 %653 }
 0x333   :  { %7586 = vst [vmem:[#allocation50_spill] sm:$0xff] %v5687_v61 }
 0x337   :  { %v995_v29 = vpop.f32.mrf.mxu2 }
 0x338   :  { %v5703_v52 = vmul.f32 0.35355338, %v995_v29  ;;  %v745_v29 = vmul.f32 %v5554_v31, %v5329_v35 }
 0x33a   :  { %4390 = vrot.lane.b32.xlu0 %v4389_v25, %s4789_s13  ;;  %v5695_v24 = vpop.permute.xlu1 %651 }
 0x33f   :  { %v998_v23 = vpop.f32.mrf.mxu2 }
 0x340   :  { %v5711_v19 = vmul.f32 0.35355338, %v998_v23 }
 0x366   :  { %v948_v11 = vpop.f32.mrf.mxu1 }
 0x367   :  { %v5691_v63 = vmul.f32 0.35355338, %v948_v11 }
 0x369   :  { %v1029_v46 = vmax.f32 %v5691_v63, %v5689_v39 }
 0x36b   :  { %1030 = vmax.xlane.f32.xlu1 %v1029_v46 }
 0x36e   :  { %v951_v25 = vpop.f32.mrf.mxu1 }
 0x36f   :  { %v5699_v17 = vmul.f32 0.35355338, %v951_v25  ;;  %v725_v25 = vmul.f32 %v5651_v4, %v5285_v0 }
 0x371   :  { %v1032_v55 = vmax.f32 %v5699_v17, %v5697_v44  ;;  %v4349_v12 = vpack.i.bf16 %v725_v25, %v745_v29 }
 0x373   :  { %1033 = vmax.xlane.f32.xlu2 %v1032_v55 }
 0x374   :  { %v4336_v58 = vpop.permute.xlu1 %4335 }
 0x375   :  { %v4338_v4 = vunpack.i.h.bf16 %v4336_v58 }
 0x376   :  { %v954_v11 = vpop.f32.mrf.mxu1 }
 0x377   :  { %v5705_v21 = vmul.f32 0.35355338, %v954_v11  ;;  %v1001_v11 = vpop.f32.mrf.mxu2 }
 0x378   :  { %v5724_v31 = vmul.f32 0.35355338, %v1001_v11 }
 0x379   :  { %v1035_v46 = vmax.f32 %v5705_v21, %v5703_v52 }
 0x37b   :  { %1036 = vmax.xlane.f32.xlu0 %v1035_v46  ;;  %v4337_v46 = vunpack.i.l.bf16 %v4336_v58 }
 0x37c   :  { %v4341_v13 = vpop.permute.xlu1 %4340 }
 0x37d   :  { %v4342_v49 = vunpack.i.l.bf16 %v4341_v13  ;;  %v4343_v36 = vunpack.i.h.bf16 %v4341_v13 }
 0x37e   :  { %v957_v18 = vpop.f32.mrf.mxu1 }
 0x37f   :  { %v5713_v55 = vmul.f32 0.35355338, %v957_v18  ;;  %1327 = vmatpush.msrb.mxu3 %v4342_v49  ;;  %v738_v18 = vmul.f32 %v5660_v60, %v5367_v7  ;;  %v718_v49 = vmul.f32 %v5662_v56, %v5296_v9  ;;  %v1004_v58 = vpop.f32.mrf.mxu2 }
 0x380   :  { %v5756_v60 = vmul.f32 0.35355338, %v1004_v58  ;;  %v735_v58 = vmul.f32 %v5683_v30, %v5303_v26 }
 0x381   :  { %v1038_v54 = vmax.f32 %v5713_v55, %v5711_v19  ;;  %1328 = vmatpush.msrb.mxu3 %v4343_v36 }
 0x383   :  { %1039 = vmax.xlane.f32.xlu0 %v1038_v54  ;;  %1329 = vmatpush.msrb.mxu3 %v4337_v46  ;;  %v4384_v54 = vpack.i.bf16 %v718_v49, %v738_v18 }
 0x384   :  { %v4346_v15 = vpop.permute.xlu0 %4345  ;;  %4350 = vrot.lane.b32.xlu1 %v4349_v12, %s4789_s13 }
 0x385   :  { %v4347_v13 = vunpack.i.l.bf16 %v4346_v15  ;;  %1330 = vmatpush.msrb.mxu3 %v4338_v4  ;;  %v4348_v23 = vunpack.i.h.bf16 %v4346_v15  ;;  %v5731_v15 = vpop.permute.xlu2 %621 }
 0x386   :  { %v960_v35 = vpop.f32.mrf.mxu1 }
 0x387   :  { %v5726_v36 = vmul.f32 0.35355338, %v960_v35  ;;  %1331 = vmatpush.msrb.mxu3 %v4348_v23  ;;  %1368 = vmatpush.msra.mxu1 %v4347_v13  ;;  %v1007_v4 = vpop.f32.mrf.mxu2 }
 0x388   :  { %v5733_v29 = vmul.f32 0.35355338, %v1007_v4 }
 0x389   :  { %v1041_v12 = vmax.f32 %v5726_v36, %v5724_v31 }
 0x38b   :  { %4385 = vrot.lane.b32.xlu2 %v4384_v54, %s4789_s13  ;;  %1042 = vmax.xlane.f32.xlu0 %v1041_v12  ;;  %v734_v54 = vmul.f32 %v5685_v47, %v5296_v9  ;;  %v7587_v9 = vpack.i.bf16 %v5004_v22, %v4999_v34  ;;  %v731_v22 = vmul.f32 %v5695_v24, %v5275_v53 }
 0x38d   :  { %v5739_v18 = vpop.permute.xlu2 %619 }
 0x38e   :  { %v963_v7 = vpop.f32.mrf.mxu1 }
 0x38f   :  { %v1010_v23 = vpop.f32.mrf.mxu2  ;;  %v5753_v56 = vmul.f32 0.35355338, %v963_v7  ;;  %v736_v7 = vmul.f32 %v5681_v28, %v5313_v3  ;;  %v732_v3 = vmul.f32 %v5687_v61, %v5281_v62 }
 0x390   :  { %v5747_v12 = vmul.f32 0.35355338, %v1010_v23  ;;  %v716_v23 = vmul.f32 %v5731_v15, %v5281_v62 }
 0x395   :  { %v5741_v35 = vpop.permute.xlu2 %655 }
 0x396   :  { %v966_v25 = vpop.f32.mrf.mxu1  ;;  %v733_v4 = vmul.f32 %v5741_v35, %v5285_v0  ;;  %v5764_v0 = vpop.permute.xlu0 %4360 }
 0x397   :  { %v5735_v11 = vmul.f32 0.35355338, %v966_v25 }
 0x399   :  { %v1047_v46 = vmax.f32 %v5735_v11, %v5733_v29 }
 0x39b   :  { %1048 = vmax.xlane.f32.xlu0 %v1047_v46  ;;  %v4404_v46 = vpack.i.bf16 %v733_v4, %v734_v54  ;;  %v4394_v54 = vpack.i.bf16 %v716_v23, %v736_v7  ;;  %v715_v4 = vmul.f32 %v5739_v18, %v5275_v53  ;;  %v7588_v7 = vpack.i.bf16 %v5027_v42, %v5012_v37  ;;  %v295_v37 = vld [vmem:[%s7492_s2] sm:$0xff]  ;;  %v296_v42 = vld [vmem:[%s7492_s2 + $0x8] sm:$0xff] }
 0x39d   :  { %v4399_v34 = vpack.i.bf16 %v715_v4, %v735_v58  ;;  %v4356_v26 = vpop.permute.xlu2 %4355 }
 0x39e   :  { %v969_v13 = vpop.f32.mrf.mxu1 }
 0x39f   :  { %v5743_v49 = vmul.f32 0.35355338, %v969_v13  ;;  %v1044_v13 = vmax.f32 %v5753_v56, %v5756_v60 }
 0x3a1   :  { %v1050_v25 = vmax.f32 %v5743_v49, %v5747_v12 }
 0x3a5   :  { %v5791_v23 = vpop.permute.xlu2 %4375 }
 0x3ae   :  { %1051 = vmax.xlane.f32.xlu1 %v1050_v25  ;;  %v5775_v25 = vpop.permute.xlu0 %4365 }
 0x3af   :  { %4405 = vrot.lane.b32.xlu0 %v4404_v46, %s4789_s13  ;;  %v4409_v46 = vpack.i.bf16 %v731_v22, %v732_v3 }
 0x3b4   :  { %1045 = vmax.xlane.f32.xlu2 %v1044_v13 }
 0x3b6   :  { %v5782_v13 = vpop.permute.xlu0 %4370 }
 0x3b7   :  { %4415 = vrot.lane.b32.xlu0 %v7587_v9, %s4787_s11 }
 0x3be   :  { %v5785_v9 = vpop.permute.xlu0 %4380 }
 0x3c7   :  { %4395 = vrot.lane.b32.xlu1 %v4394_v54, %s4789_s13 }
 0x3cc   :  { %4400 = vrot.lane.b32.xlu2 %v4399_v34, %s4789_s13  ;;  %v5795_v34 = vpop.permute.xlu0 %4390 }
 0x3d4   :  { %4410 = vrot.lane.b32.xlu2 %v4409_v46, %s4789_s13 }
 0x3dc   :  { %4420 = vrot.lane.b32.xlu2 %v7588_v7, %s4787_s11 }
 0x3de   :  { %v1031_v54 = vpop.xlane.xlu1 %1030 }
 0x3df   :  { %v1053_v53 = vsub.f32 %v5691_v63, %v1031_v54  ;;  %v1054_v62 = vsub.f32 %v5689_v39, %v1031_v54 }
 0x3e1   :  { %v1069_v58 = vmul.f32 1.442695, %v1053_v53  ;;  %v1071_v4 = vmul.f32 1.442695, %v1054_v62 }
 0x3e3   :  { %4534 = vpow2.f32 %v1069_v58 }
 0x3e4   :  { %4536 = vpow2.f32 %v1071_v4  ;;  %v299_v4 = vld [vmem:[%s7492_s2 + $0x20] sm:$0xff] }
 0x3e6   :  { %v1034_v22 = vpop.xlane.xlu2 %1033 }
 0x3e7   :  { %v1055_v3 = vsub.f32 %v5699_v17, %v1034_v22  ;;  %v1056_v46 = vsub.f32 %v5697_v44, %v1034_v22  ;;  %v300_v22 = vld [vmem:[%s7492_s2 + $0x28] sm:$0xff] }
 0x3e9   :  { %v4535_v39 = vpop.eup %4534  ;;  %v1073_v63 = vmul.f32 1.442695, %v1055_v3  ;;  %v1075_v7 = vmul.f32 1.442695, %v1056_v46 }
 0x3ea   :  { %v4537_v54 = vpop.eup %4536  ;;  %v5805_v53 = vmul.f32 %v4535_v39, %v295_v37 }
 0x3eb   :  { %4538 = vpow2.f32 %v1073_v63  ;;  %v5807_v62 = vmul.f32 %v4537_v54, %v296_v42 }
 0x3ec   :  { %4540 = vpow2.f32 %v1075_v7  ;;  %1133 = vmatmul.f32.vlgmr.msra.gmra.mxu3 %v5805_v53 }
 0x3ed   :  { %1174 = vmatmul.f32.vlgmr.msra.gmra.mxu0 %v5807_v62 }
 0x3ee   :  { %v1037_v17 = vpop.xlane.xlu0 %1036 }
 0x3ef   :  { %v1057_v44 = vsub.f32 %v5705_v21, %v1037_v17  ;;  %v1058_v58 = vsub.f32 %v5703_v52, %v1037_v17 }
 0x3f1   :  { %v4539_v3 = vpop.eup %4538  ;;  %v1077_v46 = vmul.f32 1.442695, %v1057_v44  ;;  %v1079_v37 = vmul.f32 1.442695, %v1058_v58  ;;  %v303_v58 = vld [vmem:[%s7492_s2 + $0x40] sm:$0xff] }
 0x3f2   :  { %v4541_v42 = vpop.eup %4540  ;;  %v5819_v39 = vmul.f32 %v4539_v3, %v299_v4  ;;  %v304_v4 = vld [vmem:[%s7492_s2 + $0x48] sm:$0xff]  ;;  %v4357_v3 = vunpack.i.l.bf16 %v4356_v26 }
 0x3f3   :  { %4542 = vpow2.f32 %v1077_v46  ;;  %v5821_v63 = vmul.f32 %v4541_v42, %v300_v22  ;;  %v4358_v42 = vunpack.i.h.bf16 %v4356_v26  ;;  %v4368_v26 = vunpack.i.h.bf16 %v5775_v25 }
 0x3f4   :  { %4544 = vpow2.f32 %v1079_v37  ;;  %1136 = vmatmul.f32.gmra.mxu3 %v5819_v39 }
 0x3f5   :  { %1177 = vmatmul.f32.gmra.mxu0 %v5821_v63 }
 0x3f6   :  { %v1040_v21 = vpop.xlane.xlu0 %1039  ;;  %v4351_v52 = vpop.permute.xlu1 %4350 }
 0x3f7   :  { %v1059_v7 = vsub.f32 %v5713_v55, %v1040_v21  ;;  %v1060_v54 = vsub.f32 %v5711_v19, %v1040_v21  ;;  %v4352_v17 = vunpack.i.l.bf16 %v4351_v52  ;;  %v4353_v44 = vunpack.i.h.bf16 %v4351_v52 }
 0x3f8   :  { %v4363_v21 = vunpack.i.h.bf16 %v5764_v0  ;;  %v4362_v52 = vunpack.i.l.bf16 %v5764_v0  ;;  %v307_v0 = vld [vmem:[%s7492_s2 + $0x60] sm:$0xff] }
 0x3f9   :  { %v4543_v22 = vpop.eup %4542  ;;  %v1081_v46 = vmul.f32 1.442695, %v1059_v7  ;;  %v1083_v37 = vmul.f32 1.442695, %v1060_v54  ;;  %1332 = vmatpush.msrb.mxu3 %v4353_v44  ;;  %1369 = vmatpush.msra.mxu1 %v4352_v17  ;;  %v4367_v7 = vunpack.i.l.bf16 %v5775_v25  ;;  %v308_v25 = vld [vmem:[%s7492_s2 + $0x68] sm:$0xff] }
 0x3fa   :  { %v4545_v55 = vpop.eup %4544  ;;  %v5833_v61 = vmul.f32 %v4543_v22, %v303_v58  ;;  %v4373_v58 = vunpack.i.h.bf16 %v5782_v13 }
 0x3fb   :  { %4546 = vpow2.f32 %v1081_v46  ;;  %1333 = vmatpush.msrb.mxu3 %v4358_v42  ;;  %1370 = vmatpush.msra.mxu1 %v4357_v3  ;;  %v5835_v19 = vmul.f32 %v4545_v55, %v304_v4  ;;  %v4372_v4 = vunpack.i.l.bf16 %v5782_v13  ;;  %v4386_v42 = vpop.permute.xlu2 %4385 }
 0x3fc   :  { %4548 = vpow2.f32 %v1083_v37  ;;  %1139 = vmatmul.f32.gmra.mxu3 %v5833_v61  ;;  %v4377_v37 = vunpack.i.l.bf16 %v5791_v23 }
 0x3fd   :  { %1180 = vmatmul.f32.gmra.mxu0 %v5835_v19  ;;  %1334 = vmatpush.msrb.mxu3 %v4363_v21  ;;  %v4383_v21 = vunpack.i.h.bf16 %v5785_v9 }
 0x3fe   :  { %1371 = vmatpush.msra.mxu1 %v4362_v52  ;;  %v1043_v54 = vpop.xlane.xlu0 %1042  ;;  %v4382_v52 = vunpack.i.l.bf16 %v5785_v9  ;;  %v312_v9 = vld [vmem:[%s7492_s2 + $0x88] sm:$0xff] }
 0x3ff   :  { %v1061_v17 = vsub.f32 %v5726_v36, %v1043_v54  ;;  %v1062_v44 = vsub.f32 %v5724_v31, %v1043_v54  ;;  %1335 = vmatpush.msrb.mxu3 %v4368_v26  ;;  %v4378_v31 = vunpack.i.h.bf16 %v5791_v23  ;;  %v4388_v23 = vunpack.i.h.bf16 %v4386_v42  ;;  %v311_v54 = vld [vmem:[%s7492_s2 + $0x80] sm:$0xff] }
 0x400   :  { %1372 = vmatpush.msra.mxu1 %v4367_v7  ;;  %v4387_v26 = vunpack.i.l.bf16 %v4386_v42  ;;  %v4393_v7 = vunpack.i.h.bf16 %v5795_v34 }
 0x401   :  { %v4547_v22 = vpop.eup %4546  ;;  %v1085_v3 = vmul.f32 1.442695, %v1061_v17  ;;  %v1087_v46 = vmul.f32 1.442695, %v1062_v44  ;;  %1336 = vmatpush.msrb.mxu3 %v4373_v58  ;;  %v4392_v17 = vunpack.i.l.bf16 %v5795_v34 }
 0x402   :  { %v4549_v36 = vpop.eup %4548  ;;  %1373 = vmatpush.msra.mxu1 %v4372_v4  ;;  %v5855_v55 = vmul.f32 %v4547_v22, %v307_v0 }
 0x403   :  { %4550 = vpow2.f32 %v1085_v3  ;;  %1337 = vmatpush.msrb.mxu3 %v4378_v31  ;;  %v5857_v13 = vmul.f32 %v4549_v36, %v308_v25 }
 0x404   :  { %4552 = vpow2.f32 %v1087_v46  ;;  %1374 = vmatpush.msra.mxu1 %v4377_v37  ;;  %1142 = vmatmul.f32.gmra.mxu3 %v5855_v55 }
 0x405   :  { %1183 = vmatmul.f32.gmra.mxu0 %v5857_v13  ;;  %1338 = vmatpush.msrb.mxu3 %v4383_v21 }
 0x406   :  { %1375 = vmatpush.msra.mxu1 %v4382_v52 }
 0x407   :  { %1339 = vmatpush.msrb.mxu3 %v4388_v23  ;;  %v315_v23 = vld [vmem:[%s7492_s2 + $0xa0] sm:$0xff] }
 0x408   :  { %1376 = vmatpush.msra.mxu1 %v4387_v26 }
 0x409   :  { %v4551_v44 = vpop.eup %4550  ;;  %1340 = vmatpush.msrb.mxu3 %v4393_v7 }
 0x40a   :  { %v4553_v58 = vpop.eup %4552  ;;  %1377 = vmatpush.msra.mxu1 %v4392_v17  ;;  %v5871_v0 = vmul.f32 %v4551_v44, %v311_v54 }
 0x40b   :  { %v5873_v4 = vmul.f32 %v4553_v58, %v312_v9 }
 0x40c   :  { %1145 = vmatmul.f32.gmra.mxu3 %v5871_v0 }
 0x40d   :  { %1186 = vmatmul.f32.gmra.mxu0 %v5873_v4 }
 0x40e   :  { %v1049_v25 = vpop.xlane.xlu0 %1048 }
 0x40f   :  { %v1065_v46 = vsub.f32 %v5735_v11, %v1049_v25  ;;  %v1066_v37 = vsub.f32 %v5733_v29, %v1049_v25  ;;  %v319_v25 = vld [vmem:[%s7492_s2 + $0xc0] sm:$0xff] }
 0x411   :  { %v1093_v42 = vmul.f32 1.442695, %v1065_v46  ;;  %v1095_v21 = vmul.f32 1.442695, %v1066_v37 }
 0x421   :  { %v1052_v52 = vpop.xlane.xlu1 %1051 }
 0x422   :  { %v1067_v11 = vsub.f32 %v5743_v49, %v1052_v52  ;;  %v1068_v29 = vsub.f32 %v5747_v12, %v1052_v52  ;;  %v320_v49 = vld [vmem:[%s7492_s2 + $0xc8] sm:$0xff] }
 0x424   :  { %v1097_v17 = vmul.f32 1.442695, %v1067_v11  ;;  %v1099_v44 = vmul.f32 1.442695, %v1068_v29 }
 0x427   :  { %v1046_v22 = vpop.xlane.xlu2 %1045 }
 0x428   :  { %v1063_v34 = vsub.f32 %v5753_v56, %v1046_v22  ;;  %v1064_v3 = vsub.f32 %v5756_v60, %v1046_v22  ;;  %v316_v56 = vld [vmem:[%s7492_s2 + $0xa8] sm:$0xff] }
 0x42a   :  { %v1089_v31 = vmul.f32 1.442695, %v1063_v34  ;;  %v1091_v36 = vmul.f32 1.442695, %v1064_v3 }
 0x42c   :  { %4554 = vpow2.f32 %v1089_v31  ;;  %v4406_v31 = vpop.permute.xlu0 %4405 }
 0x42d   :  { %4556 = vpow2.f32 %v1091_v36  ;;  %v4408_v11 = vunpack.i.h.bf16 %v4406_v31 }
 0x42e   :  { %4558 = vpow2.f32 %v1093_v42 }
 0x42f   :  { %4560 = vpow2.f32 %v1095_v21  ;;  %v4401_v9 = vpop.permute.xlu2 %4400  ;;  %v4407_v21 = vunpack.i.l.bf16 %v4406_v31  ;;  %v4699_v31 = vld [vmem:[%s7493_s3 + $0x60] sm:$0xff] }
 0x430   :  { %4562 = vpow2.f32 %v1097_v17  ;;  %v4403_v37 = vunpack.i.h.bf16 %v4401_v9  ;;  %v4402_v42 = vunpack.i.l.bf16 %v4401_v9 }
 0x431   :  { %4564 = vpow2.f32 %v1099_v44 }
 0x432   :  { %v4555_v60 = vpop.eup %4554 }
 0x433   :  { %v4557_v26 = vpop.eup %4556  ;;  %v1111_v7 = vmul.f32 %v4555_v60, %v315_v23 }
 0x434   :  { %v1112_v54 = vmul.f32 %v4557_v26, %v316_v56  ;;  %v4559_v58 = vpop.eup %4558  ;;  %v323_v56 = vld [vmem:[%s7492_s2 + $0xe0] sm:$0xff]  ;;  %v324_v26 = vld [vmem:[%s7492_s2 + $0xe8] sm:$0xff] }
 0x435   :  { %1148 = vmatmul.f32.gmra.mxu3 %v1111_v7  ;;  %v4561_v22 = vpop.eup %4560  ;;  %v1113_v46 = vmul.f32 %v4559_v58, %v319_v25 }
 0x436   :  { %1189 = vmatmul.f32.gmra.mxu0 %v1112_v54  ;;  %v1114_v36 = vmul.f32 %v4561_v22, %v320_v49  ;;  %v4563_v52 = vpop.eup %4562  ;;  %v4696_v22 = vld [vmem:[%s7493_s3 + $0x78] sm:$0xff] }
 0x437   :  { %v4411_v23 = vpop.permute.xlu2 %4410  ;;  %v4565_v60 = vpop.eup %4564  ;;  %v1115_v17 = vmul.f32 %v4563_v52, %v323_v56 }
 0x438   :  { %v4412_v29 = vunpack.i.l.bf16 %v4411_v23  ;;  %v1116_v9 = vmul.f32 %v4565_v60, %v324_v26  ;;  %v4413_v44 = vunpack.i.h.bf16 %v4411_v23  ;;  %v4702_v23 = vld [vmem:[%s7493_s3 + $0x48] sm:$0xff]  ;;  %v4703_v60 = vld [vmem:[%s7493_s3 + $0x40] sm:$0xff] }
 0x439   :  { %v4396_v34 = vpop.permute.xlu1 %4395 }
 0x43a   :  { %v4397_v12 = vunpack.i.l.bf16 %v4396_v34  ;;  %v4398_v3 = vunpack.i.h.bf16 %v4396_v34  ;;  %v4697_v34 = vld [vmem:[%s7493_s3 + $0x70] sm:$0xff] }
 0x43c   :  { %1341 = vmatpush.msrb.mxu3 %v4398_v3  ;;  %1378 = vmatpush.msra.mxu1 %v4397_v12  ;;  %v4698_v12 = vld [vmem:[%s7493_s3 + $0x68] sm:$0xff] }
 0x43d   :  { %1151 = vmatmul.f32.gmra.mxu3 %v1113_v46 }
 0x43e   :  { %1192 = vmatmul.f32.gmra.mxu0 %v1114_v36  ;;  %1342 = vmatpush.msrb.mxu3 %v4403_v37  ;;  %v4700_v37 = vld [vmem:[%s7493_s3 + $0x58] sm:$0xff] }
 0x43f   :  { %1379 = vmatpush.msra.mxu1 %v4402_v42  ;;  %v4701_v42 = vld [vmem:[%s7493_s3 + $0x50] sm:$0xff] }
 0x441   :  { %1380 = vmatpush.msra.mxu1 %v4407_v21 }
 0x443   :  { %1381 = vmatpush.msra.mxu1 %v4408_v11 }
 0x445   :  { %1382 = vmatpush.msra.mxu1 %v4412_v29  ;;  %1154 = vmatmul.f32.gmra.mxu3 %v1115_v17 }
 0x446   :  { %1195 = vmatmul.f32.gmra.mxu0 %v1116_v9 }
 0x447   :  { %1383 = vmatpush.msra.mxu1 %v4413_v44  ;;  %v4705_v44 = vld [vmem:[%s7493_s3 + $0x30] sm:$0xff] }
 0x448   :  { %1384 = vmatmul.f32.vlgmr.msra.gmra.mxu1 %v5807_v62 }
 0x44d   :  { %1343 = vmatmul.f32.vlgmr.msrb.gmra.mxu3 %v5805_v53 }
 0x450   :  { %1387 = vmatmul.f32.gmra.mxu1 %v5821_v63  ;;  %v4416_v63 = vpop.permute.xlu0 %4415 }
 0x455   :  { %1346 = vmatmul.f32.gmra.mxu3 %v5819_v39 }
 0x458   :  { %1390 = vmatmul.f32.gmra.mxu1 %v5835_v19  ;;  %v4417_v19 = vunpack.i.l.bf16 %v4416_v63 }
 0x45a   :  { %1581 = vmatpush.msrb.mxu2 %v4417_v19 }
 0x45d   :  { %1349 = vmatmul.f32.gmra.mxu3 %v5833_v61  ;;  %v4418_v61 = vunpack.i.h.bf16 %v4416_v63  ;;  %v4706_v63 = vld [vmem:[%s7493_s3 + $0x28] sm:$0xff] }
 0x45f   :  { %1582 = vmatpush.msrb.mxu2 %v4418_v61  ;;  %v4707_v61 = vld [vmem:[%s7493_s3 + $0x20] sm:$0xff] }
 0x460   :  { %1393 = vmatmul.f32.gmra.mxu1 %v5857_v13 }
 0x465   :  { %1352 = vmatmul.f32.gmra.mxu3 %v5855_v55  ;;  %v4421_v55 = vpop.permute.xlu2 %4420 }
 0x466   :  { %v4422_v25 = vunpack.i.l.bf16 %v4421_v55 }
 0x468   :  { %1396 = vmatmul.f32.gmra.mxu1 %v5873_v4  ;;  %1583 = vmatpush.msrb.mxu2 %v4422_v25 }
 0x46a   :  { %v1175_v13 = vpop.f32.mrf.mxu0 }
 0x46d   :  { %1355 = vmatmul.f32.gmra.mxu3 %v5871_v0 }
 0x46f   :  { %v1134_v53 = vpop.f32.mrf.mxu3 }
 0x470   :  { %1399 = vmatmul.f32.gmra.mxu1 %v1112_v54  ;;  %v5913_v54 = vadd.f32 %v1175_v13, %v1134_v53 }
 0x472   :  { %v1178_v4 = vpop.f32.mrf.mxu0  ;;  %4566 = vrcp.f32 %v5913_v54  ;;  %v1420_v25 = vand.u32 2147483648, %v5913_v54  ;;  %vm1414_vm2 = vweird.f32 %v5913_v54 }
 0x475   :  { %1358 = vmatmul.f32.gmra.mxu3 %v1111_v7  ;;  %v4423_v7 = vunpack.i.h.bf16 %v4421_v55 }
 0x477   :  { %v1137_v62 = vpop.f32.mrf.mxu3  ;;  %1584 = vmatpush.msrb.mxu2 %v4423_v7  ;;  %v4708_v7 = vld [vmem:[%s7493_s3 + $0x18] sm:$0xff] }
 0x478   :  { %1402 = vmatmul.f32.gmra.mxu1 %v1114_v36  ;;  %v4567_v36 = vpop.eup %4566 }
 0x479   :  { %2436 = vmatpush.msra.mxu2 %v4696_v22  ;;  %v1410_v21 = vmul.f32 %v4567_v36, %v5913_v54  ;;  %vm1415_vm1 = vweird.f32 %v4567_v36 }
 0x47a   :  { %v1181_v3 = vpop.f32.mrf.mxu0  ;;  %vm1416_vm3 = vmor %vm1414_vm2, %vm1415_vm1 }
 0x47b   :  { %2437 = vmatpush.msra.mxu2 %v4697_v34  ;;  %v1411_v11 = vsub.f32 1.0, %v1410_v21  ;;  %v1418_v34 = vand.u32 2147483647, %v5913_v54  ;;  %v1421_v21 = vor.u32 1.1754944e-38, %v1420_v25  ;;  %v4710_v54 = vld [vmem:[%s7493_s3 + $0x8] sm:$0xff] }
 0x47d   :  { %1361 = vmatmul.f32.gmra.mxu3 %v1113_v46  ;;  %2438 = vmatpush.msra.mxu2 %v4698_v12  ;;  %v5927_v46 = vadd.f32 %v1178_v4, %v1137_v62  ;;  %v1412_v62 = vmul.f32 %v4567_v36, %v1411_v11  ;;  %v4709_v12 = vld [vmem:[%s7493_s3 + $0x10] sm:$0xff]  ;;  %vm1419_vm4 = vcmp.eq.f32.partialorder %v1418_v34, 8.507059e+37 }
 0x47f   :  { %v1140_v39 = vpop.f32.mrf.mxu3  ;;  %2439 = vmatpush.msra.mxu2 %v4699_v31  ;;  %4568 = vrcp.f32 %v5927_v46  ;;  %v1413_v55 = vadd.f32 %v4567_v36, %v1412_v62  ;;  %vm1429_vm6 = vweird.f32 %v5927_v46 }
 0x480   :  { %1405 = vmatmul.f32.gmra.mxu1 %v1116_v9  ;;  %v5945_v56 = vadd.f32 %v1181_v3, %v1140_v39 }
 0x481   :  { %2440 = vmatpush.msra.mxu2 %v4700_v37  ;;  %v1417_v31 = vsel %vm1416_vm3, %v4567_v36, %v1413_v55 }
 0x482   :  { %v1184_v26 = vpop.f32.mrf.mxu0  ;;  %4570 = vrcp.f32 %v5945_v56  ;;  %v1422_v11 = vsel %vm1419_vm4, %v1421_v21, %v1417_v31  ;;  %vm1444_vm10 = vweird.f32 %v5945_v56 }
 0x483   :  { %2441 = vmatpush.msra.mxu2 %v4701_v42 }
 0x485   :  { %1364 = vmatmul.f32.gmra.mxu3 %v1115_v17  ;;  %2442 = vmatpush.msra.mxu2 %v4702_v23  ;;  %v5950_v29 = vpop.eup %4568  ;;  %v4704_v17 = vld [vmem:[%s7493_s3 + $0x38] sm:$0xff] }
 0x486   :  { %v1425_v53 = vmul.f32 %v5950_v29, %v5927_v46  ;;  %vm1430_vm5 = vweird.f32 %v5950_v29 }
 0x487   :  { %v1143_v58 = vpop.f32.mrf.mxu3  ;;  %2443 = vmatpush.msra.mxu2 %v4703_v60  ;;  %vm1431_vm7 = vmor %vm1429_vm6, %vm1430_vm5 }
 0x488   :  { %v5966_v19 = vadd.f32 %v1184_v26, %v1143_v58  ;;  %v1426_v13 = vsub.f32 1.0, %v1425_v53  ;;  %v5971_v4 = vpop.eup %4570  ;;  %v4711_v26 = vld [vmem:[%s7493_s3] sm:$0xff] }
 0x489   :  { %2444 = vmatpush.msra.mxu2 %v4704_v17  ;;  %v1440_v3 = vmul.f32 %v5971_v4, %v5945_v56  ;;  %vm1445_vm9 = vweird.f32 %v5971_v4 }
 0x48a   :  { %v1187_v22 = vpop.f32.mrf.mxu0  ;;  %4572 = vrcp.f32 %v5966_v19  ;;  %v1427_v37 = vmul.f32 %v5950_v29, %v1426_v13  ;;  %vm1446_vm11 = vmor %vm1444_vm10, %vm1445_vm9  ;;  %vm1459_vm15 = vweird.f32 %v5966_v19 }
 0x48b   :  { %2445 = vmatpush.msra.mxu2 %v4705_v44  ;;  %v1441_v36 = vsub.f32 1.0, %v1440_v3 }
 0x48c   :  { %v1428_v44 = vadd.f32 %v5950_v29, %v1427_v37 }
 0x48d   :  { %2446 = vmatpush.msra.mxu2 %v4706_v63  ;;  %v1442_v55 = vmul.f32 %v5971_v4, %v1441_v36 }
 0x48e   :  { %v1432_v13 = vsel %vm1431_vm7, %v5950_v29, %v1428_v44  ;;  %v1448_v29 = vand.u32 2147483647, %v5945_v56 }
 0x48f   :  { %v5911_v0 = vpop.f32.mrf.mxu3  ;;  %2447 = vmatpush.msra.mxu2 %v4707_v61  ;;  %v1443_v31 = vadd.f32 %v5971_v4, %v1442_v55 }
 0x490   :  { %v5990_v60 = vadd.f32 %v1187_v22, %v5911_v0  ;;  %v5997_v53 = vpop.eup %4572  ;;  %v1433_v0 = vand.u32 2147483647, %v5927_v46  ;;  %vm1449_vm12 = vcmp.eq.f32.partialorder %v1448_v29, 8.507059e+37 }
 0x491   :  { %2448 = vmatpush.msra.mxu2 %v4708_v7  ;;  %v1455_v61 = vmul.f32 %v5997_v53, %v5966_v19  ;;  %v1447_v21 = vsel %vm1446_vm11, %v5971_v4, %v1443_v31  ;;  %vm1460_vm14 = vweird.f32 %v5997_v53  ;;  %v1465_v4 = vand.u32 2147483648, %v5966_v19 }
 0x492   :  { %4574 = vrcp.f32 %v5990_v60  ;;  %vm1434_vm8 = vcmp.eq.f32.partialorder %v1433_v0, 8.507059e+37  ;;  %vm1461_vm0 = vmor %vm1459_vm15, %vm1460_vm14  ;;  %vm1474_vm3 = vweird.f32 %v5990_v60 }
 0x493   :  { %2449 = vmatpush.msra.mxu2 %v4709_v12 }
 0x495   :  { %2450 = vmatpush.msra.mxu2 %v4710_v54 }
 0x497   :  { %2451 = vmatpush.msra.mxu2 %v4711_v26 }
 0x498   :  { %v4575_v37 = vpop.eup %4574 }
 0x499   :  { %vm1475_vm2 = vweird.f32 %v4575_v37 }
 0x49a   :  { %vm1476_vm4 = vmor %vm1474_vm3, %vm1475_vm2 }
 0x4b3   :  { %v1190_v62 = vpop.f32.mrf.mxu0 }
 0x4b8   :  { %v5922_v49 = vpop.f32.mrf.mxu3 }
 0x4b9   :  { %v6009_v34 = vadd.f32 %v1190_v62, %v5922_v49  ;;  %v1470_v49 = vmul.f32 %v4575_v37, %v5990_v60 }
 0x4bb   :  { %4576 = vrcp.f32 %v6009_v34  ;;  %vm1489_vm7 = vweird.f32 %v6009_v34 }
 0x4c0   :  { %v5940_v52 = vpop.f32.mrf.mxu3 }
 0x4c1   :  { %v4577_v0 = vpop.eup %4576 }
 0x4c2   :  { %vm1490_vm6 = vweird.f32 %v4577_v0 }
 0x4c5   :  { %v1385_v9 = vpop.f32.mrf.mxu1 }
 0x4c8   :  { %v5961_v39 = vpop.f32.mrf.mxu3 }
 0x4cd   :  { %v1388_v58 = vpop.f32.mrf.mxu1 }
 0x4d0   :  { %v1344_v42 = vpop.f32.mrf.mxu3 }
 0x4d1   :  { %v1386_v23 = vadd.f32 %v1385_v9, %v1344_v42  ;;  %v1435_v9 = vand.u32 2147483648, %v5927_v46  ;;  %v1456_v46 = vsub.f32 1.0, %v1455_v61  ;;  %v1450_v42 = vand.u32 2147483648, %v5945_v56 }
 0x4d2   :  { %v1471_v56 = vsub.f32 1.0, %v1470_v49  ;;  %v1480_v49 = vand.u32 2147483648, %v5990_v60 }
 0x4d3   :  { %v1423_v17 = vmul.f32 %v1422_v11, %v1386_v23  ;;  %v1436_v7 = vor.u32 1.1754944e-38, %v1435_v9  ;;  %v1457_v54 = vmul.f32 %v5997_v53, %v1456_v46  ;;  %v1451_v26 = vor.u32 1.1754944e-38, %v1450_v42 }
 0x4d5   :  { %4204 = vmatmul.msk.f32.vlgmr.msrb.gmra.mxu2 %vm401_vm13, %v1423_v17  ;;  %v1391_v63 = vpop.f32.mrf.mxu1  ;;  %v1437_v12 = vsel %vm1434_vm8, %v1436_v7, %v1432_v13  ;;  %v1452_v44 = vsel %vm1449_vm12, %v1451_v26, %v1447_v21  ;;  %v1458_v62 = vadd.f32 %v5997_v53, %v1457_v54  ;;  %v1472_v13 = vmul.f32 %v4575_v37, %v1471_v56  ;;  %vm1491_vm8 = vmor %vm1489_vm7, %vm1490_vm6 }
 0x4d7   :  { %v1462_v61 = vsel %vm1461_vm0, %v5997_v53, %v1458_v62  ;;  %v1478_v53 = vand.u32 2147483647, %v5990_v60  ;;  %v1495_v60 = vand.u32 2147483648, %v6009_v34 }
 0x4d8   :  { %v1347_v25 = vpop.f32.mrf.mxu3 }
 0x4d9   :  { %v1389_v22 = vadd.f32 %v1388_v58, %v1347_v25  ;;  %v1193_v58 = vpop.f32.mrf.mxu0  ;;  %v1466_v25 = vor.u32 1.1754944e-38, %v1465_v4  ;;  %vm1479_vm5 = vcmp.eq.f32.partialorder %v1478_v53, 8.507059e+37 }
 0x4da   :  { %v6022_v17 = vadd.f32 %v1193_v58, %v5940_v52  ;;  %v1485_v52 = vmul.f32 %v4577_v0, %v6009_v34 }
 0x4db   :  { %v1438_v3 = vmul.f32 %v1437_v12, %v1389_v22 }
 0x4dc   :  { %4578 = vrcp.f32 %v6022_v17  ;;  %v1486_v42 = vsub.f32 1.0, %v1485_v52  ;;  %vm1504_vm11 = vweird.f32 %v6022_v17 }
 0x4dd   :  { %4205 = vmatmul.msk.f32.gmra.mxu2 %vm401_vm13, %v1438_v3  ;;  %v1394_v23 = vpop.f32.mrf.mxu1 }
 0x4de   :  { %v1487_v21 = vmul.f32 %v4577_v0, %v1486_v42 }
 0x4e0   :  { %v1350_v11 = vpop.f32.mrf.mxu3 }
 0x4e1   :  { %v1392_v36 = vadd.f32 %v1391_v63, %v1350_v11  ;;  %v1463_v63 = vand.u32 2147483647, %v5966_v19  ;;  %v1196_v7 = vpop.f32.mrf.mxu0  ;;  %v1473_v19 = vadd.f32 %v4575_v37, %v1472_v13  ;;  %v1496_v13 = vor.u32 1.1754944e-38, %v1495_v60 }
 0x4e2   :  { %v6034_v12 = vadd.f32 %v1196_v7, %v5961_v39  ;;  %v4579_v29 = vpop.eup %4578 }
 0x4e3   :  { %v1453_v9 = vmul.f32 %v1452_v44, %v1392_v36  ;;  %vm1464_vm1 = vcmp.eq.f32.partialorder %v1463_v63, 8.507059e+37  ;;  %v1500_v39 = vmul.f32 %v4579_v29, %v6022_v17  ;;  %v1477_v58 = vsel %vm1476_vm4, %v4575_v37, %v1473_v19 }
 0x4e4   :  { %v1467_v3 = vsel %vm1464_vm1, %v1466_v25, %v1462_v61  ;;  %4580 = vrcp.f32 %v6034_v12  ;;  %v1488_v44 = vadd.f32 %v4577_v0, %v1487_v21  ;;  %v1493_v37 = vand.u32 2147483647, %v6009_v34 }
 0x4e5   :  { %4206 = vmatmul.msk.f32.gmra.mxu2 %vm401_vm13, %v1453_v9  ;;  %v1397_v46 = vpop.f32.mrf.mxu1  ;;  %v1501_v56 = vsub.f32 1.0, %v1500_v39  ;;  %vm1505_vm10 = vweird.f32 %v4579_v29  ;;  %v1508_v34 = vand.u32 2147483647, %v6022_v17  ;;  %vm1519_vm0 = vweird.f32 %v6034_v12 }
 0x4e6   :  { %v1492_v63 = vsel %vm1491_vm8, %v4577_v0, %v1488_v44  ;;  %vm1494_vm9 = vcmp.eq.f32.partialorder %v1493_v37, 8.507059e+37  ;;  %vm1506_vm12 = vmor %vm1504_vm11, %vm1505_vm10 }
 0x4e7   :  { %v1502_v52 = vmul.f32 %v4579_v29, %v1501_v56  ;;  %v1497_v25 = vsel %vm1494_vm9, %v1496_v13, %v1492_v63  ;;  %vm1509_vm14 = vcmp.eq.f32.partialorder %v1508_v34, 8.507059e+37 }
 0x4e8   :  { %v1353_v55 = vpop.f32.mrf.mxu3 }
 0x4e9   :  { %v1395_v22 = vadd.f32 %v1394_v23, %v1353_v55  ;;  %v1481_v23 = vor.u32 1.1754944e-38, %v1480_v49 }
 0x4ea   :  { %v4581_v9 = vpop.eup %4580 }
 0x4eb   :  { %v1468_v31 = vmul.f32 %v1467_v3, %v1395_v22  ;;  %v1482_v26 = vsel %vm1479_vm5, %v1481_v23, %v1477_v58  ;;  %v1515_v4 = vmul.f32 %v4581_v9, %v6034_v12  ;;  %v1503_v22 = vadd.f32 %v4579_v29, %v1502_v52 }
 0x4ec   :  { %v1510_v3 = vand.u32 2147483648, %v6022_v17  ;;  %vm1520_vm15 = vweird.f32 %v4581_v9  ;;  %v1523_v17 = vand.u32 2147483647, %v6034_v12 }
 0x4ed   :  { %4207 = vmatmul.msk.f32.gmra.mxu2 %vm401_vm13, %v1468_v31  ;;  %v1400_v62 = vpop.f32.mrf.mxu1  ;;  %v1507_v0 = vsel %vm1506_vm12, %v4579_v29, %v1503_v22  ;;  %vm1521_vm1 = vmor %vm1519_vm0, %vm1520_vm15 }
 0x4ee   :  { %v1511_v49 = vor.u32 1.1754944e-38, %v1510_v3  ;;  %vm1524_vm2 = vcmp.eq.f32.partialorder %v1523_v17, 8.507059e+37 }
 0x4f0   :  { %v1356_v54 = vpop.f32.mrf.mxu3  ;;  %v1512_v39 = vsel %vm1509_vm14, %v1511_v49, %v1507_v0  ;;  %v7589_v0 = vld [vmem:[#allocation8_spill] sm:$0xff] }
 0x4f1   :  { %v1398_v11 = vadd.f32 %v1397_v46, %v1356_v54  ;;  %v1516_v46 = vsub.f32 1.0, %v1515_v4  ;;  %v1525_v54 = vand.u32 2147483648, %v6034_v12 }
 0x4f3   :  { %v1483_v36 = vmul.f32 %v1482_v26, %v1398_v11  ;;  %v1517_v19 = vmul.f32 %v4581_v9, %v1516_v46  ;;  %v1526_v26 = vor.u32 1.1754944e-38, %v1525_v54 }
 0x4f5   :  { %4208 = vmatmul.msk.f32.gmra.mxu2 %vm401_vm13, %v1483_v36  ;;  %v1403_v31 = vpop.f32.mrf.mxu1  ;;  %v1518_v21 = vadd.f32 %v4581_v9, %v1517_v19 }
 0x4f7   :  { %v1522_v23 = vsel %vm1521_vm1, %v4581_v9, %v1518_v21 }
 0x4f8   :  { %v1359_v61 = vpop.f32.mrf.mxu3  ;;  %v1527_v44 = vsel %vm1524_vm2, %v1526_v26, %v1522_v23 }
 0x4f9   :  { %v1401_v55 = vadd.f32 %v1400_v62, %v1359_v61 }
 0x4fb   :  { %v1498_v7 = vmul.f32 %v1497_v25, %v1401_v55 }
 0x4fd   :  { %4209 = vmatmul.msk.f32.gmra.mxu2 %vm401_vm13, %v1498_v7  ;;  %v1406_v29 = vpop.f32.mrf.mxu1 }
 0x500   :  { %v1362_v42 = vpop.f32.mrf.mxu3 }
 0x501   :  { %v1404_v53 = vadd.f32 %v1403_v31, %v1362_v42  ;;  %v7590_v42 = vld [vmem:[#allocation9_spill] sm:$0xff] }
 0x503   :  { %v1513_v58 = vmul.f32 %v1512_v39, %v1404_v53 }
 0x505   :  { %4210 = vmatmul.msk.f32.gmra.mxu2 %vm401_vm13, %v1513_v58 }
 0x508   :  { %v1365_v11 = vpop.f32.mrf.mxu3 }
 0x509   :  { %v1407_v36 = vadd.f32 %v1406_v29, %v1365_v11 }
 0x50b   :  { %v1528_v56 = vmul.f32 %v1527_v44, %v1407_v36 }
 0x50d   :  { %4211 = vmatmul.msk.f32.gmra.mxu2 %vm401_vm13, %v1528_v56 }
 0x558   :  { %v1586_v62 = vpop.f32.mrf.mxu2 }
 0x559   :  { %1618 = vrot.lane.b32.xlu0 %v1586_v62, %s4788_s12 }
 0x560   :  { %v1589_v60 = vpop.f32.mrf.mxu2 }
 0x561   :  { %1620 = vrot.lane.b32.xlu1 %v1589_v60, %s4788_s12  ;;  %v4790_v60 = vmov 32.0  }
 0x562   :  { %4582 = vrcp.f32 %v4790_v60 }
 0x568   :  { %v1592_v37 = vpop.f32.mrf.mxu2 }
 0x569   :  { %1622 = vrot.lane.b32.xlu2 %v1592_v37, %s4788_s12  ;;  %v4583_v37 = vpop.eup %4582 }
 0x56a   :  { %vm1711_vm3 = vweird.f32 %v4583_v37 }
 0x570   :  { %v1595_v12 = vpop.f32.mrf.mxu2 }
 0x571   :  { %1624 = vrot.lane.b32.xlu0 %v1595_v12, %s4788_s12  ;;  %v1707_v12 = vmul.f32 32.0, %v4583_v37 }
 0x578   :  { %v1598_v9 = vpop.f32.mrf.mxu2 }
 0x579   :  { %1626 = vrot.lane.b32.xlu1 %v1598_v9, %s4788_s12  ;;  %v1708_v9 = vsub.f32 1.0, %v1707_v12 }
 0x580   :  { %v1601_v4 = vpop.f32.mrf.mxu2 }
 0x581   :  { %1628 = vrot.lane.b32.xlu2 %v1601_v4, %s4788_s12  ;;  %v1709_v4 = vmul.f32 %v4583_v37, %v1708_v9 }
 0x588   :  { %v1604_v63 = vpop.f32.mrf.mxu2 }
 0x589   :  { %1630 = vrot.lane.b32.xlu1 %v1604_v63, %s4788_s12  ;;  %v1710_v63 = vadd.f32 %v4583_v37, %v1709_v4 }
 0x590   :  { %v1607_v52 = vpop.f32.mrf.mxu2 }
 0x591   :  { %1632 = vrot.lane.b32.xlu0 %v1607_v52, %s4788_s12  ;;  %v6106_v52 = vsel %vm1711_vm3, %v4583_v37, %v1710_v63  ;;  %v375_v63 = vld [vmem:[#allocation4] sm:$0xff] }
 0x5c3   :  { %v1623_v61 = vpop.permute.xlu2 %1622 }
 0x5c4   :  { %v6065_v13 = vadd.f32 %v1623_v61, %v4951_v57 }
 0x5c6   :  { %1662 = vrot.lane.b32.xlu1 %v6065_v13, %s4787_s11 }
 0x5cb   :  { %v1619_v55 = vpop.permute.xlu0 %1618 }
 0x5cc   :  { %v6070_v25 = vadd.f32 %v1619_v55, %v4937_v41 }
 0x5ce   :  { %1658 = vrot.lane.b32.xlu0 %v6070_v25, %s4787_s11 }
 0x5d3   :  { %v1621_v7 = vpop.permute.xlu1 %1620 }
 0x5d4   :  { %v1643_v22 = vadd.f32 %v1621_v7, %v4944_v48 }
 0x5d6   :  { %1660 = vrot.lane.b32.xlu2 %v1643_v22, %s4787_s11 }
 0x5db   :  { %v1629_v46 = vpop.permute.xlu2 %1628 }
 0x5dc   :  { %v6077_v3 = vadd.f32 %v1629_v46, %v4983_v27 }
 0x5de   :  { %1668 = vrot.lane.b32.xlu1 %v6077_v3, %s4787_s11 }
 0x5e3   :  { %v1625_v57 = vpop.permute.xlu0 %1624 }
 0x5e4   :  { %v1645_v34 = vadd.f32 %v1625_v57, %v4956_v2 }
 0x5e6   :  { %1664 = vrot.lane.b32.xlu2 %v1645_v34, %s4787_s11 }
 0x5eb   :  { %v1627_v41 = vpop.permute.xlu1 %1626 }
 0x5ec   :  { %v6084_v31 = vadd.f32 %v1627_v41, %v4967_v14 }
 0x5ee   :  { %1666 = vrot.lane.b32.xlu0 %v6084_v31, %s4787_s11 }
 0x5fb   :  { %v1631_v48 = vpop.permute.xlu1 %1630 }
 0x5fc   :  { %v6089_v19 = vadd.f32 %v1631_v48, %v7589_v0 }
 0x5fe   :  { %1670 = vrot.lane.b32.xlu0 %v6089_v19, %s4787_s11 }
 0x603   :  { %v1633_v27 = vpop.permute.xlu0 %1632 }
 0x604   :  { %v6094_v49 = vadd.f32 %v1633_v27, %v7590_v42 }
 0x606   :  { %1672 = vrot.lane.b32.xlu0 %v6094_v49, %s4787_s11 }
 0x630   :  { %v1661_v2 = vpop.permute.xlu2 %1660 }
 0x631   :  { %v1685_v14 = vsel %vm401_vm13, %v1661_v2, 0.0 }
 0x632   :  { %1686 = vadd.xlane.f32.xlu1 %v1685_v14 }
 0x638   :  { %v1663_v53 = vpop.permute.xlu1 %1662 }
 0x639   :  { %v1688_v39 = vsel %vm401_vm13, %v1663_v53, 0.0 }
 0x63a   :  { %1689 = vadd.xlane.f32.xlu0 %v1688_v39 }
 0x640   :  { %v1659_v58 = vpop.permute.xlu0 %1658  ;;  %v1665_v54 = vpop.permute.xlu2 %1664 }
 0x641   :  { %v1682_v21 = vsel %vm401_vm13, %v1659_v58, 0.0  ;;  %v1691_v17 = vsel %vm401_vm13, %v1665_v54, 0.0 }
 0x642   :  { %1683 = vadd.xlane.f32.xlu2 %v1682_v21 }
 0x64a   :  { %1692 = vadd.xlane.f32.xlu2 %v1691_v17 }
 0x650   :  { %v1669_v23 = vpop.permute.xlu1 %1668 }
 0x651   :  { %v1697_v29 = vsel %vm401_vm13, %v1669_v23, 0.0 }
 0x652   :  { %1698 = vadd.xlane.f32.xlu2 %v1697_v29 }
 0x660   :  { %v1667_v11 = vpop.permute.xlu0 %1666 }
 0x661   :  { %v1694_v26 = vsel %vm401_vm13, %v1667_v11, 0.0 }
 0x662   :  { %1695 = vadd.xlane.f32.xlu1 %v1694_v26 }
 0x670   :  { %v1671_v36 = vpop.permute.xlu0 %1670 }
 0x671   :  { %v1700_v44 = vsel %vm401_vm13, %v1671_v36, 0.0 }
 0x672   :  { %1701 = vadd.xlane.f32.xlu2 %v1700_v44 }
 0x678   :  { %v1673_v56 = vpop.permute.xlu0 %1672 }
 0x679   :  { %v1703_v62 = vsel %vm401_vm13, %v1673_v56, 0.0 }
 0x67a   :  { %1704 = vadd.xlane.f32.xlu2 %v1703_v62 }
 0x6a5   :  { %v1687_v61 = vpop.xlane.xlu1 %1686 }
 0x6a6   :  { %v1714_v55 = vmul.f32 %v6106_v52, %v1687_v61 }
 0x6a8   :  { %v6109_v7 = vsub.f32 %v1643_v22, %v1714_v55 }
 0x6aa   :  { %v1730_v46 = vmul.f32 %v6109_v7, %v6109_v7 }
 0x6ac   :  { %1747 = vrot.lane.b32.xlu0 %v1730_v46, %s4787_s11 }
 0x6ad   :  { %v1690_v57 = vpop.xlane.xlu0 %1689 }
 0x6ae   :  { %v1715_v41 = vmul.f32 %v6106_v52, %v1690_v57 }
 0x6b0   :  { %v6116_v48 = vsub.f32 %v6065_v13, %v1715_v41 }
 0x6b2   :  { %v1731_v0 = vmul.f32 %v6116_v48, %v6116_v48 }
 0x6b4   :  { %1749 = vrot.lane.b32.xlu2 %v1731_v0, %s4787_s11 }
 0x6b5   :  { %v1684_v27 = vpop.xlane.xlu2 %1683 }
 0x6b6   :  { %v1713_v22 = vmul.f32 %v6106_v52, %v1684_v27 }
 0x6b8   :  { %v6123_v42 = vsub.f32 %v6070_v25, %v1713_v22 }
 0x6ba   :  { %v1729_v2 = vmul.f32 %v6123_v42, %v6123_v42 }
 0x6bc   :  { %1745 = vrot.lane.b32.xlu1 %v1729_v2, %s4787_s11 }
 0x6bd   :  { %v1693_v14 = vpop.xlane.xlu2 %1692 }
 0x6be   :  { %v1716_v13 = vmul.f32 %v6106_v52, %v1693_v14 }
 0x6c0   :  { %v6129_v53 = vsub.f32 %v1645_v34, %v1716_v13 }
 0x6c2   :  { %v1732_v39 = vmul.f32 %v6129_v53, %v6129_v53 }
 0x6c4   :  { %1751 = vrot.lane.b32.xlu1 %v1732_v39, %s4787_s11 }
 0x6c5   :  { %v1699_v58 = vpop.xlane.xlu2 %1698 }
 0x6c6   :  { %v1718_v21 = vmul.f32 %v6106_v52, %v1699_v58 }
 0x6c8   :  { %v6136_v25 = vsub.f32 %v6077_v3, %v1718_v21 }
 0x6ca   :  { %v1734_v54 = vmul.f32 %v6136_v25, %v6136_v25 }
 0x6cc   :  { %1755 = vrot.lane.b32.xlu1 %v1734_v54, %s4787_s11 }
 0x6d5   :  { %v1696_v17 = vpop.xlane.xlu1 %1695 }
 0x6d6   :  { %v1717_v34 = vmul.f32 %v6106_v52, %v1696_v17 }
 0x6d8   :  { %v6143_v23 = vsub.f32 %v6084_v31, %v1717_v34 }
 0x6da   :  { %v1733_v29 = vmul.f32 %v6143_v23, %v6143_v23 }
 0x6dc   :  { %1753 = vrot.lane.b32.xlu0 %v1733_v29, %s4787_s11 }
 0x6e5   :  { %v1702_v11 = vpop.xlane.xlu2 %1701 }
 0x6e6   :  { %v1719_v3 = vmul.f32 %v6106_v52, %v1702_v11 }
 0x6e8   :  { %v6150_v26 = vsub.f32 %v6089_v19, %v1719_v3 }
 0x6ea   :  { %v1735_v36 = vmul.f32 %v6150_v26, %v6150_v26 }
 0x6ec   :  { %1757 = vrot.lane.b32.xlu1 %v1735_v36, %s4787_s11 }
 0x6ed   :  { %v1705_v44 = vpop.xlane.xlu2 %1704 }
 0x6ee   :  { %v1720_v31 = vmul.f32 %v6106_v52, %v1705_v44 }
 0x6f0   :  { %v6157_v56 = vsub.f32 %v6094_v49, %v1720_v31  ;;  %v1897_v49 = vperm.slane %v375_v63, 0 }
 0x6f2   :  { %v1736_v62 = vmul.f32 %v6157_v56, %v6157_v56 }
 0x6f4   :  { %1759 = vrot.lane.b32.xlu1 %v1736_v62, %s4787_s11 }
 0x70e   :  { %v1750_v60 = vpop.permute.xlu2 %1749 }
 0x70f   :  { %v1775_v19 = vsel %vm401_vm13, %v1750_v60, 0.0 }
 0x71e   :  { %1776 = vadd.xlane.f32.xlu1 %v1775_v19  ;;  %v1748_v37 = vpop.permute.xlu0 %1747 }
 0x71f   :  { %v1772_v12 = vsel %vm401_vm13, %v1748_v37, 0.0 }
 0x720   :  { %1773 = vadd.xlane.f32.xlu2 %v1772_v12 }
 0x72e   :  { %v1746_v9 = vpop.permute.xlu1 %1745 }
 0x72f   :  { %v1769_v4 = vsel %vm401_vm13, %v1746_v9, 0.0 }
 0x730   :  { %1770 = vadd.xlane.f32.xlu0 %v1769_v4 }
 0x736   :  { %v1752_v61 = vpop.permute.xlu1 %1751 }
 0x737   :  { %v1778_v55 = vsel %vm401_vm13, %v1752_v61, 0.0 }
 0x738   :  { %1779 = vadd.xlane.f32.xlu0 %v1778_v55  ;;  %1910 = vrot.lane.b32.xlu2 %v1897_v49, %s4789_s13 }
 0x73e   :  { %v1756_v41 = vpop.permute.xlu1 %1755 }
 0x73f   :  { %v1784_v14 = vsel %vm401_vm13, %v1756_v41, 0.0 }
 0x74c   :  { %1899 = vrot.lane.b32.xlu0 %v1897_v49, %s4788_s12 }
 0x74e   :  { %v1754_v46 = vpop.permute.xlu0 %1753 }
 0x74f   :  { %v1781_v57 = vsel %vm401_vm13, %v1754_v46, 0.0 }
 0x750   :  { %1782 = vadd.xlane.f32.xlu1 %v1781_v57 }
 0x75e   :  { %v1758_v0 = vpop.permute.xlu1 %1757 }
 0x75f   :  { %v1787_v27 = vsel %vm401_vm13, %v1758_v0, 0.0 }
 0x760   :  { %1788 = vadd.xlane.f32.xlu1 %v1787_v27 }
 0x766   :  { %v1760_v22 = vpop.permute.xlu1 %1759 }
 0x767   :  { %v1790_v2 = vsel %vm401_vm13, %v1760_v22, 0.0 }
 0x768   :  { %1791 = vadd.xlane.f32.xlu2 %v1790_v2 }
 0x776   :  { %1785 = vadd.xlane.f32.xlu0 %v1784_v14 }
 0x791   :  { %v1777_v13 = vpop.xlane.xlu1 %1776 }
 0x792   :  { %v1795_v39 = vmul.f32 %v1777_v13, %v6106_v52 }
 0x793   :  { %v1774_v58 = vpop.xlane.xlu2 %1773 }
 0x794   :  { %v1803_v21 = vadd.f32 1e-05, %v1795_v39  ;;  %v1794_v54 = vmul.f32 %v1774_v58, %v6106_v52 }
 0x796   :  { %4584 = vrsqrt.f32 %v1803_v21  ;;  %v1802_v17 = vadd.f32 1e-05, %v1794_v54  ;;  %vm1835_vm6 = vweird.f32 %v1803_v21 }
 0x798   :  { %4586 = vrsqrt.f32 %v1802_v17  ;;  %vm1825_vm11 = vweird.f32 %v1802_v17 }
 0x79c   :  { %v4585_v34 = vpop.eup %4584 }
 0x79d   :  { %v1830_v3 = vmul.f32 %v4585_v34, %v1803_v21  ;;  %vm1836_vm4 = vweird.f32 %v4585_v34 }
 0x79e   :  { %v4587_v44 = vpop.eup %4586  ;;  %vm1837_vm7 = vmor %vm1835_vm6, %vm1836_vm4 }
 0x79f   :  { %v1831_v31 = vmul.f32 %v4585_v34, %v1830_v3  ;;  %v1820_v60 = vmul.f32 %v4587_v44, %v1802_v17  ;;  %vm1826_vm10 = vweird.f32 %v4587_v44 }
 0x7a0   :  { %vm1827_vm12 = vmor %vm1825_vm11, %vm1826_vm10 }
 0x7a1   :  { %v1832_v12 = vmul.f32 0.5, %v1831_v31  ;;  %v1821_v63 = vmul.f32 %v4587_v44, %v1820_v60  ;;  %v6182_v60 = vpop.permute.xlu2 %1910 }
 0x7a3   :  { %v1771_v29 = vpop.xlane.xlu0 %1770  ;;  %v1833_v61 = vsub.f32 1.5, %v1832_v12  ;;  %v1822_v46 = vmul.f32 0.5, %v1821_v63 }
 0x7a4   :  { %v1793_v11 = vmul.f32 %v1771_v29, %v6106_v52 }
 0x7a5   :  { %v1834_v0 = vmul.f32 %v4585_v34, %v1833_v61  ;;  %v1823_v2 = vsub.f32 1.5, %v1822_v46 }
 0x7a6   :  { %v1801_v36 = vadd.f32 1e-05, %v1793_v11 }
 0x7a7   :  { %v1838_v13 = vsel %vm1837_vm7, %v4585_v34, %v1834_v0  ;;  %v1824_v54 = vmul.f32 %v4587_v44, %v1823_v2 }
 0x7a8   :  { %4588 = vrsqrt.f32 %v1801_v36  ;;  %vm1815_vm8 = vweird.f32 %v1801_v36  ;;  %v1891_v29 = vmul.f32 %v1838_v13, %v6116_v48 }
 0x7ab   :  { %v1780_v62 = vpop.xlane.xlu0 %1779 }
 0x7ac   :  { %v1796_v19 = vmul.f32 %v1780_v62, %v6106_v52  ;;  %v1828_v62 = vsel %vm1827_vm12, %v4587_v44, %v1824_v54 }
 0x7ae   :  { %v4589_v37 = vpop.eup %4588  ;;  %v1804_v9 = vadd.f32 1e-05, %v1796_v19 }
 0x7af   :  { %v1810_v4 = vmul.f32 %v4589_v37, %v1801_v36  ;;  %vm1816_vm5 = vweird.f32 %v4589_v37 }
 0x7b0   :  { %4590 = vrsqrt.f32 %v1804_v9  ;;  %vm1817_vm9 = vmor %vm1815_vm8, %vm1816_vm5  ;;  %vm1845_vm15 = vweird.f32 %v1804_v9 }
 0x7b1   :  { %v1811_v49 = vmul.f32 %v4589_v37, %v1810_v4 }
 0x7b3   :  { %v1812_v55 = vmul.f32 0.5, %v1811_v49 }
 0x7b5   :  { %v1813_v57 = vsub.f32 1.5, %v1812_v55 }
 0x7b6   :  { %v4591_v41 = vpop.eup %4590 }
 0x7b7   :  { %v1814_v27 = vmul.f32 %v4589_v37, %v1813_v57  ;;  %v1840_v22 = vmul.f32 %v4591_v41, %v1804_v9  ;;  %vm1846_vm14 = vweird.f32 %v4591_v41 }
 0x7b8   :  { %vm1847_vm0 = vmor %vm1845_vm15, %vm1846_vm14 }
 0x7b9   :  { %v1841_v14 = vmul.f32 %v4591_v41, %v1840_v22  ;;  %v1818_v39 = vsel %vm1817_vm9, %v4589_v37, %v1814_v27 }
 0x7ba   :  { %v1889_v11 = vmul.f32 %v1818_v39, %v6123_v42  ;;  %v1890_v42 = vmul.f32 %v1828_v62, %v6109_v7 }
 0x7bb   :  { %v1842_v58 = vmul.f32 0.5, %v1841_v14 }
 0x7bd   :  { %v1843_v3 = vsub.f32 1.5, %v1842_v58 }
 0x7be   :  { %v6178_v31 = vpop.permute.xlu0 %1899 }
 0x7bf   :  { %v1904_v21 = vmul.f32 %v6178_v31, %v1891_v29  ;;  %v1902_v36 = vmul.f32 %v6178_v31, %v1889_v11  ;;  %v1844_v48 = vmul.f32 %v4591_v41, %v1843_v3  ;;  %v1903_v37 = vmul.f32 %v6178_v31, %v1890_v42 }
 0x7c1   :  { %v6185_v34 = vadd.f32 %v6182_v60, %v1904_v21  ;;  %v6188_v19 = vadd.f32 %v6182_v60, %v1902_v36  ;;  %v1848_v12 = vsel %vm1847_vm0, %v4591_v41, %v1844_v48  ;;  %v6199_v7 = vadd.f32 %v6182_v60, %v1903_v37  ;;  %v6222_v37 = vld [vmem:[%s7494_s4 + $0x68] sm:$0xff] }
 0x7c2   :  { %v1892_v63 = vmul.f32 %v1848_v12, %v6129_v53  ;;  %v6227_v12 = vld [vmem:[%s7494_s4 + $0x48] sm:$0xff]  ;;  %1973 = vmatpush.msrb.mxu0 %v6222_v37 }
 0x7c3   :  { %v1783_v17 = vpop.xlane.xlu1 %1782  ;;  %1933 = vrot.lane.b32.xlu0 %v6185_v34, %s4787_s11  ;;  %1929 = vrot.lane.b32.xlu1 %v6188_v19, %s4787_s11 }
 0x7c4   :  { %v1797_v44 = vmul.f32 %v1783_v17, %v6106_v52  ;;  %v1905_v49 = vmul.f32 %v6178_v31, %v1892_v63  ;;  %v4504_v63 = vpack.i.bf16 %v6227_v12, %v6222_v37  ;;  %1974 = vmatpush.msrb.mxu0 %v6227_v12  ;;  %v7631_v12 = vld [vmem:[#allocation50_spill] sm:$0xff] }
 0x7c6   :  { %v1805_v4 = vadd.f32 1e-05, %v1797_v44  ;;  %v6205_v46 = vadd.f32 %v6182_v60, %v1905_v49  ;;  %v6235_v49 = vld [vmem:[%s7494_s4 + $0x28] sm:$0xff] }
 0x7c7   :  { %1975 = vmatpush.msrb.mxu0 %v6235_v49 }
 0x7c8   :  { %4592 = vrsqrt.f32 %v1805_v4  ;;  %vm1855_vm2 = vweird.f32 %v1805_v4 }
 0x7cb   :  { %1931 = vrot.lane.b32.xlu1 %v6199_v7, %s4787_s11 }
 0x7ce   :  { %v4593_v61 = vpop.eup %4592 }
 0x7cf   :  { %v1850_v9 = vmul.f32 %v4593_v61, %v1805_v4  ;;  %vm1856_vm1 = vweird.f32 %v4593_v61 }
 0x7d0   :  { %vm1857_vm3 = vmor %vm1855_vm2, %vm1856_vm1 }
 0x7d1   :  { %v1851_v55 = vmul.f32 %v4593_v61, %v1850_v9 }
 0x7d3   :  { %v1852_v57 = vmul.f32 0.5, %v1851_v55  ;;  %1935 = vrot.lane.b32.xlu1 %v6205_v46, %s4787_s11  ;;  %v1789_v27 = vpop.xlane.xlu1 %1788 }
 0x7d4   :  { %v1799_v14 = vmul.f32 %v1789_v27, %v6106_v52 }
 0x7d5   :  { %v1853_v41 = vsub.f32 1.5, %v1852_v57 }
 0x7d6   :  { %v1807_v29 = vadd.f32 1e-05, %v1799_v14  ;;  %v4712_v14 = vld [vmem:[%s7493_s3 + $0xf8] sm:$0xff] }
 0x7d7   :  { %v1854_v53 = vmul.f32 %v4593_v61, %v1853_v41 }
 0x7d8   :  { %vm1875_vm11 = vweird.f32 %v1807_v29 }
 0x7d9   :  { %v1858_v0 = vsel %vm1857_vm3, %v4593_v61, %v1854_v53  ;;  %v6240_v61 = vld [vmem:[%s7494_s4 + $0x8] sm:$0xff] }
 0x7da   :  { %v1893_v22 = vmul.f32 %v1858_v0, %v6143_v23  ;;  %v4509_v9 = vpack.i.bf16 %v6240_v61, %v6235_v49  ;;  %1976 = vmatpush.msrb.mxu0 %v6240_v61 }
 0x7db   :  { %v1792_v2 = vpop.xlane.xlu2 %1791 }
 0x7dc   :  { %v1800_v13 = vmul.f32 %v1792_v2, %v6106_v52  ;;  %v1906_v39 = vmul.f32 %v6178_v31, %v1893_v22  ;;  %2477 = vmatpush.msra.mxu0 %v4712_v14  ;;  %v4725_v14 = vld [vmem:[%s7493_s3 + $0x90] sm:$0xff] }
 0x7de   :  { %v1808_v58 = vadd.f32 1e-05, %v1800_v13  ;;  %v6214_v54 = vadd.f32 %v6182_v60, %v1906_v39 }
 0x7e0   :  { %4594 = vrsqrt.f32 %v1808_v58  ;;  %1937 = vrot.lane.b32.xlu2 %v6214_v54, %s4787_s11  ;;  %vm1885_vm5 = vweird.f32 %v1808_v58 }
 0x7e1   :  { %4596 = vrsqrt.f32 %v1807_v29 }
 0x7e6   :  { %v4595_v11 = vpop.eup %4594 }
 0x7e7   :  { %v1880_v3 = vmul.f32 %v4595_v11, %v1808_v58  ;;  %v4597_v36 = vpop.eup %4596  ;;  %vm1886_vm4 = vweird.f32 %v4595_v11 }
 0x7e8   :  { %v1870_v17 = vmul.f32 %v4597_v36, %v1807_v29  ;;  %vm1887_vm6 = vmor %vm1885_vm5, %vm1886_vm4  ;;  %vm1876_vm8 = vweird.f32 %v4597_v36 }
 0x7e9   :  { %v1881_v23 = vmul.f32 %v4595_v11, %v1880_v3  ;;  %v1786_v21 = vpop.xlane.xlu0 %1785  ;;  %vm1877_vm12 = vmor %vm1875_vm11, %vm1876_vm8 }
 0x7ea   :  { %v1798_v62 = vmul.f32 %v1786_v21, %v6106_v52  ;;  %v1871_v55 = vmul.f32 %v4597_v36, %v1870_v17 }
 0x7eb   :  { %v1882_v48 = vmul.f32 0.5, %v1881_v23  ;;  %v4715_v23 = vld [vmem:[%s7493_s3 + $0xe0] sm:$0xff] }
 0x7ec   :  { %v1806_v42 = vadd.f32 1e-05, %v1798_v62  ;;  %v1872_v27 = vmul.f32 0.5, %v1871_v55 }
 0x7ed   :  { %v1883_v44 = vsub.f32 1.5, %v1882_v48  ;;  %v4716_v48 = vld [vmem:[%s7493_s3 + $0xd8] sm:$0xff] }
 0x7ee   :  { %4598 = vrsqrt.f32 %v1806_v42  ;;  %v1873_v39 = vsub.f32 1.5, %v1872_v27  ;;  %vm1865_vm9 = vweird.f32 %v1806_v42 }
 0x7ef   :  { %v1884_v4 = vmul.f32 %v4595_v11, %v1883_v44 }
 0x7f0   :  { %v1874_v21 = vmul.f32 %v4597_v36, %v1873_v39 }
 0x7f1   :  { %v1888_v57 = vsel %vm1887_vm6, %v4595_v11, %v1884_v4  ;;  %v4714_v11 = vld [vmem:[%s7493_s3 + $0xe8] sm:$0xff]  ;;  %v4717_v4 = vld [vmem:[%s7493_s3 + $0xd0] sm:$0xff] }
 0x7f2   :  { %v1896_v41 = vmul.f32 %v1888_v57, %v6157_v56  ;;  %v4713_v56 = vld [vmem:[%s7493_s3 + $0xf0] sm:$0xff]  ;;  %v1878_v55 = vsel %vm1877_vm12, %v4597_v36, %v1874_v21  ;;  %v4720_v36 = vld [vmem:[%s7493_s3 + $0xb8] sm:$0xff] }
 0x7f3   :  { %2478 = vmatpush.msra.mxu0 %v4713_v56 }
 0x7f4   :  { %v4599_v53 = vpop.eup %4598  ;;  %v1909_v0 = vmul.f32 %v6178_v31, %v1896_v41  ;;  %v1895_v41 = vmul.f32 %v1878_v55, %v6150_v26  ;;  %v4721_v26 = vld [vmem:[%s7493_s3 + $0xb0] sm:$0xff] }
 0x7f5   :  { %v1860_v22 = vmul.f32 %v4599_v53, %v1806_v42  ;;  %2479 = vmatpush.msra.mxu0 %v4714_v11  ;;  %vm1866_vm7 = vweird.f32 %v4599_v53  ;;  %v4718_v42 = vld [vmem:[%s7493_s3 + $0xc8] sm:$0xff] }
 0x7f6   :  { %v6250_v2 = vadd.f32 %v6182_v60, %v1909_v0  ;;  %vm1867_vm10 = vmor %vm1865_vm9, %vm1866_vm7  ;;  %v4722_v0 = vld [vmem:[%s7493_s3 + $0xa8] sm:$0xff] }
 0x7f7   :  { %v1861_v13 = vmul.f32 %v4599_v53, %v1860_v22  ;;  %2480 = vmatpush.msra.mxu0 %v4715_v23  ;;  %v4723_v22 = vld [vmem:[%s7493_s3 + $0xa0] sm:$0xff] }
 0x7f8   :  { %1943 = vrot.lane.b32.xlu0 %v6250_v2, %s4787_s11 }
 0x7f9   :  { %v1862_v58 = vmul.f32 0.5, %v1861_v13  ;;  %2481 = vmatpush.msra.mxu0 %v4716_v48  ;;  %v4727_v13 = vld [vmem:[%s7493_s3 + $0x80] sm:$0xff] }
 0x7fb   :  { %v1863_v3 = vsub.f32 1.5, %v1862_v58  ;;  %2482 = vmatpush.msra.mxu0 %v4717_v4 }
 0x7fd   :  { %v1864_v62 = vmul.f32 %v4599_v53, %v1863_v3  ;;  %2483 = vmatpush.msra.mxu0 %v4718_v42  ;;  %v7591_v42 = vld [vmem:[#allocation18_spill] sm:$0xff] }
 0x7ff   :  { %v1868_v17 = vsel %vm1867_vm10, %v4599_v53, %v1864_v62  ;;  %v1908_v53 = vmul.f32 %v6178_v31, %v1895_v41 }
 0x800   :  { %v1894_v44 = vmul.f32 %v1868_v17, %v6136_v25  ;;  %v4719_v25 = vld [vmem:[%s7493_s3 + $0xc0] sm:$0xff] }
 0x801   :  { %2484 = vmatpush.msra.mxu0 %v4719_v25  ;;  %v6297_v27 = vadd.f32 %v6182_v60, %v1908_v53  ;;  %v7592_v25 = vld [vmem:[#allocation17_spill] sm:$0xff] }
 0x802   :  { %v1907_v57 = vmul.f32 %v6178_v31, %v1894_v44  ;;  %v4724_v31 = vld [vmem:[%s7493_s3 + $0x98] sm:$0xff] }
 0x803   :  { %2485 = vmatpush.msra.mxu0 %v4720_v36 }
 0x804   :  { %v6279_v29 = vadd.f32 %v6182_v60, %v1907_v57  ;;  %v4726_v60 = vld [vmem:[%s7493_s3 + $0x88] sm:$0xff] }
 0x805   :  { %2486 = vmatpush.msra.mxu0 %v4721_v26  ;;  %v7593_v26 = vld [vmem:[#allocation11_spill] sm:$0xff] }
 0x806   :  { %1939 = vrot.lane.b32.xlu1 %v6279_v29, %s4787_s11 }
 0x807   :  { %2487 = vmatpush.msra.mxu0 %v4722_v0 }
 0x809   :  { %2488 = vmatpush.msra.mxu0 %v4723_v22  ;;  %v7594_v22 = vld [vmem:[#allocation10_spill] sm:$0xff] }
 0x80b   :  { %2489 = vmatpush.msra.mxu0 %v4724_v31 }
 0x80d   :  { %2490 = vmatpush.msra.mxu0 %v4725_v14  ;;  %v7595_v14 = vld [vmem:[#allocation14_spill] sm:$0xff] }
 0x80e   :  { %1941 = vrot.lane.b32.xlu1 %v6297_v27, %s4787_s11 }
 0x80f   :  { %2491 = vmatpush.msra.mxu0 %v4726_v60 }
 0x811   :  { %2492 = vmatpush.msra.mxu0 %v4727_v13 }
 0x835   :  { %v1930_v56 = vpop.permute.xlu1 %1929  ;;  %v1934_v58 = vpop.permute.xlu0 %1933 }
 0x836   :  { %4212 = vmatmul.msk.f32.vlgmr.msrb.gmra.mxu0 %vm401_vm13, %v1930_v56  ;;  %v7596_v56 = vld [vmem:[#allocation12_spill] sm:$0xff] }
 0x83a   :  { %v1938_v3 = vpop.permute.xlu2 %1937 }
 0x83d   :  { %v1932_v39 = vpop.permute.xlu1 %1931 }
 0x83e   :  { %4213 = vmatmul.msk.f32.gmra.mxu0 %vm401_vm13, %v1932_v39 }
 0x845   :  { %v1936_v11 = vpop.permute.xlu1 %1935 }
 0x846   :  { %4214 = vmatmul.msk.f32.gmra.mxu0 %vm401_vm13, %v1934_v58 }
 0x84e   :  { %4215 = vmatmul.msk.f32.gmra.mxu0 %vm401_vm13, %v1936_v11  ;;  %v7597_v11 = vld [vmem:[#allocation15_spill] sm:$0xff] }
 0x856   :  { %4216 = vmatmul.msk.f32.gmra.mxu0 %vm401_vm13, %v1938_v3 }
 0x86a   :  { %v1944_v62 = vpop.permute.xlu0 %1943 }
 0x878   :  { %v1940_v23 = vpop.permute.xlu1 %1939 }
 0x879   :  { %4217 = vmatmul.msk.f32.gmra.mxu0 %vm401_vm13, %v1940_v23  ;;  %v7598_v23 = vld [vmem:[#allocation16_spill] sm:$0xff] }
 0x880   :  { %v1942_v21 = vpop.permute.xlu1 %1941 }
 0x881   :  { %4218 = vmatmul.msk.f32.gmra.mxu0 %vm401_vm13, %v1942_v21 }
 0x889   :  { %4219 = vmatmul.msk.f32.gmra.mxu0 %vm401_vm13, %v1944_v62 }
 0x8b3   :  { %v6324_v48 = vpop.f32.mrf.mxu0 }
 0x8bb   :  { %v6326_v17 = vpop.f32.mrf.mxu0 }
 0x8bc   :  { %v2011_v62 = vmul.f32 %v6326_v17, %v5390_v40  ;;  %v7602_v40 = vld [vmem:[#allocation21_spill] sm:$0xff]  ;;  %v2035_v37 = vmul.f32 %v6326_v17, %v5731_v15  ;;  %v305_v15 = vld [vmem:[%s7492_s2 + $0x50] sm:$0xff] }
 0x8c3   :  { %v6328_v44 = vpop.f32.mrf.mxu0 }
 0x8cb   :  { %v6330_v4 = vpop.f32.mrf.mxu0 }
 0x8cc   :  { %v2013_v55 = vmul.f32 %v6330_v4, %v5322_v32  ;;  %v2029_v21 = vmul.f32 %v6330_v4, %v7598_v23  ;;  %v7608_v23 = vld [vmem:[#allocation19_spill] sm:$0xff] }
 0x8ce   :  { %2120 = vrot.lane.b32.xlu2 %v2013_v55, %s4788_s12  ;;  %v2012_v55 = vmul.f32 %v6328_v44, %v5317_v43  ;;  %v2026_v43 = vmul.f32 %v6324_v48, %v7602_v40  ;;  %v2002_v40 = vmul.f32 %v6324_v48, %v5490_v50  ;;  %v7613_v50 = vld [vmem:[#allocation32_spill] sm:$0xff] }
 0x8d3   :  { %v6335_v57 = vpop.f32.mrf.mxu0 }
 0x8d4   :  { %v2014_v41 = vmul.f32 %v6335_v57, %v7591_v42  ;;  %v2030_v36 = vmul.f32 %v6335_v57, %v7592_v25 }
 0x8d6   :  { %2122 = vrot.lane.b32.xlu0 %v2014_v41, %s4788_s12  ;;  %v7600_v41 = vld [vmem:[#allocation20_spill] sm:$0xff] }
 0x8d7   :  { %v2027_v25 = vmul.f32 %v6326_v17, %v7600_v41  ;;  %v7611_v41 = vld [vmem:[#allocation28_spill] sm:$0xff] }
 0x8de   :  { %2154 = vrot.lane.b32.xlu0 %v2030_v36, %s4788_s12  ;;  %v7601_v36 = vld [vmem:[#allocation13_spill] sm:$0xff] }
 0x8f6   :  { %v6343_v53 = vpop.f32.mrf.mxu0 }
 0x8f7   :  { %v2015_v0 = vmul.f32 %v6343_v53, %v7593_v26  ;;  %v2031_v31 = vmul.f32 %v6343_v53, %v7594_v22  ;;  %v2028_v26 = vmul.f32 %v6328_v44, %v7601_v36  ;;  %v2006_v22 = vmul.f32 %v6335_v57, %v5423_v10  ;;  %v7612_v36 = vld [vmem:[#allocation26_spill] sm:$0xff] }
 0x8f9   :  { %2124 = vrot.lane.b32.xlu1 %v2015_v0, %s4788_s12 }
 0x8fe   :  { %v6348_v32 = vpop.f32.mrf.mxu0 }
 0x8ff   :  { %v2016_v60 = vmul.f32 %v6348_v32, %v7595_v14  ;;  %v2032_v39 = vmul.f32 %v6348_v32, %v7596_v56  ;;  %v2008_v0 = vmul.f32 %v6348_v32, %v5355_v20  ;;  %v7606_v20 = vld [vmem:[#allocation24_spill] sm:$0xff] }
 0x900   :  { %v2023_v10 = vmul.f32 %v6343_v53, %v7606_v20 }
 0x901   :  { %2156 = vrot.lane.b32.xlu1 %v2031_v31, %s4788_s12  ;;  %2126 = vrot.lane.b32.xlu2 %v2016_v60, %s4788_s12  ;;  %v7603_v31 = vld [vmem:[#allocation25_spill] sm:$0xff] }
 0x902   :  { %v2007_v14 = vmul.f32 %v6343_v53, %v7603_v31  ;;  %v7604_v60 = vld [vmem:[#allocation29_spill] sm:$0xff]  ;;  %v2018_v31 = vmul.f32 %v6324_v48, %v5437_v33 }
 0x903   :  { %v2024_v56 = vmul.f32 %v6348_v32, %v7604_v60  ;;  %v2019_v60 = vmul.f32 %v6326_v17, %v7613_v50 }
 0x906   :  { %v6356_v13 = vpop.f32.mrf.mxu0 }
 0x907   :  { %v2033_v58 = vmul.f32 %v6356_v13, %v5271_v38  ;;  %v2017_v3 = vmul.f32 %v6356_v13, %v7597_v11  ;;  %v7599_v38 = vld [vmem:[#allocation23_spill] sm:$0xff] }
 0x908   :  { %v2010_v42 = vmul.f32 %v6324_v48, %v7599_v38  ;;  %v7607_v11 = vld [vmem:[#allocation31_spill] sm:$0xff]  ;;  %v7610_v38 = vld [vmem:[#allocation30_spill] sm:$0xff] }
 0x909   :  { %2158 = vrot.lane.b32.xlu2 %v2032_v39, %s4788_s12  ;;  %2160 = vrot.lane.b32.xlu0 %v2033_v58, %s4788_s12  ;;  %v7605_v39 = vld [vmem:[#allocation22_spill] sm:$0xff] }
 0x90a   :  { %2128 = vrot.lane.b32.xlu1 %v2017_v3, %s4788_s12  ;;  %v2009_v58 = vmul.f32 %v6356_v13, %v7605_v39  ;;  %v2005_v3 = vmul.f32 %v6330_v4, %v7607_v11 }
 0x911   :  { %2152 = vrot.lane.b32.xlu2 %v2029_v21, %s4788_s12  ;;  %2116 = vrot.lane.b32.xlu0 %v2011_v62, %s4788_s12  ;;  %v2025_v21 = vmul.f32 %v6356_v13, %v7608_v23  ;;  %v7609_v62 = vld [vmem:[#allocation27_spill] sm:$0xff] }
 0x912   :  { %2118 = vrot.lane.b32.xlu1 %v2012_v55, %s4788_s12  ;;  %v2004_v55 = vmul.f32 %v6328_v44, %v7609_v62 }
 0x919   :  { %2114 = vrot.lane.b32.xlu2 %v2010_v42, %s4788_s12  ;;  %2148 = vrot.lane.b32.xlu0 %v2027_v25, %s4788_s12  ;;  %v2021_v42 = vmul.f32 %v6330_v4, %v7610_v38  ;;  %v2022_v25 = vmul.f32 %v6335_v57, %v7611_v41 }
 0x91a   :  { %2150 = vrot.lane.b32.xlu1 %v2028_v26, %s4788_s12  ;;  %v2020_v26 = vmul.f32 %v6328_v44, %v7612_v36 }
 0x921   :  { %2146 = vrot.lane.b32.xlu2 %v2026_v43, %s4788_s12  ;;  %2110 = vrot.lane.b32.xlu0 %v2008_v0, %s4788_s12  ;;  %v2003_v43 = vmul.f32 %v6326_v17, %v5445_v59  ;;  %v2049_v0 = vmul.f32 %v6356_v13, %v5543_v8 }
 0x922   :  { %2106 = vrot.lane.b32.xlu1 %v2006_v22, %s4788_s12  ;;  %v2065_v22 = vmul.f32 %v6356_v13, %v5622_v6 }
 0x928   :  { %v2121_v59 = vpop.permute.xlu2 %2120 }
 0x929   :  { %2108 = vrot.lane.b32.xlu2 %v2007_v14, %s4788_s12  ;;  %2142 = vrot.lane.b32.xlu0 %v2024_v56, %s4788_s12  ;;  %v4424_v14 = vpack.i.bf16 %v2065_v22, %v2049_v0 }
 0x92a   :  { %2112 = vrot.lane.b32.xlu1 %v2009_v58, %s4788_s12 }
 0x931   :  { %2140 = vrot.lane.b32.xlu2 %v2023_v10, %s4788_s12  ;;  %2104 = vrot.lane.b32.xlu0 %v2005_v3, %s4788_s12 }
 0x932   :  { %2144 = vrot.lane.b32.xlu1 %v2025_v21, %s4788_s12 }
 0x939   :  { %2102 = vrot.lane.b32.xlu2 %v2004_v55, %s4788_s12  ;;  %2136 = vrot.lane.b32.xlu0 %v2021_v42, %s4788_s12 }
 0x93a   :  { %2138 = vrot.lane.b32.xlu1 %v2022_v25, %s4788_s12 }
 0x941   :  { %2134 = vrot.lane.b32.xlu2 %v2020_v26, %s4788_s12  ;;  %2098 = vrot.lane.b32.xlu0 %v2002_v40, %s4788_s12 }
 0x942   :  { %2100 = vrot.lane.b32.xlu1 %v2003_v43, %s4788_s12 }
 0x948   :  { %v2123_v39 = vpop.permute.xlu0 %2122 }
 0x949   :  { %2130 = vrot.lane.b32.xlu2 %v2018_v31, %s4788_s12  ;;  %4425 = vrot.lane.b32.xlu0 %v4424_v14, %s4789_s13 }
 0x94a   :  { %2132 = vrot.lane.b32.xlu1 %v2019_v60, %s4788_s12 }
 0x950   :  { %v2155_v20 = vpop.permute.xlu0 %2154 }
 0x95b   :  { %v2127_v56 = vpop.permute.xlu2 %2126 }
 0x963   :  { %v2159_v58 = vpop.permute.xlu2 %2158 }
 0x96b   :  { %v2125_v8 = vpop.permute.xlu1 %2124  ;;  %v2153_v10 = vpop.permute.xlu2 %2152 }
 0x973   :  { %v2157_v6 = vpop.permute.xlu1 %2156  ;;  %v2115_v23 = vpop.permute.xlu2 %2114 }
 0x97b   :  { %v2161_v11 = vpop.permute.xlu0 %2160  ;;  %v2147_v38 = vpop.permute.xlu2 %2146 }
 0x97c   :  { %v2129_v33 = vpop.permute.xlu1 %2128  ;;  %4244 = vmatpush.xpose.msk.msrb.mxu1 %vm401_vm13, %v2161_v11 }
 0x97d   :  { %4220 = vmatpush.xpose.msk.msra.mxu3 %vm401_vm13, %v2129_v33 }
 0x980   :  { %4245 = vmatpush.xpose.msk.msrb.mxu1 %vm401_vm13, %v2159_v58 }
 0x981   :  { %4221 = vmatpush.xpose.msk.msra.mxu3 %vm401_vm13, %v2127_v56 }
 0x983   :  { %v2117_v3 = vpop.permute.xlu0 %2116  ;;  %v2109_v25 = vpop.permute.xlu2 %2108 }
 0x984   :  { %v2119_v21 = vpop.permute.xlu1 %2118  ;;  %4246 = vmatpush.xpose.msk.msrb.mxu1 %vm401_vm13, %v2157_v6 }
 0x985   :  { %4222 = vmatpush.xpose.msk.msra.mxu3 %vm401_vm13, %v2125_v8 }
 0x988   :  { %4247 = vmatpush.xpose.msk.msrb.mxu1 %vm401_vm13, %v2155_v20 }
 0x989   :  { %4223 = vmatpush.xpose.msk.msra.mxu3 %vm401_vm13, %v2123_v39 }
 0x98b   :  { %v2149_v62 = vpop.permute.xlu0 %2148  ;;  %v2141_v40 = vpop.permute.xlu2 %2140 }
 0x98c   :  { %v2151_v55 = vpop.permute.xlu1 %2150  ;;  %4248 = vmatpush.xpose.msk.msrb.mxu1 %vm401_vm13, %v2153_v10 }
 0x98d   :  { %4224 = vmatpush.xpose.msk.msra.mxu3 %vm401_vm13, %v2121_v59 }
 0x990   :  { %4249 = vmatpush.xpose.msk.msrb.mxu1 %vm401_vm13, %v2151_v55 }
 0x991   :  { %4225 = vmatpush.xpose.msk.msra.mxu3 %vm401_vm13, %v2119_v21 }
 0x993   :  { %v2111_v42 = vpop.permute.xlu0 %2110  ;;  %v2103_v31 = vpop.permute.xlu2 %2102 }
 0x994   :  { %v2107_v41 = vpop.permute.xlu1 %2106  ;;  %4250 = vmatpush.xpose.msk.msrb.mxu1 %vm401_vm13, %v2149_v62 }
 0x995   :  { %4226 = vmatpush.xpose.msk.msra.mxu3 %vm401_vm13, %v2117_v3 }
 0x998   :  { %4251 = vmatpush.xpose.msk.msrb.mxu1 %vm401_vm13, %v2147_v38 }
 0x999   :  { %4227 = vmatpush.xpose.msk.msra.mxu3 %vm401_vm13, %v2115_v23 }
 0x99b   :  { %v2143_v36 = vpop.permute.xlu0 %2142  ;;  %v2135_v59 = vpop.permute.xlu2 %2134 }
 0x99c   :  { %v2113_v26 = vpop.permute.xlu1 %2112 }
 0x99d   :  { %4228 = vmatpush.xpose.msk.msra.mxu3 %vm401_vm13, %v2113_v26 }
 0x9a1   :  { %4229 = vmatpush.xpose.msk.msra.mxu3 %vm401_vm13, %v2111_v42 }
 0x9a3   :  { %v2105_v43 = vpop.permute.xlu0 %2104  ;;  %v2131_v58 = vpop.permute.xlu2 %2130 }
 0x9a4   :  { %v2145_v0 = vpop.permute.xlu1 %2144 }
 0x9a5   :  { %4230 = vmatpush.xpose.msk.msra.mxu3 %vm401_vm13, %v2109_v25  ;;  %4252 = vmatpush.xpose.msk.msrb.mxu1 %vm401_vm13, %v2145_v0 }
 0x9a9   :  { %4231 = vmatpush.xpose.msk.msra.mxu3 %vm401_vm13, %v2107_v41  ;;  %4253 = vmatpush.xpose.msk.msrb.mxu1 %vm401_vm13, %v2143_v36 }
 0x9ab   :  { %v2137_v22 = vpop.permute.xlu0 %2136 }
 0x9ac   :  { %v2139_v14 = vpop.permute.xlu1 %2138 }
 0x9ad   :  { %4232 = vmatpush.xpose.msk.msra.mxu3 %vm401_vm13, %v2105_v43  ;;  %4254 = vmatpush.xpose.msk.msrb.mxu1 %vm401_vm13, %v2141_v40  ;;  %v2046_v40 = vmul.f32 %v6335_v57, %v5611_v5  ;;  %v2062_v43 = vmul.f32 %v6335_v57, %v5560_v51  ;;  %v7615_v51 = vld [vmem:[#allocation44_spill] sm:$0xff] }
 0x9af   :  { %v4439_v0 = vpack.i.bf16 %v2062_v43, %v2046_v40 }
 0x9b1   :  { %4233 = vmatpush.xpose.msk.msra.mxu3 %vm401_vm13, %v2103_v31  ;;  %4255 = vmatpush.xpose.msk.msrb.mxu1 %vm401_vm13, %v2139_v14  ;;  %v2061_v31 = vmul.f32 %v6330_v4, %v5573_v1  ;;  %v7617_v1 = vld [vmem:[#allocation42_spill] sm:$0xff] }
 0x9b3   :  { %v2099_v50 = vpop.permute.xlu0 %2098 }
 0x9b4   :  { %v2101_v60 = vpop.permute.xlu1 %2100 }
 0x9b5   :  { %4234 = vmatpush.xpose.msk.msra.mxu3 %vm401_vm13, %v2101_v60  ;;  %4256 = vmatpush.xpose.msk.msrb.mxu1 %vm401_vm13, %v2137_v22  ;;  %v2045_v22 = vmul.f32 %v6330_v4, %v5629_v16  ;;  %v7614_v60 = vld [vmem:[#allocation33_spill] sm:$0xff] }
 0x9b6   :  { %v2063_v5 = vmul.f32 %v6343_v53, %v7614_v60 }
 0x9b7   :  { %v4444_v14 = vpack.i.bf16 %v2061_v31, %v2045_v22  ;;  %v7623_v31 = vld [vmem:[#allocation37_spill] sm:$0xff] }
 0x9b9   :  { %4235 = vmatpush.xpose.msk.msra.mxu3 %vm401_vm13, %v2099_v50  ;;  %4257 = vmatpush.xpose.msk.msrb.mxu1 %vm401_vm13, %v2135_v59  ;;  %v2047_v50 = vmul.f32 %v6343_v53, %v5607_v45  ;;  %v2044_v59 = vmul.f32 %v6328_v44, %v7615_v51 }
 0x9bb   :  { %v4426_v56 = vpop.permute.xlu0 %4425 }
 0x9bc   :  { %v2133_v39 = vpop.permute.xlu1 %2132  ;;  %4236 = vmatmul.msk.f32.vlgmr.msra.gmra.mxu3 %vm401_vm13, %v6324_v48  ;;  %v4427_v8 = vunpack.i.l.bf16 %v4426_v56  ;;  %v4428_v20 = vunpack.i.h.bf16 %v4426_v56  ;;  %v7616_v56 = vld [vmem:[#allocation38_spill] sm:$0xff] }
 0x9bd   :  { %4258 = vmatpush.xpose.msk.msrb.mxu1 %vm401_vm13, %v2133_v39  ;;  %v2060_v39 = vmul.f32 %v6328_v44, %v7616_v56 }
 0x9be   :  { %2646 = vmatpush.msrb.mxu0 %v4427_v8  ;;  %4306 = vmatpush.msrb.mxu3 %v4427_v8  ;;  %v4434_v8 = vpack.i.bf16 %v2063_v5, %v2047_v50  ;;  %v7624_v50 = vld [vmem:[#allocation45_spill] sm:$0xff]  ;;  %v7625_v5 = vld [vmem:[#allocation39_spill] sm:$0xff] }
 0x9bf   :  { %v4449_v16 = vpack.i.bf16 %v2060_v39, %v2044_v59  ;;  %v2057_v60 = vmul.f32 %v6356_v13, %v7624_v50  ;;  %v2040_v51 = vmul.f32 %v6348_v32, %v7625_v5  ;;  %v7626_v59 = vld [vmem:[#allocation48_spill] sm:$0xff] }
 0x9c0   :  { %v2056_v56 = vmul.f32 %v6348_v32, %v7626_v59  ;;  %v2034_v59 = vmul.f32 %v6324_v48, %v5739_v18 }
 0x9c1   :  { %4259 = vmatpush.xpose.msk.msrb.mxu1 %vm401_vm13, %v2131_v58  ;;  %v2048_v58 = vmul.f32 %v6348_v32, %v7617_v1  ;;  %v7627_v1 = vld [vmem:[#allocation41_spill] sm:$0xff] }
 0x9c4   :  { %4237 = vmatmul.msk.f32.gmra.mxu3 %vm401_vm13, %v6326_v17  ;;  %4260 = vmatmul.msk.f32.vlgmr.msrb.gmra.mxu1 %vm401_vm13, %v6324_v48 }
 0x9c5   :  { %2687 = vmatpush.msra.mxu1 %v4428_v20  ;;  %v7618_v20 = vld [vmem:[#allocation34_spill] sm:$0xff] }
 0x9c6   :  { %v2064_v45 = vmul.f32 %v6348_v32, %v7618_v20  ;;  %v2055_v20 = vmul.f32 %v6343_v53, %v5681_v28 }
 0x9cc   :  { %4238 = vmatmul.msk.f32.gmra.mxu3 %vm401_vm13, %v6328_v44  ;;  %4261 = vmatmul.msk.f32.gmra.mxu1 %vm401_vm13, %v6326_v17 }
 0x9d4   :  { %4239 = vmatmul.msk.f32.gmra.mxu3 %vm401_vm13, %v6330_v4  ;;  %4262 = vmatmul.msk.f32.gmra.mxu1 %vm401_vm13, %v6328_v44 }
 0x9dc   :  { %4240 = vmatmul.msk.f32.gmra.mxu3 %vm401_vm13, %v6335_v57  ;;  %4263 = vmatmul.msk.f32.gmra.mxu1 %vm401_vm13, %v6330_v4 }
 0x9e4   :  { %4241 = vmatmul.msk.f32.gmra.mxu3 %vm401_vm13, %v6343_v53  ;;  %4264 = vmatmul.msk.f32.gmra.mxu1 %vm401_vm13, %v6335_v57 }
 0x9ec   :  { %4242 = vmatmul.msk.f32.gmra.mxu3 %vm401_vm13, %v6348_v32  ;;  %4265 = vmatmul.msk.f32.gmra.mxu1 %vm401_vm13, %v6343_v53 }
 0x9f4   :  { %4243 = vmatmul.msk.f32.gmra.mxu3 %vm401_vm13, %v6356_v13  ;;  %4266 = vmatmul.msk.f32.gmra.mxu1 %vm401_vm13, %v6348_v32 }
 0x9fc   :  { %4267 = vmatmul.msk.f32.gmra.mxu1 %vm401_vm13, %v6356_v13 }
 0xa3f   :  { %v2267_v6 = vpop.f32.mrf.mxu3 }
 0xa40   :  { %v6505_v11 = vmul.f32 0.35355338, %v2267_v6  ;;  %v7619_v6 = vld [vmem:[#allocation35_spill] sm:$0xff] }
 0xa41   :  { %v2308_v10 = vpop.f32.mrf.mxu1 }
 0xa42   :  { %v6507_v33 = vmul.f32 0.35355338, %v2308_v10  ;;  %v2043_v10 = vmul.f32 %v6326_v17, %v7619_v6  ;;  %v7628_v6 = vld [vmem:[#allocation46_spill] sm:$0xff] }
 0xa43   :  { %v2037_v32 = vmul.f32 %v6330_v4, %v7628_v6 }
 0xa44   :  { %v2348_v3 = vmax.f32 %v6505_v11, %v6507_v33 }
 0xa46   :  { %2349 = vmax.xlane.f32.xlu0 %v2348_v3  ;;  %v7620_v3 = vld [vmem:[#allocation40_spill] sm:$0xff] }
 0xa47   :  { %v2270_v23 = vpop.f32.mrf.mxu3 }
 0xa48   :  { %v6511_v62 = vmul.f32 0.35355338, %v2270_v23  ;;  %v2059_v23 = vmul.f32 %v6326_v17, %v7620_v3 }
 0xa49   :  { %v2311_v21 = vpop.f32.mrf.mxu1 }
 0xa4a   :  { %v6513_v55 = vmul.f32 0.35355338, %v2311_v21  ;;  %v4429_v21 = vpack.i.bf16 %v2064_v45, %v2048_v58  ;;  %v4454_v40 = vpack.i.bf16 %v2059_v23, %v2043_v10  ;;  %v2039_v58 = vmul.f32 %v6343_v53, %v7627_v1 }
 0xa4b   :  { %v2053_v10 = vmul.f32 %v6330_v4, %v5685_v47 }
 0xa4c   :  { %v2351_v38 = vmax.f32 %v6511_v62, %v6513_v55  ;;  %v4474_v45 = vpack.i.bf16 %v2055_v20, %v2039_v58 }
 0xa4e   :  { %2352 = vmax.xlane.f32.xlu1 %v2351_v38  ;;  %v7621_v38 = vld [vmem:[#allocation36_spill] sm:$0xff] }
 0xa4f   :  { %v2273_v42 = vpop.f32.mrf.mxu3 }
 0xa50   :  { %v6517_v25 = vmul.f32 0.35355338, %v2273_v42  ;;  %v2042_v42 = vmul.f32 %v6324_v48, %v7621_v38 }
 0xa51   :  { %v2314_v41 = vpop.f32.mrf.mxu1 }
 0xa52   :  { %v6519_v36 = vmul.f32 0.35355338, %v2314_v41  ;;  %v7622_v41 = vld [vmem:[#allocation43_spill] sm:$0xff] }
 0xa54   :  { %v2354_v26 = vmax.f32 %v6517_v25, %v6519_v36 }
 0xa56   :  { %2355 = vmax.xlane.f32.xlu2 %v2354_v26  ;;  %v2058_v26 = vmul.f32 %v6324_v48, %v7622_v41 }
 0xa58   :  { %v4459_v22 = vpack.i.bf16 %v2058_v26, %v2042_v42 }
 0xa59   :  { %v2317_v43 = vpop.f32.mrf.mxu1 }
 0xa5a   :  { %4440 = vrot.lane.b32.xlu0 %v4439_v0, %s4789_s13  ;;  %v2276_v0 = vpop.f32.mrf.mxu3 }
 0xa62   :  { %4445 = vrot.lane.b32.xlu0 %v4444_v14, %s4789_s13  ;;  %v2041_v14 = vmul.f32 %v6356_v13, %v7623_v31  ;;  %v2279_v13 = vpop.f32.mrf.mxu3  ;;  %v6590_v31 = vmul.f32 0.35355338, %v2317_v43  ;;  %v2050_v43 = vmul.f32 %v6324_v48, %v5695_v24 }
 0xa63   :  { %v6598_v5 = vmul.f32 0.35355338, %v2279_v13  ;;  %v2052_v13 = vmul.f32 %v6328_v44, %v5741_v35  ;;  %v298_v35 = vld [vmem:[%s7492_s2 + $0x18] sm:$0xff] }
 0xa64   :  { %v4464_v39 = vpack.i.bf16 %v2057_v60, %v2041_v14  ;;  %v6592_v14 = vmul.f32 0.35355338, %v2276_v0  ;;  %v7629_v0 = vld [vmem:[#allocation47_spill] sm:$0xff]  ;;  %v4499_v1 = vpack.i.bf16 %v2050_v43, %v2034_v59 }
 0xa66   :  { %v2357_v50 = vmax.f32 %v6592_v14, %v6590_v31 }
 0xa67   :  { %4435 = vrot.lane.b32.xlu1 %v4434_v8, %s4789_s13  ;;  %v2320_v8 = vpop.f32.mrf.mxu1 }
 0xa68   :  { %v6596_v60 = vmul.f32 0.35355338, %v2320_v8 }
 0xa6a   :  { %4450 = vrot.lane.b32.xlu0 %v4449_v16, %s4789_s13  ;;  %v4469_v16 = vpack.i.bf16 %v2056_v56, %v2040_v51  ;;  %v2282_v23 = vpop.f32.mrf.mxu3  ;;  %v2360_v51 = vmax.f32 %v6598_v5, %v6596_v60  ;;  %v2038_v56 = vmul.f32 %v6335_v57, %v7629_v0 }
 0xa6b   :  { %v6580_v53 = vmul.f32 0.35355338, %v2282_v23 }
 0xa6e   :  { %4430 = vrot.lane.b32.xlu2 %v4429_v21, %s4789_s13  ;;  %v4484_v21 = vpack.i.bf16 %v2053_v10, %v2037_v32 }
 0xa6f   :  { %4455 = vrot.lane.b32.xlu1 %v4454_v40, %s4789_s13  ;;  %v2323_v3 = vpop.f32.mrf.mxu1 }
 0xa70   :  { %v6578_v28 = vmul.f32 0.35355338, %v2323_v3 }
 0xa72   :  { %4460 = vrot.lane.b32.xlu0 %v4459_v22, %s4789_s13  ;;  %v2285_v42 = vpop.f32.mrf.mxu3  ;;  %v2363_v41 = vmax.f32 %v6580_v53, %v6578_v28 }
 0xa77   :  { %4465 = vrot.lane.b32.xlu1 %v4464_v39, %s4789_s13  ;;  %v2326_v38 = vpop.f32.mrf.mxu1  ;;  %v2054_v39 = vmul.f32 %v6335_v57, %v5683_v30  ;;  %v7630_v30 = vld [vmem:[#allocation49_spill] sm:$0xff] }
 0xa78   :  { %v6610_v8 = vmul.f32 0.35355338, %v2326_v38  ;;  %v2036_v57 = vmul.f32 %v6328_v44, %v7630_v30 }
 0xa79   :  { %v4479_v58 = vpack.i.bf16 %v2054_v39, %v2038_v56 }
 0xa7a   :  { %4470 = vrot.lane.b32.xlu0 %v4469_v16, %s4789_s13  ;;  %v2288_v40 = vpop.f32.mrf.mxu3  ;;  %v6612_v16 = vmul.f32 0.35355338, %v2285_v42  ;;  %v4489_v32 = vpack.i.bf16 %v2052_v13, %v2036_v57 }
 0xa7b   :  { %v6586_v47 = vmul.f32 0.35355338, %v2288_v40  ;;  %v301_v40 = vld [vmem:[%s7492_s2 + $0x30] sm:$0xff] }
 0xa7c   :  { %v2366_v20 = vmax.f32 %v6612_v16, %v6610_v8 }
 0xa7f   :  { %4475 = vrot.lane.b32.xlu1 %v4474_v45, %s4789_s13  ;;  %v2329_v26 = vpop.f32.mrf.mxu1 }
 0xa80   :  { %v6584_v22 = vmul.f32 0.35355338, %v2329_v26 }
 0xa82   :  { %v2369_v4 = vmax.f32 %v6586_v47, %v6584_v22 }
 0xa87   :  { %4485 = vrot.lane.b32.xlu1 %v4484_v21, %s4789_s13 }
 0xa97   :  { %2364 = vmax.xlane.f32.xlu2 %v2363_v41 }
 0xa9f   :  { %2370 = vmax.xlane.f32.xlu2 %v2369_v4  ;;  %v302_v4 = vld [vmem:[%s7492_s2 + $0x38] sm:$0xff] }
 0xaa4   :  { %2358 = vmax.xlane.f32.xlu0 %v2357_v50 }
 0xab1   :  { %2361 = vmax.xlane.f32.xlu1 %v2360_v51 }
 0xab7   :  { %4500 = vrot.lane.b32.xlu2 %v4499_v1, %s4789_s13 }
 0xab8   :  { %4480 = vrot.lane.b32.xlu0 %v4479_v58, %s4789_s13 }
 0xab9   :  { %2367 = vmax.xlane.f32.xlu1 %v2366_v20  ;;  %v2350_v24 = vpop.xlane.xlu0 %2349 }
 0xaba   :  { %v2372_v18 = vsub.f32 %v6505_v11, %v2350_v24  ;;  %v2373_v48 = vsub.f32 %v6507_v33, %v2350_v24  ;;  %v297_v33 = vld [vmem:[%s7492_s2 + $0x10] sm:$0xff] }
 0xabc   :  { %v2388_v45 = vmul.f32 1.442695, %v2372_v18  ;;  %v2390_v6 = vmul.f32 1.442695, %v2373_v48 }
 0xabe   :  { %4600 = vpow2.f32 %v2388_v45 }
 0xabf   :  { %4602 = vpow2.f32 %v2390_v6 }
 0xac0   :  { %4490 = vrot.lane.b32.xlu0 %v4489_v32, %s4789_s13 }
 0xac1   :  { %v2353_v10 = vpop.xlane.xlu1 %2352 }
 0xac2   :  { %v2374_v3 = vsub.f32 %v6511_v62, %v2353_v10  ;;  %v2375_v11 = vsub.f32 %v6513_v55, %v2353_v10 }
 0xac4   :  { %v4601_v44 = vpop.eup %4600  ;;  %v2392_v23 = vmul.f32 1.442695, %v2374_v3  ;;  %v2394_v21 = vmul.f32 1.442695, %v2375_v11 }
 0xac5   :  { %v4603_v38 = vpop.eup %4602  ;;  %v6633_v42 = vmul.f32 %v4601_v44, %v297_v33 }
 0xac6   :  { %4604 = vpow2.f32 %v2392_v23  ;;  %v6635_v41 = vmul.f32 %v4603_v38, %v298_v35 }
 0xac7   :  { %4606 = vpow2.f32 %v2394_v21  ;;  %2452 = vmatmul.f32.vlgmr.msra.gmra.mxu2 %v6633_v42 }
 0xac8   :  { %2493 = vmatmul.f32.vlgmr.msra.gmra.mxu0 %v6635_v41  ;;  %4505 = vrot.lane.b32.xlu0 %v4504_v63, %s4787_s11  ;;  %v2051_v63 = vmul.f32 %v6326_v17, %v7631_v12  ;;  %v306_v17 = vld [vmem:[%s7492_s2 + $0x58] sm:$0xff] }
 0xac9   :  { %v2356_v62 = vpop.xlane.xlu2 %2355 }
 0xaca   :  { %v2376_v55 = vsub.f32 %v6517_v25, %v2356_v62  ;;  %v2377_v26 = vsub.f32 %v6519_v36, %v2356_v62  ;;  %v4494_v56 = vpack.i.bf16 %v2051_v63, %v2035_v37 }
 0xacc   :  { %v4605_v50 = vpop.eup %4604  ;;  %v2396_v51 = vmul.f32 1.442695, %v2376_v55  ;;  %v2398_v59 = vmul.f32 1.442695, %v2377_v26  ;;  %v4441_v43 = vpop.permute.xlu0 %4440 }
 0xacd   :  { %v4607_v25 = vpop.eup %4606  ;;  %v6655_v36 = vmul.f32 %v4605_v50, %v301_v40  ;;  %v4442_v6 = vunpack.i.l.bf16 %v4441_v43  ;;  %v4443_v10 = vunpack.i.h.bf16 %v4441_v43 }
 0xace   :  { %4608 = vpow2.f32 %v2396_v51  ;;  %v6657_v0 = vmul.f32 %v4607_v25, %v302_v4 }
 0xacf   :  { %4610 = vpow2.f32 %v2398_v59  ;;  %2455 = vmatmul.f32.gmra.mxu2 %v6655_v36 }
 0xad0   :  { %2496 = vmatmul.f32.gmra.mxu0 %v6657_v0 }
 0xad1   :  { %v4431_v39 = vpop.permute.xlu2 %4430 }
 0xad2   :  { %v4433_v1 = vunpack.i.h.bf16 %v4431_v39  ;;  %v4432_v58 = vunpack.i.l.bf16 %v4431_v39  ;;  %4495 = vrot.lane.b32.xlu1 %v4494_v56, %s4789_s13  ;;  %v309_v39 = vld [vmem:[%s7492_s2 + $0x70] sm:$0xff] }
 0xad4   :  { %v4609_v20 = vpop.eup %4608  ;;  %v4446_v24 = vpop.permute.xlu0 %4445  ;;  %2647 = vmatpush.msrb.mxu0 %v4432_v58  ;;  %4307 = vmatpush.msrb.mxu3 %v4432_v58 }
 0xad5   :  { %v4611_v18 = vpop.eup %4610  ;;  %2688 = vmatpush.msra.mxu1 %v4433_v1  ;;  %v6668_v48 = vmul.f32 %v4609_v20, %v305_v15  ;;  %v4447_v3 = vunpack.i.l.bf16 %v4446_v24  ;;  %v4448_v11 = vunpack.i.h.bf16 %v4446_v24  ;;  %v310_v1 = vld [vmem:[%s7492_s2 + $0x78] sm:$0xff] }
 0xad6   :  { %v6670_v30 = vmul.f32 %v4611_v18, %v306_v17 }
 0xad7   :  { %2458 = vmatmul.f32.gmra.mxu2 %v6668_v48 }
 0xad8   :  { %2499 = vmatmul.f32.gmra.mxu0 %v6670_v30 }
 0xad9   :  { %v4436_v57 = vpop.permute.xlu1 %4435 }
 0xada   :  { %v4438_v13 = vunpack.i.h.bf16 %v4436_v57  ;;  %v4437_v45 = vunpack.i.l.bf16 %v4436_v57  ;;  %4510 = vrot.lane.b32.xlu1 %v4509_v9, %s4787_s11 }
 0xadc   :  { %v4451_v32 = vpop.permute.xlu0 %4450  ;;  %2648 = vmatpush.msrb.mxu0 %v4437_v45  ;;  %4308 = vmatpush.msrb.mxu3 %v4437_v45 }
 0xadd   :  { %2689 = vmatpush.msra.mxu1 %v4438_v13  ;;  %v4452_v33 = vunpack.i.l.bf16 %v4451_v32  ;;  %v4453_v35 = vunpack.i.h.bf16 %v4451_v32 }
 0xade   :  { %2649 = vmatpush.msrb.mxu0 %v4442_v6  ;;  %4309 = vmatpush.msrb.mxu3 %v4442_v6 }
 0xadf   :  { %2690 = vmatpush.msra.mxu1 %v4443_v10 }
 0xae0   :  { %2650 = vmatpush.msrb.mxu0 %v4447_v3  ;;  %4310 = vmatpush.msrb.mxu3 %v4447_v3 }
 0xae1   :  { %2691 = vmatpush.msra.mxu1 %v4448_v11  ;;  %v4456_v44 = vpop.permute.xlu1 %4455 }
 0xae2   :  { %v4458_v23 = vunpack.i.h.bf16 %v4456_v44  ;;  %v4457_v49 = vunpack.i.l.bf16 %v4456_v44  ;;  %2651 = vmatpush.msrb.mxu0 %v4452_v33  ;;  %4311 = vmatpush.msrb.mxu3 %v4452_v33 }
 0xae3   :  { %2692 = vmatpush.msra.mxu1 %v4453_v35 }
 0xae4   :  { %v4461_v61 = vpop.permute.xlu0 %4460  ;;  %2652 = vmatpush.msrb.mxu0 %v4457_v49  ;;  %4312 = vmatpush.msrb.mxu3 %v4457_v49 }
 0xae5   :  { %v4463_v9 = vunpack.i.h.bf16 %v4461_v61  ;;  %v4462_v21 = vunpack.i.l.bf16 %v4461_v61  ;;  %2693 = vmatpush.msra.mxu1 %v4458_v23 }
 0xae7   :  { %2653 = vmatpush.msrb.mxu0 %v4462_v21  ;;  %4313 = vmatpush.msrb.mxu3 %v4462_v21 }
 0xae8   :  { %2694 = vmatpush.msra.mxu1 %v4463_v9 }
 0xae9   :  { %v4466_v38 = vpop.permute.xlu1 %4465 }
 0xaea   :  { %v4468_v62 = vunpack.i.h.bf16 %v4466_v38  ;;  %v4467_v55 = vunpack.i.l.bf16 %v4466_v38 }
 0xaec   :  { %v4471_v26 = vpop.permute.xlu0 %4470  ;;  %2654 = vmatpush.msrb.mxu0 %v4467_v55  ;;  %4314 = vmatpush.msrb.mxu3 %v4467_v55 }
 0xaed   :  { %v4473_v40 = vunpack.i.h.bf16 %v4471_v26  ;;  %v4472_v4 = vunpack.i.l.bf16 %v4471_v26  ;;  %2695 = vmatpush.msra.mxu1 %v4468_v62 }
 0xaef   :  { %2655 = vmatpush.msrb.mxu0 %v4472_v4  ;;  %4315 = vmatpush.msrb.mxu3 %v4472_v4 }
 0xaf0   :  { %2696 = vmatpush.msra.mxu1 %v4473_v40 }
 0xaf1   :  { %v4476_v50 = vpop.permute.xlu1 %4475 }
 0xaf2   :  { %v4478_v51 = vunpack.i.h.bf16 %v4476_v50  ;;  %v4477_v59 = vunpack.i.l.bf16 %v4476_v50 }
 0xaf4   :  { %2656 = vmatpush.msrb.mxu0 %v4477_v59  ;;  %4316 = vmatpush.msrb.mxu3 %v4477_v59 }
 0xaf5   :  { %2697 = vmatpush.msra.mxu1 %v4478_v51  ;;  %v318_v51 = vld [vmem:[%s7492_s2 + $0xb8] sm:$0xff] }
 0xaf9   :  { %v4486_v56 = vpop.permute.xlu1 %4485 }
 0xafa   :  { %v4487_v35 = vunpack.i.l.bf16 %v4486_v56 }
 0xb17   :  { %v2359_v43 = vpop.xlane.xlu0 %2358 }
 0xb18   :  { %v2378_v37 = vsub.f32 %v6592_v14, %v2359_v43  ;;  %v2379_v12 = vsub.f32 %v6590_v31, %v2359_v43  ;;  %v2365_v14 = vpop.xlane.xlu2 %2364 }
 0xb19   :  { %v2382_v57 = vsub.f32 %v6580_v53, %v2365_v14  ;;  %v2383_v6 = vsub.f32 %v6578_v28, %v2365_v14  ;;  %v4488_v53 = vunpack.i.h.bf16 %v4486_v56  ;;  %v314_v28 = vld [vmem:[%s7492_s2 + $0x98] sm:$0xff] }
 0xb1a   :  { %v2400_v63 = vmul.f32 1.442695, %v2378_v37  ;;  %v2402_v25 = vmul.f32 1.442695, %v2379_v12 }
 0xb1b   :  { %v2408_v10 = vmul.f32 1.442695, %v2382_v57  ;;  %v2410_v33 = vmul.f32 1.442695, %v2383_v6  ;;  %v325_v57 = vld [vmem:[%s7492_s2 + $0xf0] sm:$0xff] }
 0xb1c   :  { %4612 = vpow2.f32 %v2400_v63 }
 0xb1d   :  { %4614 = vpow2.f32 %v2402_v25 }
 0xb20   :  { %v2371_v40 = vpop.xlane.xlu2 %2370 }
 0xb21   :  { %v2386_v59 = vsub.f32 %v6586_v47, %v2371_v40  ;;  %v2387_v43 = vsub.f32 %v6584_v22, %v2371_v40  ;;  %v322_v47 = vld [vmem:[%s7492_s2 + $0xd8] sm:$0xff] }
 0xb22   :  { %v4613_v58 = vpop.eup %4612 }
 0xb23   :  { %v4615_v15 = vpop.eup %4614  ;;  %v6686_v17 = vmul.f32 %v4613_v58, %v309_v39  ;;  %v2416_v63 = vmul.f32 1.442695, %v2386_v59  ;;  %v2418_v25 = vmul.f32 1.442695, %v2387_v43  ;;  %v321_v39 = vld [vmem:[%s7492_s2 + $0xd0] sm:$0xff] }
 0xb24   :  { %v2362_v20 = vpop.xlane.xlu1 %2361  ;;  %v6688_v31 = vmul.f32 %v4615_v15, %v310_v1 }
 0xb25   :  { %v2380_v24 = vsub.f32 %v6598_v5, %v2362_v20  ;;  %v2381_v18 = vsub.f32 %v6596_v60, %v2362_v20  ;;  %2461 = vmatmul.f32.gmra.mxu2 %v6686_v17  ;;  %v313_v60 = vld [vmem:[%s7492_s2 + $0x90] sm:$0xff] }
 0xb26   :  { %2502 = vmatmul.f32.gmra.mxu0 %v6688_v31 }
 0xb27   :  { %v2404_v13 = vmul.f32 1.442695, %v2380_v24  ;;  %v2406_v45 = vmul.f32 1.442695, %v2381_v18 }
 0xb28   :  { %v4501_v15 = vpop.permute.xlu2 %4500 }
 0xb29   :  { %4616 = vpow2.f32 %v2404_v13  ;;  %v4502_v6 = vunpack.i.l.bf16 %v4501_v15 }
 0xb2a   :  { %4618 = vpow2.f32 %v2406_v45  ;;  %v4481_v32 = vpop.permute.xlu0 %4480  ;;  %v326_v45 = vld [vmem:[%s7492_s2 + $0xf8] sm:$0xff] }
 0xb2b   :  { %v4483_v3 = vunpack.i.h.bf16 %v4481_v32  ;;  %v4482_v11 = vunpack.i.l.bf16 %v4481_v32  ;;  %4620 = vpow2.f32 %v2408_v10  ;;  %v4503_v32 = vunpack.i.h.bf16 %v4501_v15 }
 0xb2c   :  { %v2368_v5 = vpop.xlane.xlu1 %2367  ;;  %4622 = vpow2.f32 %v2410_v33 }
 0xb2d   :  { %2657 = vmatpush.msrb.mxu0 %v4482_v11  ;;  %4317 = vmatpush.msrb.mxu3 %v4482_v11  ;;  %v2384_v23 = vsub.f32 %v6612_v16, %v2368_v5  ;;  %v2385_v61 = vsub.f32 %v6610_v8, %v2368_v5  ;;  %v317_v8 = vld [vmem:[%s7492_s2 + $0xb0] sm:$0xff] }
 0xb2e   :  { %2698 = vmatpush.msra.mxu1 %v4483_v3 }
 0xb2f   :  { %v4617_v44 = vpop.eup %4616  ;;  %2658 = vmatpush.msrb.mxu0 %v4487_v35  ;;  %4318 = vmatpush.msrb.mxu3 %v4487_v35  ;;  %v2412_v62 = vmul.f32 1.442695, %v2384_v23  ;;  %v2414_v4 = vmul.f32 1.442695, %v2385_v61 }
 0xb30   :  { %v4619_v49 = vpop.eup %4618  ;;  %2699 = vmatpush.msra.mxu1 %v4488_v53  ;;  %v2428_v9 = vmul.f32 %v4617_v44, %v313_v60 }
 0xb31   :  { %v6704_v21 = vmul.f32 %v4619_v49, %v314_v28  ;;  %v4621_v16 = vpop.eup %4620  ;;  %4624 = vpow2.f32 %v2412_v62 }
 0xb32   :  { %2464 = vmatmul.f32.gmra.mxu2 %v2428_v9  ;;  %v4491_v38 = vpop.permute.xlu0 %4490  ;;  %v4623_v50 = vpop.eup %4622  ;;  %4626 = vpow2.f32 %v2414_v4  ;;  %v2430_v37 = vmul.f32 %v4621_v16, %v317_v8 }
 0xb33   :  { %2505 = vmatmul.f32.gmra.mxu0 %v6704_v21  ;;  %v4493_v55 = vunpack.i.h.bf16 %v4491_v38  ;;  %v4492_v26 = vunpack.i.l.bf16 %v4491_v38  ;;  %v2431_v12 = vmul.f32 %v4623_v50, %v318_v51  ;;  %4628 = vpow2.f32 %v2416_v63 }
 0xb34   :  { %4630 = vpow2.f32 %v2418_v25 }
 0xb35   :  { %2659 = vmatpush.msrb.mxu0 %v4492_v26  ;;  %4319 = vmatpush.msrb.mxu3 %v4492_v26 }
 0xb36   :  { %2700 = vmatpush.msra.mxu1 %v4493_v55 }
 0xb37   :  { %v4625_v56 = vpop.eup %4624 }
 0xb38   :  { %v4627_v1 = vpop.eup %4626  ;;  %v2432_v22 = vmul.f32 %v4625_v56, %v321_v39 }
 0xb39   :  { %v2433_v58 = vmul.f32 %v4627_v1, %v322_v47  ;;  %v4629_v20 = vpop.eup %4628 }
 0xb3a   :  { %2467 = vmatmul.f32.gmra.mxu2 %v2430_v37  ;;  %v4631_v13 = vpop.eup %4630  ;;  %v2434_v10 = vmul.f32 %v4629_v20, %v325_v57 }
 0xb3b   :  { %2508 = vmatmul.f32.gmra.mxu0 %v2431_v12  ;;  %v2435_v3 = vmul.f32 %v4631_v13, %v326_v45 }
 0xb42   :  { %2470 = vmatmul.f32.gmra.mxu2 %v2432_v22 }
 0xb43   :  { %2511 = vmatmul.f32.gmra.mxu0 %v2433_v58 }
 0xb44   :  { %v4496_v14 = vpop.permute.xlu1 %4495 }
 0xb45   :  { %v4498_v24 = vunpack.i.h.bf16 %v4496_v14  ;;  %v4497_v18 = vunpack.i.l.bf16 %v4496_v14 }
 0xb47   :  { %2660 = vmatpush.msrb.mxu0 %v4497_v18  ;;  %4320 = vmatpush.msrb.mxu3 %v4497_v18 }
 0xb48   :  { %2701 = vmatpush.msra.mxu1 %v4498_v24 }
 0xb49   :  { %2661 = vmatpush.msrb.mxu0 %v4502_v6  ;;  %4321 = vmatpush.msrb.mxu3 %v4502_v6 }
 0xb4a   :  { %2702 = vmatpush.msra.mxu1 %v4503_v32  ;;  %2473 = vmatmul.f32.gmra.mxu2 %v2434_v10 }
 0xb4b   :  { %2514 = vmatmul.f32.gmra.mxu0 %v2435_v3  ;;  %2671 = vmatmul.f32.vlgmr.msrb.gmra.mxu3 %v6686_v17 }
 0xb4c   :  { %2703 = vmatmul.f32.vlgmr.msra.gmra.mxu1 %v6635_v41  ;;  %v4506_v41 = vpop.permute.xlu0 %4505 }
 0xb4d   :  { %v4508_v17 = vunpack.i.h.bf16 %v4506_v41 }
 0xb53   :  { %2662 = vmatmul.f32.vlgmr.msrb.gmra.mxu0 %v6633_v42  ;;  %2674 = vmatmul.f32.gmra.mxu3 %v2428_v9  ;;  %v2494_v42 = vpop.f32.mrf.mxu0 }
 0xb54   :  { %2706 = vmatmul.f32.gmra.mxu1 %v6657_v0  ;;  %v4507_v0 = vunpack.i.l.bf16 %v4506_v41 }
 0xb56   :  { %2900 = vmatpush.msrb.mxu2 %v4507_v0 }
 0xb58   :  { %2901 = vmatpush.msrb.mxu2 %v4508_v17 }
 0xb5b   :  { %2665 = vmatmul.f32.gmra.mxu0 %v6655_v36  ;;  %2677 = vmatmul.f32.gmra.mxu3 %v2430_v37  ;;  %v2497_v11 = vpop.f32.mrf.mxu0 }
 0xb5c   :  { %2709 = vmatmul.f32.gmra.mxu1 %v6670_v30  ;;  %v2453_v30 = vpop.f32.mrf.mxu2 }
 0xb5d   :  { %v2495_v53 = vadd.f32 %v2494_v42, %v2453_v30 }
 0xb5f   :  { %4632 = vrcp.f32 %v2495_v53  ;;  %v2739_v37 = vand.u32 2147483648, %v2495_v53  ;;  %vm2733_vm15 = vweird.f32 %v2495_v53 }
 0xb61   :  { %v2740_v1 = vor.u32 1.1754944e-38, %v2739_v37 }
 0xb63   :  { %2668 = vmatmul.f32.gmra.mxu0 %v6668_v48  ;;  %2680 = vmatmul.f32.gmra.mxu3 %v2432_v22  ;;  %v2500_v36 = vpop.f32.mrf.mxu0  ;;  %v4511_v48 = vpop.permute.xlu1 %4510 }
 0xb64   :  { %2712 = vmatmul.f32.gmra.mxu1 %v6688_v31  ;;  %v2456_v5 = vpop.f32.mrf.mxu2  ;;  %v4512_v35 = vunpack.i.l.bf16 %v4511_v48  ;;  %v4513_v60 = vunpack.i.h.bf16 %v4511_v48 }
 0xb65   :  { %v2498_v23 = vadd.f32 %v2497_v11, %v2456_v5  ;;  %v4633_v49 = vpop.eup %4632 }
 0xb66   :  { %2902 = vmatpush.msrb.mxu2 %v4512_v35  ;;  %v2729_v61 = vmul.f32 %v4633_v49, %v2495_v53  ;;  %vm2734_vm14 = vweird.f32 %v4633_v49 }
 0xb67   :  { %4634 = vrcp.f32 %v2498_v23  ;;  %vm2735_vm0 = vmor %vm2733_vm15, %vm2734_vm14  ;;  %v2754_v13 = vand.u32 2147483648, %v2498_v23  ;;  %vm2748_vm3 = vweird.f32 %v2498_v23  ;;  %v2752_v45 = vand.u32 2147483647, %v2498_v23 }
 0xb68   :  { %2903 = vmatpush.msrb.mxu2 %v4513_v60  ;;  %v2730_v62 = vsub.f32 1.0, %v2729_v61 }
 0xb69   :  { %v2755_v42 = vor.u32 1.1754944e-38, %v2754_v13  ;;  %vm2753_vm5 = vcmp.eq.f32.partialorder %v2752_v45, 8.507059e+37 }
 0xb6a   :  { %v2731_v40 = vmul.f32 %v4633_v49, %v2730_v62 }
 0xb6b   :  { %2683 = vmatmul.f32.gmra.mxu3 %v2434_v10 }
 0xb6c   :  { %2715 = vmatmul.f32.gmra.mxu1 %v6704_v21  ;;  %v2459_v44 = vpop.f32.mrf.mxu2  ;;  %v2732_v59 = vadd.f32 %v4633_v49, %v2731_v40 }
 0xb6d   :  { %v6738_v38 = vadd.f32 %v2500_v36, %v2459_v44  ;;  %v4635_v55 = vpop.eup %4634 }
 0xb6e   :  { %v2744_v26 = vmul.f32 %v4635_v55, %v2498_v23  ;;  %v2736_v25 = vsel %vm2735_vm0, %v4633_v49, %v2732_v59  ;;  %vm2749_vm2 = vweird.f32 %v4635_v55 }
 0xb6f   :  { %4636 = vrcp.f32 %v6738_v38  ;;  %vm2750_vm4 = vmor %vm2748_vm3, %vm2749_vm2  ;;  %v2769_v5 = vand.u32 2147483648, %v6738_v38  ;;  %vm2763_vm7 = vweird.f32 %v6738_v38 }
 0xb70   :  { %v2745_v51 = vsub.f32 1.0, %v2744_v26 }
 0xb71   :  { %v2770_v49 = vor.u32 1.1754944e-38, %v2769_v5 }
 0xb72   :  { %v2746_v56 = vmul.f32 %v4635_v55, %v2745_v51 }
 0xb74   :  { %2718 = vmatmul.f32.gmra.mxu1 %v2431_v12  ;;  %v2737_v12 = vand.u32 2147483647, %v2495_v53  ;;  %v2747_v18 = vadd.f32 %v4635_v55, %v2746_v56 }
 0xb75   :  { %v4637_v43 = vpop.eup %4636 }
 0xb76   :  { %v2759_v63 = vmul.f32 %v4637_v43, %v6738_v38  ;;  %vm2738_vm1 = vcmp.eq.f32.partialorder %v2737_v12, 8.507059e+37  ;;  %v2751_v32 = vsel %vm2750_vm4, %v4635_v55, %v2747_v18  ;;  %vm2764_vm6 = vweird.f32 %v4637_v43 }
 0xb77   :  { %v2741_v15 = vsel %vm2738_vm1, %v2740_v1, %v2736_v25  ;;  %v2756_v11 = vsel %vm2753_vm5, %v2755_v42, %v2751_v32  ;;  %vm2765_vm8 = vmor %vm2763_vm7, %vm2764_vm6 }
 0xb78   :  { %v2760_v14 = vsub.f32 1.0, %v2759_v63 }
 0xb7a   :  { %v2761_v10 = vmul.f32 %v4637_v43, %v2760_v14 }
 0xb7c   :  { %2721 = vmatmul.f32.gmra.mxu1 %v2433_v58 }
 0xb84   :  { %2724 = vmatmul.f32.gmra.mxu1 %v2435_v3 }
 0xba3   :  { %v2503_v33 = vpop.f32.mrf.mxu0 }
 0xba8   :  { %v2462_v21 = vpop.f32.mrf.mxu2 }
 0xba9   :  { %v6743_v50 = vadd.f32 %v2503_v33, %v2462_v21  ;;  %v2762_v33 = vadd.f32 %v4637_v43, %v2761_v10 }
 0xbab   :  { %4638 = vrcp.f32 %v6743_v50  ;;  %vm2778_vm11 = vweird.f32 %v6743_v50  ;;  %v2782_v51 = vand.u32 2147483647, %v6743_v50 }
 0xbad   :  { %vm2783_vm14 = vcmp.eq.f32.partialorder %v2782_v51, 8.507059e+37 }
 0xbb0   :  { %v2506_v31 = vpop.f32.mrf.mxu0 }
 0xbb1   :  { %v6749_v57 = vpop.eup %4638 }
 0xbb2   :  { %v2774_v6 = vmul.f32 %v6749_v57, %v6743_v50  ;;  %vm2779_vm10 = vweird.f32 %v6749_v57 }
 0xbb3   :  { %vm2780_vm12 = vmor %vm2778_vm11, %vm2779_vm10 }
 0xbb4   :  { %v2775_v36 = vsub.f32 1.0, %v2774_v6 }
 0xbb5   :  { %v2465_v16 = vpop.f32.mrf.mxu2 }
 0xbb6   :  { %v6747_v58 = vadd.f32 %v2506_v31, %v2465_v16  ;;  %v2767_v31 = vand.u32 2147483647, %v6738_v38  ;;  %v2776_v44 = vmul.f32 %v6749_v57, %v2775_v36 }
 0xbb8   :  { %v2509_v28 = vpop.f32.mrf.mxu0  ;;  %4640 = vrcp.f32 %v6747_v58  ;;  %vm2768_vm9 = vcmp.eq.f32.partialorder %v2767_v31, 8.507059e+37  ;;  %v2777_v40 = vadd.f32 %v6749_v57, %v2776_v44  ;;  %v2799_v14 = vand.u32 2147483648, %v6747_v58 }
 0xbb9   :  { %vm2793_vm0 = vweird.f32 %v6747_v58 }
 0xbba   :  { %v2781_v37 = vsel %vm2780_vm12, %v6749_v57, %v2777_v40  ;;  %v2800_v13 = vor.u32 1.1754944e-38, %v2799_v14 }
 0xbbd   :  { %v2468_v20 = vpop.f32.mrf.mxu2 }
 0xbbe   :  { %v6755_v0 = vadd.f32 %v2509_v28, %v2468_v20  ;;  %v4641_v48 = vpop.eup %4640  ;;  %v2766_v28 = vsel %vm2765_vm8, %v4637_v43, %v2762_v33  ;;  %v2797_v20 = vand.u32 2147483647, %v6747_v58 }
 0xbbf   :  { %v2789_v53 = vmul.f32 %v4641_v48, %v6747_v58  ;;  %v2771_v55 = vsel %vm2768_vm9, %v2770_v49, %v2766_v28  ;;  %vm2794_vm15 = vweird.f32 %v4641_v48 }
 0xbc0   :  { %v6736_v9 = vpop.f32.mrf.mxu0  ;;  %4642 = vrcp.f32 %v6755_v0  ;;  %vm2795_vm1 = vmor %vm2793_vm0, %vm2794_vm15  ;;  %vm2798_vm2 = vcmp.eq.f32.partialorder %v2797_v20, 8.507059e+37  ;;  %vm2808_vm4 = vweird.f32 %v6755_v0 }
 0xbc1   :  { %v2790_v26 = vsub.f32 1.0, %v2789_v53 }
 0xbc3   :  { %v2791_v12 = vmul.f32 %v4641_v48, %v2790_v26 }
 0xbc5   :  { %v2471_v35 = vpop.f32.mrf.mxu2 }
 0xbc6   :  { %v6765_v62 = vadd.f32 %v6736_v9, %v2471_v35  ;;  %v4643_v16 = vpop.eup %4642 }
 0xbc7   :  { %v2804_v9 = vmul.f32 %v4643_v16, %v6755_v0  ;;  %vm2809_vm3 = vweird.f32 %v4643_v16 }
 0xbc8   :  { %v6741_v4 = vpop.f32.mrf.mxu0  ;;  %4644 = vrcp.f32 %v6765_v62  ;;  %vm2810_vm5 = vmor %vm2808_vm4, %vm2809_vm3  ;;  %v2829_v44 = vand.u32 2147483648, %v6765_v62  ;;  %vm2823_vm8 = vweird.f32 %v6765_v62 }
 0xbc9   :  { %v2704_v8 = vpop.f32.mrf.mxu1  ;;  %v2805_v1 = vsub.f32 1.0, %v2804_v9 }
 0xbcb   :  { %v2806_v57 = vmul.f32 %v4643_v16, %v2805_v1 }
 0xbcd   :  { %v2474_v59 = vpop.f32.mrf.mxu2  ;;  %v2807_v42 = vadd.f32 %v4643_v16, %v2806_v57 }
 0xbce   :  { %v2672_v60 = vpop.f32.mrf.mxu3 }
 0xbd0   :  { %v2663_v39 = vpop.f32.mrf.mxu0 }
 0xbd1   :  { %v2705_v47 = vadd.f32 %v2704_v8, %v2663_v39  ;;  %v2707_v22 = vpop.f32.mrf.mxu1  ;;  %v2784_v8 = vand.u32 2147483648, %v6743_v50  ;;  %v6777_v39 = vadd.f32 %v6741_v4, %v2474_v59 }
 0xbd3   :  { %v2742_v24 = vmul.f32 %v2741_v15, %v2705_v47  ;;  %v2785_v25 = vor.u32 1.1754944e-38, %v2784_v8  ;;  %v4645_v15 = vpop.eup %4644  ;;  %4646 = vrcp.f32 %v6777_v39  ;;  %vm2838_vm12 = vweird.f32 %v6777_v39 }
 0xbd4   :  { %v2819_v4 = vmul.f32 %v4645_v15, %v6765_v62  ;;  %vm2824_vm7 = vweird.f32 %v4645_v15  ;;  %v2842_v8 = vand.u32 2147483647, %v6777_v39 }
 0xbd5   :  { %4268 = vmatmul.msk.f32.vlgmr.msrb.gmra.mxu2 %vm401_vm13, %v2742_v24  ;;  %v2786_v50 = vsel %vm2783_vm14, %v2785_v25, %v2781_v37  ;;  %vm2825_vm9 = vmor %vm2823_vm8, %vm2824_vm7 }
 0xbd6   :  { %v2675_v63 = vpop.f32.mrf.mxu3  ;;  %v2820_v10 = vsub.f32 1.0, %v2819_v4  ;;  %vm2843_vm15 = vcmp.eq.f32.partialorder %v2842_v8, 8.507059e+37 }
 0xbd8   :  { %v2666_v3 = vpop.f32.mrf.mxu0  ;;  %v2821_v33 = vmul.f32 %v4645_v15, %v2820_v10 }
 0xbd9   :  { %v2708_v41 = vadd.f32 %v2707_v22, %v2666_v3  ;;  %v2710_v17 = vpop.f32.mrf.mxu1  ;;  %v2792_v22 = vadd.f32 %v4641_v48, %v2791_v12  ;;  %v4647_v58 = vpop.eup %4646 }
 0xbda   :  { %v2822_v53 = vadd.f32 %v4645_v15, %v2821_v33  ;;  %vm2839_vm11 = vweird.f32 %v4647_v58 }
 0xbdb   :  { %v2757_v30 = vmul.f32 %v2756_v11, %v2708_v41  ;;  %v2796_v18 = vsel %vm2795_vm1, %v4641_v48, %v2792_v22  ;;  %v2814_v41 = vand.u32 2147483648, %v6755_v0  ;;  %v2834_v11 = vmul.f32 %v4647_v58, %v6777_v39  ;;  %vm2840_vm14 = vmor %vm2838_vm12, %vm2839_vm11 }
 0xbdc   :  { %v2801_v32 = vsel %vm2798_vm2, %v2800_v13, %v2796_v18  ;;  %v2826_v49 = vsel %vm2825_vm9, %v4645_v15, %v2822_v53 }
 0xbdd   :  { %4269 = vmatmul.msk.f32.gmra.mxu2 %vm401_vm13, %v2757_v30  ;;  %v2811_v30 = vsel %vm2810_vm5, %v4643_v16, %v2807_v42  ;;  %v2815_v48 = vor.u32 1.1754944e-38, %v2814_v41  ;;  %v2835_v31 = vsub.f32 1.0, %v2834_v11  ;;  %v2844_v16 = vand.u32 2147483648, %v6777_v39 }
 0xbde   :  { %v2678_v6 = vpop.f32.mrf.mxu3 }
 0xbdf   :  { %v2845_v59 = vor.u32 1.1754944e-38, %v2844_v16 }
 0xbe0   :  { %v2669_v23 = vpop.f32.mrf.mxu0 }
 0xbe1   :  { %v2711_v61 = vadd.f32 %v2710_v17, %v2669_v23  ;;  %v2713_v21 = vpop.f32.mrf.mxu1  ;;  %v2812_v17 = vand.u32 2147483647, %v6755_v0  ;;  %v2827_v0 = vand.u32 2147483647, %v6765_v62 }
 0xbe2   :  { %v2714_v43 = vadd.f32 %v2713_v21, %v2672_v60  ;;  %v2830_v21 = vor.u32 1.1754944e-38, %v2829_v44 }
 0xbe3   :  { %v2772_v38 = vmul.f32 %v2771_v55, %v2711_v61  ;;  %vm2813_vm6 = vcmp.eq.f32.partialorder %v2812_v17, 8.507059e+37  ;;  %v2836_v61 = vmul.f32 %v4647_v58, %v2835_v31  ;;  %vm2828_vm10 = vcmp.eq.f32.partialorder %v2827_v0, 8.507059e+37 }
 0xbe4   :  { %v2787_v47 = vmul.f32 %v2786_v50, %v2714_v43  ;;  %v2816_v5 = vsel %vm2813_vm6, %v2815_v48, %v2811_v30  ;;  %v2831_v55 = vsel %vm2828_vm10, %v2830_v21, %v2826_v49 }
 0xbe5   :  { %4270 = vmatmul.msk.f32.gmra.mxu2 %vm401_vm13, %v2772_v38  ;;  %v2837_v38 = vadd.f32 %v4647_v58, %v2836_v61 }
 0xbe6   :  { %v2681_v28 = vpop.f32.mrf.mxu3 }
 0xbe7   :  { %v2841_v9 = vsel %vm2840_vm14, %v4647_v58, %v2837_v38 }
 0xbe8   :  { %v2846_v43 = vsel %vm2843_vm15, %v2845_v59, %v2841_v9 }
 0xbe9   :  { %v2716_v56 = vpop.f32.mrf.mxu1 }
 0xbea   :  { %v2717_v24 = vadd.f32 %v2716_v56, %v2675_v63 }
 0xbec   :  { %v2802_v3 = vmul.f32 %v2801_v32, %v2717_v24 }
 0xbed   :  { %4271 = vmatmul.msk.f32.gmra.mxu2 %vm401_vm13, %v2787_v47 }
 0xbee   :  { %v2684_v62 = vpop.f32.mrf.mxu3 }
 0xbf1   :  { %v2719_v45 = vpop.f32.mrf.mxu1 }
 0xbf2   :  { %v2720_v36 = vadd.f32 %v2719_v45, %v2678_v6 }
 0xbf4   :  { %v2817_v60 = vmul.f32 %v2816_v5, %v2720_v36 }
 0xbf5   :  { %4272 = vmatmul.msk.f32.gmra.mxu2 %vm401_vm13, %v2802_v3 }
 0xbf9   :  { %v2722_v35 = vpop.f32.mrf.mxu1 }
 0xbfa   :  { %v2723_v23 = vadd.f32 %v2722_v35, %v2681_v28 }
 0xbfc   :  { %v2832_v26 = vmul.f32 %v2831_v55, %v2723_v23 }
 0xbfd   :  { %4273 = vmatmul.msk.f32.gmra.mxu2 %vm401_vm13, %v2817_v60 }
 0xc01   :  { %v2725_v40 = vpop.f32.mrf.mxu1 }
 0xc02   :  { %v2726_v51 = vadd.f32 %v2725_v40, %v2684_v62 }
 0xc04   :  { %v2847_v37 = vmul.f32 %v2846_v43, %v2726_v51 }
 0xc05   :  { %4274 = vmatmul.msk.f32.gmra.mxu2 %vm401_vm13, %v2832_v26 }
 0xc0d   :  { %4275 = vmatmul.msk.f32.gmra.mxu2 %vm401_vm13, %v2847_v37 }
 0xc58   :  { %v2905_v12 = vpop.f32.mrf.mxu2 }
 0xc59   :  { %2937 = vrot.lane.b32.xlu0 %v2905_v12, %s4788_s12 }
 0xc60   :  { %v2908_v63 = vpop.f32.mrf.mxu2 }
 0xc61   :  { %2939 = vrot.lane.b32.xlu1 %v2908_v63, %s4788_s12 }
 0xc68   :  { %v2911_v25 = vpop.f32.mrf.mxu2 }
 0xc69   :  { %2941 = vrot.lane.b32.xlu0 %v2911_v25, %s4788_s12 }
 0xc70   :  { %v2914_v56 = vpop.f32.mrf.mxu2 }
 0xc71   :  { %2943 = vrot.lane.b32.xlu1 %v2914_v56, %s4788_s12 }
 0xc78   :  { %v2917_v39 = vpop.f32.mrf.mxu2 }
 0xc79   :  { %2945 = vrot.lane.b32.xlu2 %v2917_v39, %s4788_s12 }
 0xc80   :  { %v2920_v50 = vpop.f32.mrf.mxu2 }
 0xc81   :  { %2947 = vrot.lane.b32.xlu0 %v2920_v50, %s4788_s12 }
 0xc88   :  { %v2923_v1 = vpop.f32.mrf.mxu2 }
 0xc89   :  { %2949 = vrot.lane.b32.xlu2 %v2923_v1, %s4788_s12 }
 0xc90   :  { %v2926_v47 = vpop.f32.mrf.mxu2 }
 0xc91   :  { %2951 = vrot.lane.b32.xlu1 %v2926_v47, %s4788_s12 }
 0xccb   :  { %v2938_v22 = vpop.permute.xlu0 %2937 }
 0xccc   :  { %v2961_v15 = vadd.f32 %v2938_v22, %v6188_v19 }
 0xcce   :  { %2977 = vrot.lane.b32.xlu1 %v2961_v15, %s4787_s11 }
 0xcd3   :  { %v2940_v14 = vpop.permute.xlu1 %2939  ;;  %v2946_v20 = vpop.permute.xlu2 %2945 }
 0xcd4   :  { %v2962_v4 = vadd.f32 %v2940_v14, %v6199_v7  ;;  %v6811_v24 = vadd.f32 %v2946_v20, %v6214_v54 }
 0xcd6   :  { %2979 = vrot.lane.b32.xlu0 %v2962_v4, %s4787_s11  ;;  %2985 = vrot.lane.b32.xlu1 %v6811_v24, %s4787_s11 }
 0xcdb   :  { %v2942_v18 = vpop.permute.xlu0 %2941 }
 0xcdc   :  { %v2963_v57 = vadd.f32 %v2942_v18, %v6185_v34 }
 0xcde   :  { %2981 = vrot.lane.b32.xlu2 %v2963_v57, %s4787_s11 }
 0xce3   :  { %v2944_v19 = vpop.permute.xlu1 %2943  ;;  %v2950_v13 = vpop.permute.xlu2 %2949 }
 0xce4   :  { %v2964_v45 = vadd.f32 %v2944_v19, %v6205_v46  ;;  %v6820_v6 = vadd.f32 %v2950_v13, %v6297_v27 }
 0xce6   :  { %2983 = vrot.lane.b32.xlu0 %v2964_v45, %s4787_s11  ;;  %2989 = vrot.lane.b32.xlu1 %v6820_v6, %s4787_s11 }
 0xcf3   :  { %v2948_v7 = vpop.permute.xlu0 %2947 }
 0xcf4   :  { %v2966_v54 = vadd.f32 %v2948_v7, %v6279_v29 }
 0xcf6   :  { %2987 = vrot.lane.b32.xlu2 %v2966_v54, %s4787_s11 }
 0xd03   :  { %v2952_v34 = vpop.permute.xlu1 %2951 }
 0xd04   :  { %v6828_v32 = vadd.f32 %v2952_v34, %v6250_v2 }
 0xd06   :  { %2991 = vrot.lane.b32.xlu1 %v6828_v32, %s4787_s11 }
 0xd38   :  { %v2982_v46 = vpop.permute.xlu2 %2981 }
 0xd39   :  { %v3007_v27 = vsel %vm401_vm13, %v2982_v46, 0.0 }
 0xd3a   :  { %3008 = vadd.xlane.f32.xlu1 %v3007_v27 }
 0xd40   :  { %v2978_v10 = vpop.permute.xlu1 %2977 }
 0xd41   :  { %v3001_v3 = vsel %vm401_vm13, %v2978_v10, 0.0 }
 0xd42   :  { %3002 = vadd.xlane.f32.xlu0 %v3001_v3 }
 0xd48   :  { %v2980_v42 = vpop.permute.xlu0 %2979  ;;  %v2986_v58 = vpop.permute.xlu1 %2985 }
 0xd49   :  { %v3004_v29 = vsel %vm401_vm13, %v2980_v42, 0.0  ;;  %v3013_v41 = vsel %vm401_vm13, %v2986_v58, 0.0 }
 0xd4a   :  { %3005 = vadd.xlane.f32.xlu2 %v3004_v29 }
 0xd50   :  { %v2988_v11 = vpop.permute.xlu2 %2987 }
 0xd51   :  { %v3016_v36 = vsel %vm401_vm13, %v2988_v11, 0.0 }
 0xd52   :  { %3014 = vadd.xlane.f32.xlu2 %v3013_v41 }
 0xd58   :  { %v2984_v2 = vpop.permute.xlu0 %2983  ;;  %v2990_v30 = vpop.permute.xlu1 %2989 }
 0xd59   :  { %v3010_v17 = vsel %vm401_vm13, %v2984_v2, 0.0  ;;  %v3019_v33 = vsel %vm401_vm13, %v2990_v30, 0.0 }
 0xd5a   :  { %3011 = vadd.xlane.f32.xlu0 %v3010_v17 }
 0xd62   :  { %3017 = vadd.xlane.f32.xlu0 %v3016_v36 }
 0xd6a   :  { %3020 = vadd.xlane.f32.xlu0 %v3019_v33 }
 0xd78   :  { %v2992_v48 = vpop.permute.xlu1 %2991 }
 0xd79   :  { %v3022_v5 = vsel %vm401_vm13, %v2992_v48, 0.0 }
 0xd7a   :  { %3023 = vadd.xlane.f32.xlu0 %v3022_v5 }
 0xdad   :  { %v3009_v35 = vpop.xlane.xlu1 %3008 }
 0xdae   :  { %v3027_v31 = vmul.f32 %v3009_v35, %v6106_v52 }
 0xdb0   :  { %v6841_v60 = vsub.f32 %v2963_v57, %v3027_v31 }
 0xdb2   :  { %v3043_v53 = vmul.f32 %v6841_v60, %v6841_v60 }
 0xdb4   :  { %3061 = vrot.lane.b32.xlu0 %v3043_v53, %s4787_s11 }
 0xdb5   :  { %v3003_v28 = vpop.xlane.xlu0 %3002 }
 0xdb6   :  { %v3025_v44 = vmul.f32 %v3003_v28, %v6106_v52 }
 0xdb8   :  { %v6847_v0 = vsub.f32 %v2961_v15, %v3025_v44 }
 0xdba   :  { %v3041_v23 = vmul.f32 %v6847_v0, %v6847_v0 }
 0xdbc   :  { %3057 = vrot.lane.b32.xlu2 %v3041_v23, %s4787_s11 }
 0xdbd   :  { %v3006_v49 = vpop.xlane.xlu2 %3005 }
 0xdbe   :  { %v3026_v61 = vmul.f32 %v3006_v49, %v6106_v52 }
 0xdc0   :  { %v6853_v21 = vsub.f32 %v2962_v4, %v3026_v61 }
 0xdc2   :  { %v3042_v55 = vmul.f32 %v6853_v21, %v6853_v21 }
 0xdc4   :  { %3059 = vrot.lane.b32.xlu1 %v3042_v55, %s4787_s11 }
 0xdc5   :  { %v3015_v40 = vpop.xlane.xlu2 %3014 }
 0xdc6   :  { %v3029_v8 = vmul.f32 %v3015_v40, %v6106_v52 }
 0xdc8   :  { %v6866_v9 = vsub.f32 %v6811_v24, %v3029_v8 }
 0xdca   :  { %v3045_v37 = vmul.f32 %v6866_v9, %v6866_v9 }
 0xdcd   :  { %v3012_v26 = vpop.xlane.xlu0 %3011 }
 0xdce   :  { %v3028_v38 = vmul.f32 %v3012_v26, %v6106_v52 }
 0xdd0   :  { %v6859_v16 = vsub.f32 %v2964_v45, %v3028_v38 }
 0xdd2   :  { %v3044_v62 = vmul.f32 %v6859_v16, %v6859_v16 }
 0xdd4   :  { %3063 = vrot.lane.b32.xlu2 %v3044_v62, %s4787_s11 }
 0xdd5   :  { %v3018_v51 = vpop.xlane.xlu0 %3017 }
 0xdd6   :  { %v3030_v59 = vmul.f32 %v3018_v51, %v6106_v52 }
 0xdd8   :  { %v6869_v43 = vsub.f32 %v2966_v54, %v3030_v59 }
 0xdda   :  { %v3046_v12 = vmul.f32 %v6869_v43, %v6869_v43 }
 0xddc   :  { %3067 = vrot.lane.b32.xlu1 %v3046_v12, %s4787_s11  ;;  %3065 = vrot.lane.b32.xlu2 %v3045_v37, %s4787_s11 }
 0xddd   :  { %v3021_v63 = vpop.xlane.xlu0 %3020 }
 0xdde   :  { %v3031_v25 = vmul.f32 %v3021_v63, %v6106_v52 }
 0xde0   :  { %v6879_v56 = vsub.f32 %v6820_v6, %v3031_v25  ;;  %v6896_v6 = vld [vmem:[#allocation4] sm:$0xff] }
 0xde1   :  { %v3209_v7 = vperm.slane %v6896_v6, 1 }
 0xde2   :  { %v3047_v39 = vmul.f32 %v6879_v56, %v6879_v56 }
 0xde4   :  { %3069 = vrot.lane.b32.xlu0 %v3047_v39, %s4787_s11 }
 0xded   :  { %v3024_v50 = vpop.xlane.xlu0 %3023 }
 0xdee   :  { %v3032_v1 = vmul.f32 %v3024_v50, %v6106_v52 }
 0xdf0   :  { %v6886_v47 = vsub.f32 %v6828_v32, %v3032_v1 }
 0xdf2   :  { %v3048_v22 = vmul.f32 %v6886_v47, %v6886_v47 }
 0xdf4   :  { %3071 = vrot.lane.b32.xlu0 %v3048_v22, %s4787_s11 }
 0xe16   :  { %v3058_v15 = vpop.permute.xlu2 %3057 }
 0xe17   :  { %v3081_v14 = vsel %vm401_vm13, %v3058_v15, 0.0 }
 0xe18   :  { %3082 = vadd.xlane.f32.xlu2 %v3081_v14 }
 0xe26   :  { %v3062_v20 = vpop.permute.xlu0 %3061 }
 0xe27   :  { %v3087_v4 = vsel %vm401_vm13, %v3062_v20, 0.0 }
 0xe28   :  { %3088 = vadd.xlane.f32.xlu0 %v3087_v4 }
 0xe2e   :  { %v3064_v24 = vpop.permute.xlu2 %3063 }
 0xe2f   :  { %v3090_v18 = vsel %vm401_vm13, %v3064_v24, 0.0 }
 0xe30   :  { %3091 = vadd.xlane.f32.xlu2 %v3090_v18 }
 0xe36   :  { %v3066_v57 = vpop.permute.xlu2 %3065  ;;  %v3060_v19 = vpop.permute.xlu1 %3059 }
 0xe37   :  { %v3093_v13 = vsel %vm401_vm13, %v3066_v57, 0.0  ;;  %v3084_v45 = vsel %vm401_vm13, %v3060_v19, 0.0 }
 0xe38   :  { %3094 = vadd.xlane.f32.xlu0 %v3093_v13  ;;  %3085 = vadd.xlane.f32.xlu1 %v3084_v45 }
 0xe48   :  { %3222 = vrot.lane.b32.xlu2 %v3209_v7, %s4789_s13 }
 0xe4e   :  { %v3068_v54 = vpop.permute.xlu1 %3067 }
 0xe4f   :  { %v3096_v34 = vsel %vm401_vm13, %v3068_v54, 0.0 }
 0xe50   :  { %3097 = vadd.xlane.f32.xlu0 %v3096_v34 }
 0xe51   :  { %3211 = vrot.lane.b32.xlu1 %v3209_v7, %s4788_s12 }
 0xe56   :  { %v3070_v32 = vpop.permute.xlu0 %3069 }
 0xe57   :  { %v3099_v10 = vsel %vm401_vm13, %v3070_v32, 0.0 }
 0xe66   :  { %v3072_v46 = vpop.permute.xlu0 %3071 }
 0xe67   :  { %v3102_v27 = vsel %vm401_vm13, %v3072_v46, 0.0 }
 0xe71   :  { %3103 = vadd.xlane.f32.xlu2 %v3102_v27 }
 0xe7b   :  { %3100 = vadd.xlane.f32.xlu1 %v3099_v10 }
 0xe8b   :  { %v3083_v3 = vpop.xlane.xlu2 %3082 }
 0xe8c   :  { %v3105_v42 = vmul.f32 %v3083_v3, %v6106_v52 }
 0xe8e   :  { %v3113_v29 = vadd.f32 1e-05, %v3105_v42 }
 0xe90   :  { %4648 = vrsqrt.f32 %v3113_v29  ;;  %vm3127_vm2 = vweird.f32 %v3113_v29 }
 0xe96   :  { %v4649_v11 = vpop.eup %4648 }
 0xe97   :  { %v3122_v30 = vmul.f32 %v4649_v11, %v3113_v29  ;;  %vm3128_vm0 = vweird.f32 %v4649_v11 }
 0xe98   :  { %vm3129_vm3 = vmor %vm3127_vm2, %vm3128_vm0 }
 0xe99   :  { %v3123_v44 = vmul.f32 %v4649_v11, %v3122_v30 }
 0xe9b   :  { %v3089_v58 = vpop.xlane.xlu0 %3088  ;;  %v3124_v55 = vmul.f32 0.5, %v3123_v44 }
 0xe9c   :  { %v3107_v36 = vmul.f32 %v3089_v58, %v6106_v52 }
 0xe9d   :  { %v3125_v8 = vsub.f32 1.5, %v3124_v55 }
 0xe9e   :  { %v6907_v5 = vadd.f32 1e-05, %v3107_v36 }
 0xe9f   :  { %v3126_v12 = vmul.f32 %v4649_v11, %v3125_v8 }
 0xea0   :  { %vm3147_vm10 = vweird.f32 %v6907_v5 }
 0xea1   :  { %v3130_v22 = vsel %vm3129_vm3, %v4649_v11, %v3126_v12  ;;  %v365_v12 = vld [vmem:[%s7494_s4 + $0x30] sm:$0xff] }
 0xea2   :  { %v3201_v24 = vmul.f32 %v3130_v22, %v6847_v0 }
 0xea3   :  { %v3092_v41 = vpop.xlane.xlu2 %3091 }
 0xea4   :  { %v3108_v2 = vmul.f32 %v3092_v41, %v6106_v52 }
 0xea6   :  { %v3116_v17 = vadd.f32 1e-05, %v3108_v2 }
 0xea8   :  { %4650 = vrsqrt.f32 %v3116_v17  ;;  %vm3157_vm4 = vweird.f32 %v3116_v17 }
 0xea9   :  { %4652 = vrsqrt.f32 %v6907_v5 }
 0xeab   :  { %v3095_v33 = vpop.xlane.xlu0 %3094  ;;  %v3086_v48 = vpop.xlane.xlu1 %3085 }
 0xeac   :  { %v3106_v35 = vmul.f32 %v3086_v48, %v6106_v52  ;;  %v3109_v53 = vmul.f32 %v3095_v33, %v6106_v52  ;;  %v6924_v46 = vpop.permute.xlu2 %3222 }
 0xeae   :  { %v4651_v31 = vpop.eup %4650  ;;  %v3114_v28 = vadd.f32 1e-05, %v3106_v35  ;;  %v6912_v61 = vadd.f32 1e-05, %v3109_v53 }
 0xeaf   :  { %v3152_v23 = vmul.f32 %v4651_v31, %v3116_v17  ;;  %v4653_v38 = vpop.eup %4652  ;;  %vm3158_vm1 = vweird.f32 %v4651_v31 }
 0xeb0   :  { %4654 = vrsqrt.f32 %v3114_v28  ;;  %v3142_v59 = vmul.f32 %v4653_v38, %v6907_v5  ;;  %vm3159_vm5 = vmor %vm3157_vm4, %vm3158_vm1  ;;  %vm3137_vm7 = vweird.f32 %v3114_v28  ;;  %vm3148_vm9 = vweird.f32 %v4653_v38 }
 0xeb1   :  { %v3153_v49 = vmul.f32 %v4651_v31, %v3152_v23  ;;  %4656 = vrsqrt.f32 %v6912_v61  ;;  %vm3149_vm11 = vmor %vm3147_vm10, %vm3148_vm9  ;;  %vm3167_vm14 = vweird.f32 %v6912_v61  ;;  %vm3680_vm9 = vcmask 523264  }
 0xeb2   :  { %v3143_v50 = vmul.f32 %v4653_v38, %v3142_v59  ;;  %v373_v59 = vld [vmem:[%s7494_s4 + $0x70] sm:$0xff] }
 0xeb3   :  { %v3154_v26 = vmul.f32 0.5, %v3153_v49  ;;  %3286 = vmatpush.msra.mxu0 %v373_v59 }
 0xeb4   :  { %v3144_v4 = vmul.f32 0.5, %v3143_v50 }
 0xeb5   :  { %v3155_v62 = vsub.f32 1.5, %v3154_v26 }
 0xeb6   :  { %v4655_v40 = vpop.eup %4654  ;;  %v3145_v32 = vsub.f32 1.5, %v3144_v4 }
 0xeb7   :  { %v3132_v51 = vmul.f32 %v4655_v40, %v3114_v28  ;;  %v3156_v63 = vmul.f32 %v4651_v31, %v3155_v62  ;;  %v4657_v25 = vpop.eup %4656  ;;  %vm3138_vm6 = vweird.f32 %v4655_v40 }
 0xeb8   :  { %v3162_v14 = vmul.f32 %v4657_v25, %v6912_v61  ;;  %vm3139_vm8 = vmor %vm3137_vm7, %vm3138_vm6  ;;  %v3146_v42 = vmul.f32 %v4653_v38, %v3145_v32  ;;  %vm3168_vm12 = vweird.f32 %v4657_v25 }
 0xeb9   :  { %v3133_v37 = vmul.f32 %v4655_v40, %v3132_v51  ;;  %v3160_v15 = vsel %vm3159_vm5, %v4651_v31, %v3156_v63  ;;  %vm3169_vm15 = vmor %vm3167_vm14, %vm3168_vm12 }
 0xeba   :  { %v3204_v18 = vmul.f32 %v3160_v15, %v6859_v16  ;;  %v3163_v57 = vmul.f32 %v4657_v25, %v3162_v14  ;;  %v3150_v58 = vsel %vm3149_vm11, %v4653_v38, %v3146_v42 }
 0xebb   :  { %v3134_v39 = vmul.f32 0.5, %v3133_v37  ;;  %v3203_v36 = vmul.f32 %v3150_v58, %v6841_v60  ;;  %v369_v37 = vld [vmem:[%s7494_s4 + $0x50] sm:$0xff] }
 0xebc   :  { %v3164_v3 = vmul.f32 0.5, %v3163_v57  ;;  %3287 = vmatpush.msra.mxu0 %v369_v37 }
 0xebd   :  { %v3135_v1 = vsub.f32 1.5, %v3134_v39 }
 0xebe   :  { %3288 = vmatpush.msra.mxu0 %v365_v12 }
 0xebf   :  { %v3136_v20 = vmul.f32 %v4655_v40, %v3135_v1 }
 0xec1   :  { %v3140_v19 = vsel %vm3139_vm8, %v4655_v40, %v3136_v20 }
 0xec2   :  { %v3202_v27 = vmul.f32 %v3140_v19, %v6853_v21  ;;  %v3165_v21 = vsub.f32 1.5, %v3164_v3 }
 0xec3   :  { %v3098_v13 = vpop.xlane.xlu0 %3097  ;;  %v6919_v45 = vpop.permute.xlu1 %3211 }
 0xec4   :  { %v3110_v7 = vmul.f32 %v3098_v13, %v6106_v52  ;;  %v3217_v54 = vmul.f32 %v6919_v45, %v3204_v18  ;;  %v3214_v34 = vmul.f32 %v6919_v45, %v3201_v24  ;;  %v3215_v29 = vmul.f32 %v6919_v45, %v3202_v27 }
 0xec5   :  { %v3166_v17 = vmul.f32 %v4657_v25, %v3165_v21  ;;  %v3216_v33 = vmul.f32 %v6919_v45, %v3203_v36 }
 0xec6   :  { %v3118_v0 = vadd.f32 1e-05, %v3110_v7  ;;  %v6928_v16 = vadd.f32 %v6924_v46, %v3217_v54  ;;  %v6931_v10 = vadd.f32 %v6924_v46, %v3214_v34  ;;  %v6940_v2 = vadd.f32 %v6924_v46, %v3215_v29 }
 0xec7   :  { %v3170_v48 = vsel %vm3169_vm15, %v4657_v25, %v3166_v17  ;;  %v6949_v53 = vadd.f32 %v6924_v46, %v3216_v33  ;;  %v361_v25 = vld [vmem:[%s7494_s4 + $0x10] sm:$0xff]  ;;  %v7007_v29 = vperm.slane %v6896_v6, 3 }
 0xec8   :  { %4658 = vrsqrt.f32 %v3118_v0  ;;  %3248 = vrot.lane.b32.xlu1 %v6928_v16, %s4787_s11  ;;  %3242 = vrot.lane.b32.xlu0 %v6931_v10, %s4787_s11  ;;  %v3205_v31 = vmul.f32 %v3170_v48, %v6866_v9  ;;  %vm3177_vm1 = vweird.f32 %v3118_v0 }
 0xec9   :  { %3289 = vmatpush.msra.mxu0 %v361_v25 }
 0xeca   :  { %v3218_v23 = vmul.f32 %v6919_v45, %v3205_v31 }
 0xecc   :  { %v6960_v9 = vadd.f32 %v6924_v46, %v3218_v23 }
 0xece   :  { %v4659_v41 = vpop.eup %4658 }
 0xecf   :  { %v3172_v11 = vmul.f32 %v4659_v41, %v3118_v0  ;;  %vm3178_vm0 = vweird.f32 %v4659_v41 }
 0xed0   :  { %3244 = vrot.lane.b32.xlu0 %v6940_v2, %s4787_s11  ;;  %vm3179_vm2 = vmor %vm3177_vm1, %vm3178_vm0  ;;  %3676 = vrot.lane.b32.xlu1 %v369_v37, %s4789_s13 }
 0xed1   :  { %v3173_v30 = vmul.f32 %v4659_v41, %v3172_v11 }
 0xed3   :  { %v3174_v5 = vmul.f32 0.5, %v3173_v30 }
 0xed5   :  { %v3175_v35 = vsub.f32 1.5, %v3174_v5 }
 0xed7   :  { %v3176_v28 = vmul.f32 %v4659_v41, %v3175_v35 }
 0xed8   :  { %3246 = vrot.lane.b32.xlu0 %v6949_v53, %s4787_s11 }
 0xed9   :  { %v3180_v60 = vsel %vm3179_vm2, %v4659_v41, %v3176_v28 }
 0xeda   :  { %v3206_v44 = vmul.f32 %v3180_v60, %v6869_v43 }
 0xedc   :  { %v3219_v49 = vmul.f32 %v6919_v45, %v3206_v44 }
 0xede   :  { %v6957_v61 = vadd.f32 %v6924_v46, %v3219_v49 }
 0xee0   :  { %3252 = vrot.lane.b32.xlu2 %v6957_v61, %s4787_s11  ;;  %3250 = vrot.lane.b32.xlu0 %v6960_v9, %s4787_s11 }
 0xee4   :  { %v3104_v55 = vpop.xlane.xlu2 %3103 }
 0xee5   :  { %v3112_v26 = vmul.f32 %v3104_v55, %v6106_v52 }
 0xee7   :  { %v3120_v43 = vadd.f32 1e-05, %v3112_v26 }
 0xee8   :  { %3674 = vrot.lane.b32.xlu2 %v365_v12, %s4789_s13 }
 0xee9   :  { %4660 = vrsqrt.f32 %v3120_v43  ;;  %vm3197_vm7 = vweird.f32 %v3120_v43 }
 0xeee   :  { %v3101_v38 = vpop.xlane.xlu1 %3100 }
 0xeef   :  { %v4661_v40 = vpop.eup %4660  ;;  %v3111_v8 = vmul.f32 %v3101_v38, %v6106_v52 }
 0xef0   :  { %v3192_v51 = vmul.f32 %v4661_v40, %v3120_v43  ;;  %vm3198_vm4 = vweird.f32 %v4661_v40 }
 0xef1   :  { %v3119_v62 = vadd.f32 1e-05, %v3111_v8  ;;  %vm3199_vm8 = vmor %vm3197_vm7, %vm3198_vm4 }
 0xef2   :  { %v3193_v63 = vmul.f32 %v4661_v40, %v3192_v51 }
 0xef3   :  { %4662 = vrsqrt.f32 %v3119_v62  ;;  %vm3187_vm5 = vweird.f32 %v3119_v62 }
 0xef4   :  { %v3194_v50 = vmul.f32 0.5, %v3193_v63 }
 0xef6   :  { %v3195_v15 = vsub.f32 1.5, %v3194_v50 }
 0xef8   :  { %v3196_v4 = vmul.f32 %v4661_v40, %v3195_v15 }
 0xef9   :  { %v4663_v39 = vpop.eup %4662 }
 0xefa   :  { %v3182_v1 = vmul.f32 %v4663_v39, %v3119_v62  ;;  %vm3188_vm3 = vweird.f32 %v4663_v39  ;;  %v3200_v19 = vsel %vm3199_vm8, %v4661_v40, %v3196_v4 }
 0xefb   :  { %vm3189_vm6 = vmor %vm3187_vm5, %vm3188_vm3  ;;  %v3208_v7 = vmul.f32 %v3200_v19, %v6886_v47 }
 0xefc   :  { %v3183_v22 = vmul.f32 %v4663_v39, %v3182_v1 }
 0xefd   :  { %v3221_v34 = vmul.f32 %v6919_v45, %v3208_v7 }
 0xefe   :  { %v3184_v14 = vmul.f32 0.5, %v3183_v22 }
 0xeff   :  { %v6992_v32 = vadd.f32 %v6924_v46, %v3221_v34 }
 0xf00   :  { %v3185_v20 = vsub.f32 1.5, %v3184_v14 }
 0xf02   :  { %v3186_v24 = vmul.f32 %v4663_v39, %v3185_v20 }
 0xf04   :  { %v3190_v18 = vsel %vm3189_vm6, %v4663_v39, %v3186_v24 }
 0xf05   :  { %v3207_v57 = vmul.f32 %v3190_v18, %v6879_v56 }
 0xf07   :  { %v3220_v13 = vmul.f32 %v6919_v45, %v3207_v57 }
 0xf09   :  { %v6986_v54 = vadd.f32 %v6924_v46, %v3220_v13 }
 0xf0b   :  { %3254 = vrot.lane.b32.xlu0 %v6986_v54, %s4787_s11 }
 0xf13   :  { %3256 = vrot.lane.b32.xlu0 %v6992_v32, %s4787_s11 }
 0xf1b   :  { %3678 = vrot.lane.b32.xlu0 %v373_v59, %s4789_s13 }
 0xf23   :  { %3672 = vrot.lane.b32.xlu0 %v361_v25, %s4789_s13 }
 0xf3a   :  { %v3243_v56 = vpop.permute.xlu0 %3242  ;;  %v3249_v45 = vpop.permute.xlu1 %3248 }
 0xf3b   :  { %4276 = vmatmul.msk.f32.vlgmr.msra.gmra.mxu0 %vm401_vm13, %v3243_v56  ;;  %v3253_v0 = vpop.permute.xlu2 %3252 }
 0xf42   :  { %v3245_v47 = vpop.permute.xlu0 %3244  ;;  %v3677_v15 = vpop.permute.xlu1 %3676 }
 0xf43   :  { %4277 = vmatmul.msk.f32.gmra.mxu0 %vm401_vm13, %v3245_v47 }
 0xf4a   :  { %v3247_v27 = vpop.permute.xlu0 %3246 }
 0xf4b   :  { %4278 = vmatmul.msk.f32.gmra.mxu0 %vm401_vm13, %v3247_v27 }
 0xf52   :  { %v3251_v46 = vpop.permute.xlu0 %3250 }
 0xf53   :  { %4279 = vmatmul.msk.f32.gmra.mxu0 %vm401_vm13, %v3249_v45  ;;  %v3675_v45 = vpop.permute.xlu2 %3674 }
 0xf5b   :  { %4280 = vmatmul.msk.f32.gmra.mxu0 %vm401_vm13, %v3251_v46 }
 0xf63   :  { %4281 = vmatmul.msk.f32.gmra.mxu0 %vm401_vm13, %v3253_v0 }
 0xf7d   :  { %v3255_v3 = vpop.permute.xlu0 %3254 }
 0xf7e   :  { %4282 = vmatmul.msk.f32.gmra.mxu0 %vm401_vm13, %v3255_v3 }
 0xf85   :  { %v3257_v42 = vpop.permute.xlu0 %3256 }
 0xf86   :  { %4283 = vmatmul.msk.f32.gmra.mxu0 %vm401_vm13, %v3257_v42 }
 0xf8d   :  { %v3679_v40 = vpop.permute.xlu0 %3678 }
 0xf8e   :  { %4292 = vmatpush.xpose.msk.msra.mxu3 %vm3680_vm9, %v3679_v40 }
 0xf92   :  { %4293 = vmatpush.xpose.msk.msra.mxu3 %vm3680_vm9, %v3677_v15 }
 0xf96   :  { %4294 = vmatpush.xpose.msk.msra.mxu3 %vm3680_vm9, %v3675_v45 }
 0xfb8   :  { %v3291_v21 = vpop.f32.mrf.mxu0 }
 0xfb9   :  { %v7010_v58 = vadd.f32 %v3291_v21, %v7007_v29 }
 0xfbb   :  { %v7013_v41 = vmul.f32 0.70710677, %v7010_v58 }
 0xfbd   :  { %v3331_v17 = vmul.f32 %v7013_v41, %v7013_v41 }
 0xfbf   :  { %v7017_v11 = vmin.f32 %v3331_v17, 16.0 }
 0xfc0   :  { %v3294_v36 = vpop.f32.mrf.mxu0 }
 0xfc1   :  { %v3333_v30 = vmul.f32 2.1237322e-06, %v7017_v11  ;;  %v3344_v33 = vmul.f32 3.8918573e-05, %v7017_v11  ;;  %v7022_v6 = vadd.f32 %v3294_v36, %v7007_v29 }
 0xfc3   :  { %v3334_v48 = vadd.f32 0.00028619796, %v3333_v30  ;;  %v3345_v5 = vadd.f32 0.001143296, %v3344_v33  ;;  %v7025_v35 = vmul.f32 0.70710677, %v7022_v6 }
 0xfc5   :  { %v3335_v31 = vmul.f32 %v3334_v48, %v7017_v11  ;;  %v3346_v28 = vmul.f32 %v3345_v5, %v7017_v11  ;;  %v3371_v60 = vmul.f32 %v7025_v35, %v7025_v35  ;;  %v3673_v48 = vpop.permute.xlu0 %3672 }
 0xfc6   :  { %4295 = vmatpush.xpose.msk.msra.mxu3 %vm3680_vm9, %v3673_v48 }
 0xfc7   :  { %v3336_v44 = vadd.f32 0.0036580483, %v3335_v31  ;;  %v3347_v23 = vadd.f32 0.014752088, %v3346_v28  ;;  %v7031_v49 = vmin.f32 %v3371_v60, 16.0 }
 0xfc8   :  { %v3297_v55 = vpop.f32.mrf.mxu0 }
 0xfc9   :  { %v3337_v26 = vmul.f32 %v3336_v44, %v7017_v11  ;;  %v3348_v43 = vmul.f32 %v3347_v23, %v7017_v11  ;;  %v7036_v38 = vadd.f32 %v3297_v55, %v7007_v29  ;;  %v3373_v8 = vmul.f32 2.1237322e-06, %v7031_v49 }
 0xfca   :  { %v3384_v62 = vmul.f32 3.8918573e-05, %v7031_v49 }
 0xfcb   :  { %v3349_v51 = vadd.f32 0.112945676, %v3348_v43  ;;  %v3374_v59 = vadd.f32 0.00028619796, %v3373_v8  ;;  %v7042_v12 = vmul.f32 0.70710677, %v7036_v38 }
 0xfcc   :  { %v3385_v37 = vadd.f32 0.001143296, %v3384_v62  ;;  %v3338_v63 = vadd.f32 0.05243302, %v3337_v26 }
 0xfcd   :  { %v3350_v25 = vmul.f32 %v3349_v51, %v7017_v11  ;;  %v3375_v39 = vmul.f32 %v3374_v59, %v7031_v49  ;;  %v3411_v1 = vmul.f32 %v7042_v12, %v7042_v12 }
 0xfce   :  { %v3386_v50 = vmul.f32 %v3385_v37, %v7031_v49  ;;  %v3339_v18 = vmul.f32 %v3338_v63, %v7017_v11 }
 0xfcf   :  { %v3351_v22 = vadd.f32 0.4994258, %v3350_v25  ;;  %v3376_v14 = vadd.f32 0.0036580483, %v3375_v39  ;;  %v7049_v4 = vmin.f32 %v3411_v1, 16.0 }
 0xfd0   :  { %v3387_v20 = vadd.f32 0.014752088, %v3386_v50  ;;  %v3300_v24 = vpop.f32.mrf.mxu0  ;;  %v3340_v42 = vadd.f32 0.18741608, %v3339_v18 }
 0xfd1   :  { %v3352_v57 = vmul.f32 %v3351_v22, %v7017_v11  ;;  %v7055_v19 = vadd.f32 %v3300_v24, %v7007_v29  ;;  %v3377_v13 = vmul.f32 %v3376_v14, %v7031_v49  ;;  %v3413_v34 = vmul.f32 2.1237322e-06, %v7049_v4 }
 0xfd2   :  { %v3388_v7 = vmul.f32 %v3387_v20, %v7031_v49  ;;  %v3424_v47 = vmul.f32 3.8918573e-05, %v7049_v4  ;;  %v3341_v31 = vmul.f32 %v3340_v42, %v7017_v11 }
 0xfd3   :  { %v3353_v56 = vadd.f32 1.0, %v3352_v57  ;;  %v7062_v27 = vmul.f32 0.70710677, %v7055_v19  ;;  %v3378_v46 = vadd.f32 0.05243302, %v3377_v13 }
 0xfd4   :  { %v3389_v0 = vadd.f32 0.112945676, %v3388_v7  ;;  %v3414_v3 = vadd.f32 0.00028619796, %v3413_v34  ;;  %v3425_v30 = vadd.f32 0.001143296, %v3424_v47 }
 0xfd5   :  { %4664 = vrcp.f32 %v3353_v56  ;;  %v3379_v21 = vmul.f32 %v3378_v46, %v7031_v49  ;;  %v3451_v33 = vmul.f32 %v7062_v27, %v7062_v27  ;;  %v3342_v11 = vadd.f32 1.1283791, %v3341_v31 }
 0xfd6   :  { %v3390_v17 = vmul.f32 %v3389_v0, %v7031_v49  ;;  %v3415_v36 = vmul.f32 %v3414_v3, %v7049_v4  ;;  %v3426_v60 = vmul.f32 %v3425_v30, %v7049_v4  ;;  %v3363_v1 = vand.u32 2147483647, %v3353_v56 }
 0xfd7   :  { %v7073_v44 = vmin.f32 %v3451_v33, 16.0  ;;  %v3380_v55 = vadd.f32 0.18741608, %v3379_v21  ;;  %v3365_v15 = vand.u32 2147483648, %v3353_v56  ;;  %v3315_v7 = vmul.f32 0.5, %v7010_v58 }
 0xfd8   :  { %v3391_v5 = vadd.f32 0.4994258, %v3390_v17  ;;  %v3416_v28 = vadd.f32 0.0036580483, %v3415_v36  ;;  %v3303_v23 = vpop.f32.mrf.mxu0  ;;  %v3427_v8 = vadd.f32 0.014752088, %v3426_v60  ;;  %v3343_v34 = vmul.f32 %v3342_v11, %v7013_v41 }
 0xfd9   :  { %v3453_v62 = vmul.f32 2.1237322e-06, %v7073_v44  ;;  %v3464_v51 = vmul.f32 3.8918573e-05, %v7073_v44  ;;  %v7084_v22 = vadd.f32 %v3303_v23, %v7007_v29  ;;  %v3381_v14 = vmul.f32 %v3380_v55, %v7031_v49 }
 0xfda   :  { %v3392_v26 = vmul.f32 %v3391_v5, %v7031_v49  ;;  %v3417_v40 = vmul.f32 %v3416_v28, %v7049_v4  ;;  %v3428_v63 = vmul.f32 %v3427_v8, %v7049_v4  ;;  %vm3359_vm11 = vweird.f32 %v3353_v56 }
 0xfdb   :  { %v4665_v43 = vpop.eup %4664  ;;  %v3454_v25 = vadd.f32 0.00028619796, %v3453_v62  ;;  %v3465_v39 = vadd.f32 0.001143296, %v3464_v51  ;;  %v7093_v49 = vmul.f32 0.70710677, %v7084_v22 }
 0xfdc   :  { %v3355_v59 = vmul.f32 %v4665_v43, %v3353_v56  ;;  %v7079_v37 = vadd.f32 1.0, %v3392_v26  ;;  %v3418_v20 = vadd.f32 0.05243302, %v3417_v40  ;;  %v3429_v24 = vadd.f32 0.112945676, %v3428_v63 }
 0xfdd   :  { %vm3360_vm10 = vweird.f32 %v4665_v43  ;;  %v3455_v57 = vmul.f32 %v3454_v25, %v7073_v44  ;;  %v3466_v13 = vmul.f32 %v3465_v39, %v7073_v44  ;;  %vm3364_vm14 = vcmp.eq.f32.partialorder %v3363_v1, 8.507059e+37 }
 0xfde   :  { %v3356_v50 = vsub.f32 1.0, %v3355_v59  ;;  %4666 = vrcp.f32 %v7079_v37  ;;  %v3430_v47 = vmul.f32 %v3429_v24, %v7049_v4  ;;  %vm3361_vm12 = vmor %vm3359_vm11, %vm3360_vm10  ;;  %v3366_v3 = vor.u32 1.1754944e-38, %v3365_v15 }
 0xfdf   :  { %v3456_v46 = vadd.f32 0.0036580483, %v3455_v57  ;;  %v3467_v0 = vadd.f32 0.014752088, %v3466_v13  ;;  %v3419_v42 = vmul.f32 %v3418_v20, %v7049_v4  ;;  %v3382_v30 = vadd.f32 1.1283791, %v3381_v14 }
 0xfe0   :  { %v3357_v18 = vmul.f32 %v4665_v43, %v3356_v50  ;;  %v3431_v21 = vadd.f32 0.4994258, %v3430_v47  ;;  %v3306_v17 = vpop.f32.mrf.mxu0  ;;  %v3491_v56 = vmul.f32 %v7093_v49, %v7093_v49  ;;  %v3403_v5 = vand.u32 2147483647, %v7079_v37 }
 0xfe1   :  { %v3468_v41 = vmul.f32 %v3467_v0, %v7073_v44  ;;  %v3457_v31 = vmul.f32 %v3456_v46, %v7073_v44  ;;  %v7104_v55 = vadd.f32 %v3306_v17, %v7007_v29  ;;  %v3420_v40 = vadd.f32 0.18741608, %v3419_v42 }
 0xfe2   :  { %v3358_v45 = vadd.f32 %v4665_v43, %v3357_v18  ;;  %v3432_v60 = vmul.f32 %v3431_v21, %v7049_v4  ;;  %v7107_v8 = vmin.f32 %v3491_v56, 16.0  ;;  %v3383_v1 = vmul.f32 %v3382_v30, %v7025_v35 }
 0xfe3   :  { %v3469_v23 = vadd.f32 0.112945676, %v3468_v41  ;;  %v3458_v63 = vadd.f32 0.05243302, %v3457_v31  ;;  %v7117_v15 = vmul.f32 0.70710677, %v7104_v55  ;;  %vm3399_vm0 = vweird.f32 %v7079_v37 }
 0xfe4   :  { %v4667_v36 = vpop.eup %4666  ;;  %v3362_v58 = vsel %vm3361_vm12, %v4665_v43, %v3358_v45  ;;  %v3405_v43 = vand.u32 2147483648, %v7079_v37  ;;  %v7109_v51 = vadd.f32 1.0, %v3432_v60  ;;  %v3493_v25 = vmul.f32 2.1237322e-06, %v7107_v8 }
 0xfe5   :  { %v3367_v33 = vsel %vm3364_vm14, %v3366_v3, %v3362_v58  ;;  %v3395_v48 = vmul.f32 %v4667_v36, %v7079_v37  ;;  %vm3400_vm15 = vweird.f32 %v4667_v36  ;;  %v3470_v59 = vmul.f32 %v3469_v23, %v7073_v44 }
 0xfe6   :  { %v3368_v28 = vmul.f32 %v3367_v33, %v3343_v34  ;;  %v3504_v39 = vmul.f32 3.8918573e-05, %v7107_v8  ;;  %4668 = vrcp.f32 %v7109_v51  ;;  %vm3404_vm1 = vcmp.eq.f32.partialorder %v3403_v5, 8.507059e+37  ;;  %vm3401_vm2 = vmor %vm3399_vm0, %vm3400_vm15 }
 0xfe7   :  { %v3396_v26 = vsub.f32 1.0, %v3395_v48  ;;  %v3471_v20 = vadd.f32 0.4994258, %v3470_v59  ;;  %v3406_v18 = vor.u32 1.1754944e-38, %v3405_v43  ;;  %v3494_v57 = vadd.f32 0.00028619796, %v3493_v25 }
 0xfe8   :  { %v4284_v62 = vclamps-f32 %v3368_v28, 1.0  ;;  %v3505_v13 = vadd.f32 0.001143296, %v3504_v39  ;;  %v3421_v47 = vmul.f32 %v3420_v40, %v7049_v4  ;;  %v3459_v35 = vmul.f32 %v3458_v63, %v7073_v44 }
 0xfe9   :  { %v3397_v11 = vmul.f32 %v4667_v36, %v3396_v26  ;;  %v3472_v45 = vmul.f32 %v3471_v20, %v7073_v44  ;;  %v3495_v0 = vmul.f32 %v3494_v57, %v7107_v8  ;;  %v3316_v58 = vmul.f32 0.5, %v7022_v6 }
 0xfea   :  { %v3651_v50 = vadd.f32 1.0, %v4284_v62  ;;  %v3506_v37 = vmul.f32 %v3505_v13, %v7107_v8  ;;  %v3422_v56 = vadd.f32 1.1283791, %v3421_v47  ;;  %v3443_v33 = vand.u32 2147483647, %v7109_v51 }
 0xfeb   :  { %v3398_v14 = vadd.f32 %v4667_v36, %v3397_v11  ;;  %v7129_v42 = vadd.f32 1.0, %v3472_v45  ;;  %v3496_v17 = vadd.f32 0.0036580483, %v3495_v0  ;;  %v3460_v48 = vadd.f32 0.18741608, %v3459_v35 }
 0xfec   :  { %v3659_v24 = vmul.f32 %v3651_v50, %v3315_v7  ;;  %v3531_v7 = vmul.f32 %v7117_v15, %v7117_v15  ;;  %v4669_v21 = vpop.eup %4668  ;;  %v3507_v4 = vadd.f32 0.014752088, %v3506_v37  ;;  %v3445_v23 = vand.u32 2147483648, %v7109_v51 }
 0xfed   :  { %v3402_v34 = vsel %vm3401_vm2, %v4667_v36, %v3398_v14  ;;  %v3435_v41 = vmul.f32 %v4669_v21, %v7109_v51  ;;  %4670 = vrcp.f32 %v7129_v42  ;;  %v3497_v28 = vmul.f32 %v3496_v17, %v7107_v8 }
 0xfee   :  { %v3407_v46 = vsel %vm3404_vm1, %v3406_v18, %v3402_v34  ;;  %4296 = vmatmul.msk.f32.vlgmr.msra.gmra.mxu3 %vm3680_vm9, %v3659_v24  ;;  %v7131_v36 = vmin.f32 %v3531_v7, 16.0  ;;  %v3508_v60 = vmul.f32 %v3507_v4, %v7107_v8  ;;  %vm3440_vm3 = vweird.f32 %v4669_v21 }
 0xfef   :  { %v3408_v3 = vmul.f32 %v3407_v46, %v3383_v1  ;;  %v3436_v31 = vsub.f32 1.0, %v3435_v41  ;;  %vm3439_vm4 = vweird.f32 %v7109_v51  ;;  %v3461_v25 = vmul.f32 %v3460_v48, %v7073_v44 }
 0xff0   :  { %v3533_v26 = vmul.f32 2.1237322e-06, %v7131_v36  ;;  %v3544_v6 = vmul.f32 3.8918573e-05, %v7131_v36  ;;  %v3509_v62 = vadd.f32 0.112945676, %v3508_v60  ;;  %vm3441_vm5 = vmor %vm3439_vm4, %vm3440_vm3  ;;  %v3423_v51 = vmul.f32 %v3422_v56, %v7042_v12 }
 0xff1   :  { %v4285_v30 = vclamps-f32 %v3408_v3, 1.0  ;;  %v3437_v40 = vmul.f32 %v4669_v21, %v3436_v31  ;;  %v3498_v39 = vadd.f32 0.05243302, %v3497_v28  ;;  %v3317_v14 = vmul.f32 0.5, %v7036_v38 }
 0xff2   :  { %v3534_v59 = vadd.f32 0.00028619796, %v3533_v26  ;;  %v3545_v11 = vadd.f32 0.001143296, %v3544_v6  ;;  %v3510_v50 = vmul.f32 %v3509_v62, %v7107_v8  ;;  %v3446_v20 = vor.u32 1.1754944e-38, %v3445_v23 }
 0xff3   :  { %v3652_v5 = vadd.f32 1.0, %v4285_v30  ;;  %v3438_v63 = vadd.f32 %v4669_v21, %v3437_v40  ;;  %v4671_v1 = vpop.eup %4670  ;;  %vm3444_vm6 = vcmp.eq.f32.partialorder %v3443_v33, 8.507059e+37  ;;  %v3462_v46 = vadd.f32 1.1283791, %v3461_v25 }
 0xff4   :  { %v3535_v24 = vmul.f32 %v3534_v59, %v7131_v36  ;;  %v3546_v18 = vmul.f32 %v3545_v11, %v7131_v36  ;;  %v3475_v44 = vmul.f32 %v4671_v1, %v7129_v42  ;;  %v3511_v34 = vadd.f32 0.4994258, %v3510_v50 }
 0xff5   :  { %v3660_v43 = vmul.f32 %v3652_v5, %v3316_v58  ;;  %v3442_v57 = vsel %vm3441_vm5, %v4669_v21, %v3438_v63  ;;  %v3499_v38 = vmul.f32 %v3498_v39, %v7107_v8  ;;  %v3485_v7 = vand.u32 2147483648, %v7129_v42 }
 0xff6   :  { %v3447_v13 = vsel %vm3444_vm6, %v3446_v20, %v3442_v57  ;;  %v3536_v47 = vadd.f32 0.0036580483, %v3535_v24  ;;  %v3547_v35 = vadd.f32 0.014752088, %v3546_v18  ;;  %v3476_v0 = vsub.f32 1.0, %v3475_v44 }
 0xff7   :  { %4297 = vmatmul.msk.f32.gmra.mxu3 %vm3680_vm9, %v3660_v43  ;;  %v3448_v45 = vmul.f32 %v3447_v13, %v3423_v51  ;;  %v3512_v3 = vmul.f32 %v3511_v34, %v7107_v8  ;;  %vm3480_vm7 = vweird.f32 %v4671_v1  ;;  %v3483_v58 = vand.u32 2147483647, %v7129_v42 }
 0xff8   :  { %v3548_v12 = vmul.f32 %v3547_v35, %v7131_v36  ;;  %v3477_v4 = vmul.f32 %v4671_v1, %v3476_v0  ;;  %vm3479_vm8 = vweird.f32 %v7129_v42  ;;  %v3537_v41 = vmul.f32 %v3536_v47, %v7131_v36 }
 0xff9   :  { %v4286_v17 = vclamps-f32 %v3448_v45, 1.0  ;;  %v3513_v30 = vadd.f32 1.0, %v3512_v3  ;;  %v3500_v5 = vadd.f32 0.18741608, %v3499_v38  ;;  %v3463_v28 = vmul.f32 %v3462_v46, %v7062_v27  ;;  %vm3481_vm10 = vmor %vm3479_vm8, %vm3480_vm7 }
 0xffa   :  { %v3549_v56 = vadd.f32 0.112945676, %v3548_v12  ;;  %v3478_v48 = vadd.f32 %v4671_v1, %v3477_v4  ;;  %v3486_v60 = vor.u32 1.1754944e-38, %v3485_v7  ;;  %vm3484_vm11 = vcmp.eq.f32.partialorder %v3483_v58, 8.507059e+37 }
 0xffb   :  { %v3309_v37 = vpop.f32.mrf.mxu0  ;;  %v3653_v33 = vadd.f32 1.0, %v4286_v17  ;;  %4672 = vrcp.f32 %v3513_v30  ;;  %v3538_v43 = vadd.f32 0.05243302, %v3537_v41  ;;  %v3501_v59 = vmul.f32 %v3500_v5, %v7107_v8 }
 0xffc   :  { %v7156_v21 = vadd.f32 %v3309_v37, %v7007_v29  ;;  %v3482_v26 = vsel %vm3481_vm10, %v4671_v1, %v3478_v48  ;;  %v3550_v42 = vmul.f32 %v3549_v56, %v7131_v36  ;;  %v3318_v8 = vmul.f32 0.5, %v7055_v19 }
 0xffd   :  { %v3661_v23 = vmul.f32 %v3653_v33, %v3317_v14  ;;  %v3487_v6 = vsel %vm3484_vm11, %v3486_v60, %v3482_v26  ;;  %v3539_v14 = vmul.f32 %v3538_v43, %v7131_v36  ;;  %v3502_v51 = vadd.f32 1.1283791, %v3501_v59 }
 0xffe   :  { %v7162_v31 = vmul.f32 0.70710677, %v7156_v21  ;;  %v3488_v62 = vmul.f32 %v3487_v6, %v3463_v28  ;;  %v3551_v11 = vadd.f32 0.4994258, %v3550_v42  ;;  %v3525_v46 = vand.u32 2147483648, %v3513_v30 }
 0xfff   :  { %4298 = vmatmul.msk.f32.gmra.mxu3 %vm3680_vm9, %v3661_v23  ;;  %v3540_v0 = vadd.f32 0.18741608, %v3539_v14  ;;  %vm3519_vm14 = vweird.f32 %v3513_v30  ;;  %v3503_v4 = vmul.f32 %v3502_v51, %v7093_v49  ;;  %v3319_v23 = vmul.f32 0.5, %v7084_v22 }
0x1000   :  { %v3571_v40 = vmul.f32 %v7162_v31, %v7162_v31  ;;  %v4287_v25 = vclamps-f32 %v3488_v62, 1.0  ;;  %v3552_v39 = vmul.f32 %v3551_v11, %v7131_v36  ;;  %v3526_v58 = vor.u32 1.1754944e-38, %v3525_v46 }
0x1001   :  { %v4673_v1 = vpop.eup %4672  ;;  %v3541_v41 = vmul.f32 %v3540_v0, %v7131_v36 }
0x1002   :  { %v7170_v63 = vmin.f32 %v3571_v40, 16.0  ;;  %v3654_v18 = vadd.f32 1.0, %v4287_v25  ;;  %v3515_v57 = vmul.f32 %v4673_v1, %v3513_v30  ;;  %v7180_v44 = vadd.f32 1.0, %v3552_v39 }
0x1003   :  { %v3312_v27 = vpop.f32.mrf.mxu0  ;;  %vm3520_vm12 = vweird.f32 %v4673_v1  ;;  %v3542_v36 = vadd.f32 1.1283791, %v3541_v41 }
0x1004   :  { %v7174_v50 = vadd.f32 %v3312_v27, %v7007_v29  ;;  %v3573_v20 = vmul.f32 2.1237322e-06, %v7170_v63  ;;  %v3584_v24 = vmul.f32 3.8918573e-05, %v7170_v63  ;;  %v3662_v47 = vmul.f32 %v3654_v18, %v3318_v8  ;;  %vm3521_vm15 = vmor %vm3519_vm14, %vm3520_vm12 }
0x1005   :  { %v3516_v35 = vsub.f32 1.0, %v3515_v57  ;;  %v3523_v29 = vand.u32 2147483647, %v3513_v30  ;;  %4674 = vrcp.f32 %v7180_v44  ;;  %v3565_v11 = vand.u32 2147483648, %v7180_v44 }
0x1006   :  { %v3574_v13 = vadd.f32 0.00028619796, %v3573_v20  ;;  %v3585_v34 = vadd.f32 0.001143296, %v3584_v24  ;;  %v7183_v45 = vmul.f32 0.70710677, %v7174_v50  ;;  %vm3559_vm2 = vweird.f32 %v7180_v44 }
0x1007   :  { %v3517_v38 = vmul.f32 %v4673_v1, %v3516_v35  ;;  %4299 = vmatmul.msk.f32.gmra.mxu3 %vm3680_vm9, %v3662_v47  ;;  %vm3524_vm0 = vcmp.eq.f32.partialorder %v3523_v29, 8.507059e+37  ;;  %v3563_v14 = vand.u32 2147483647, %v7180_v44  ;;  %v3566_v57 = vor.u32 1.1754944e-38, %v3565_v11 }
0x1008   :  { %v3575_v19 = vmul.f32 %v3574_v13, %v7170_v63  ;;  %v3586_v37 = vmul.f32 %v3585_v34, %v7170_v63  ;;  %v3611_v7 = vmul.f32 %v7183_v45, %v7183_v45  ;;  %v3543_v35 = vmul.f32 %v3542_v36, %v7117_v15 }
0x1009   :  { %v3518_v3 = vadd.f32 %v4673_v1, %v3517_v38  ;;  %vm3564_vm4 = vcmp.eq.f32.partialorder %v3563_v14, 8.507059e+37 }
0x100a   :  { %v3587_v12 = vadd.f32 0.014752088, %v3586_v37  ;;  %v7191_v17 = vmin.f32 %v3611_v7, 16.0  ;;  %v3576_v33 = vadd.f32 0.0036580483, %v3575_v19 }
0x100b   :  { %v3522_v56 = vsel %vm3521_vm15, %v4673_v1, %v3518_v3  ;;  %v4675_v28 = vpop.eup %4674 }
0x100c   :  { %v3588_v48 = vmul.f32 %v3587_v12, %v7170_v63  ;;  %v3613_v5 = vmul.f32 2.1237322e-06, %v7191_v17  ;;  %v3527_v60 = vsel %vm3524_vm0, %v3526_v58, %v3522_v56  ;;  %v3624_v30 = vmul.f32 3.8918573e-05, %v7191_v17 }
0x100d   :  { %v3528_v26 = vmul.f32 %v3527_v60, %v3503_v4  ;;  %v3555_v49 = vmul.f32 %v4675_v28, %v7180_v44  ;;  %v3577_v59 = vmul.f32 %v3576_v33, %v7170_v63  ;;  %vm3560_vm1 = vweird.f32 %v4675_v28 }
0x100e   :  { %v3589_v42 = vadd.f32 0.112945676, %v3588_v48  ;;  %v3614_v6 = vadd.f32 0.00028619796, %v3613_v5  ;;  %v3625_v43 = vadd.f32 0.001143296, %v3624_v30  ;;  %vm3561_vm3 = vmor %vm3559_vm2, %vm3560_vm1 }
0x100f   :  { %v4288_v40 = vclamps-f32 %v3528_v26, 1.0  ;;  %v3556_v62 = vsub.f32 1.0, %v3555_v49  ;;  %v3578_v51 = vadd.f32 0.05243302, %v3577_v59  ;;  %v3320_v12 = vmul.f32 0.5, %v7104_v55 }
0x1010   :  { %v3590_v27 = vmul.f32 %v3589_v42, %v7170_v63  ;;  %v3615_v25 = vmul.f32 %v3614_v6, %v7191_v17  ;;  %v3626_v39 = vmul.f32 %v3625_v43, %v7191_v17 }
0x1011   :  { %v3655_v22 = vadd.f32 1.0, %v4288_v40  ;;  %v3557_v1 = vmul.f32 %v4675_v28, %v3556_v62  ;;  %v3579_v44 = vmul.f32 %v3578_v51, %v7170_v63 }
0x1012   :  { %v3591_v20 = vadd.f32 0.4994258, %v3590_v27  ;;  %v3627_v24 = vadd.f32 0.014752088, %v3626_v39  ;;  %v3616_v34 = vadd.f32 0.0036580483, %v3615_v25 }
0x1013   :  { %v3663_v8 = vmul.f32 %v3655_v22, %v3319_v23  ;;  %v3558_v18 = vadd.f32 %v4675_v28, %v3557_v1  ;;  %v3580_v15 = vadd.f32 0.18741608, %v3579_v44 }
0x1014   :  { %v3592_v13 = vmul.f32 %v3591_v20, %v7170_v63  ;;  %v3628_v47 = vmul.f32 %v3627_v24, %v7191_v17  ;;  %v3617_v37 = vmul.f32 %v3616_v34, %v7191_v17 }
0x1015   :  { %v3562_v29 = vsel %vm3561_vm3, %v4675_v28, %v3558_v18  ;;  %4300 = vmatmul.msk.f32.gmra.mxu3 %vm3680_vm9, %v3663_v8  ;;  %v3581_v5 = vmul.f32 %v3580_v15, %v7170_v63  ;;  %v3321_v8 = vmul.f32 0.5, %v7156_v21 }
0x1016   :  { %v3567_v46 = vsel %vm3564_vm4, %v3566_v57, %v3562_v29  ;;  %v3593_v0 = vadd.f32 1.0, %v3592_v13  ;;  %v3629_v38 = vadd.f32 0.112945676, %v3628_v47  ;;  %v3618_v41 = vadd.f32 0.05243302, %v3617_v37  ;;  %v7226_v37 = vld [vmem:[#allocation4] sm:$0xff] }
0x1017   :  { %v3568_v19 = vmul.f32 %v3567_v46, %v3543_v35  ;;  %v3582_v55 = vadd.f32 1.1283791, %v3581_v5  ;;  %v3322_v29 = vmul.f32 0.5, %v7174_v50 }
0x1018   :  { %4676 = vrcp.f32 %v3593_v0  ;;  %v3630_v3 = vmul.f32 %v3629_v38, %v7191_v17  ;;  %v3619_v30 = vmul.f32 %v3618_v41, %v7191_v17  ;;  %v3605_v26 = vand.u32 2147483648, %v3593_v0 }
0x1019   :  { %v4289_v7 = vclamps-f32 %v3568_v19, 1.0  ;;  %v3603_v42 = vand.u32 2147483647, %v3593_v0  ;;  %vm3599_vm6 = vweird.f32 %v3593_v0  ;;  %v3583_v63 = vmul.f32 %v3582_v55, %v7162_v31 }
0x101a   :  { %v3631_v58 = vadd.f32 0.4994258, %v3630_v3  ;;  %v3620_v6 = vadd.f32 0.18741608, %v3619_v30  ;;  %v3606_v40 = vor.u32 1.1754944e-38, %v3605_v26 }
0x101b   :  { %v3656_v4 = vadd.f32 1.0, %v4289_v7  ;;  %vm3604_vm8 = vcmp.eq.f32.partialorder %v3603_v42, 8.507059e+37 }
0x101c   :  { %v3632_v33 = vmul.f32 %v3631_v58, %v7191_v17  ;;  %v3621_v11 = vmul.f32 %v3620_v6, %v7191_v17 }
0x101d   :  { %v3664_v56 = vmul.f32 %v3656_v4, %v3320_v12 }
0x101e   :  { %v4677_v48 = vpop.eup %4676  ;;  %v3633_v60 = vadd.f32 1.0, %v3632_v33  ;;  %v3622_v14 = vadd.f32 1.1283791, %v3621_v11 }
0x101f   :  { %v3595_v28 = vmul.f32 %v4677_v48, %v3593_v0  ;;  %4301 = vmatmul.msk.f32.gmra.mxu3 %vm3680_vm9, %v3664_v56  ;;  %vm3600_vm5 = vweird.f32 %v4677_v48 }
0x1020   :  { %4678 = vrcp.f32 %v3633_v60  ;;  %vm3601_vm7 = vmor %vm3599_vm6, %vm3600_vm5  ;;  %v3645_v1 = vand.u32 2147483648, %v3633_v60  ;;  %v3643_v24 = vand.u32 2147483647, %v3633_v60  ;;  %vm3639_vm11 = vweird.f32 %v3633_v60 }
0x1021   :  { %v3596_v23 = vsub.f32 1.0, %v3595_v28  ;;  %v3623_v13 = vmul.f32 %v3622_v14, %v7183_v45  ;;  %v7229_v45 = vperm.slane %v7226_v37, 4 }
0x1022   :  { %v3646_v57 = vor.u32 1.1754944e-38, %v3645_v1  ;;  %vm3644_vm14 = vcmp.eq.f32.partialorder %v3643_v24, 8.507059e+37 }
0x1023   :  { %v3597_v49 = vmul.f32 %v4677_v48, %v3596_v23 }
0x1025   :  { %v3598_v43 = vadd.f32 %v4677_v48, %v3597_v49 }
0x1026   :  { %v4679_v36 = vpop.eup %4678 }
0x1027   :  { %v3602_v62 = vsel %vm3601_vm7, %v4677_v48, %v3598_v43  ;;  %v3635_v27 = vmul.f32 %v4679_v36, %v3633_v60  ;;  %vm3640_vm10 = vweird.f32 %v4679_v36 }
0x1028   :  { %v3607_v59 = vsel %vm3604_vm8, %v3606_v40, %v3602_v62  ;;  %vm3641_vm12 = vmor %vm3639_vm11, %vm3640_vm10 }
0x1029   :  { %v3608_v25 = vmul.f32 %v3607_v59, %v3583_v63  ;;  %v3636_v39 = vsub.f32 1.0, %v3635_v27 }
0x102b   :  { %v4290_v22 = vclamps-f32 %v3608_v25, 1.0  ;;  %v3637_v20 = vmul.f32 %v4679_v36, %v3636_v39 }
0x102d   :  { %v3657_v18 = vadd.f32 1.0, %v4290_v22  ;;  %v3638_v51 = vadd.f32 %v4679_v36, %v3637_v20 }
0x102f   :  { %v3665_v31 = vmul.f32 %v3657_v18, %v3321_v8  ;;  %v3642_v17 = vsel %vm3641_vm12, %v4679_v36, %v3638_v51 }
0x1030   :  { %v3647_v34 = vsel %vm3644_vm14, %v3646_v57, %v3642_v17 }
0x1031   :  { %4302 = vmatmul.msk.f32.gmra.mxu3 %vm3680_vm9, %v3665_v31  ;;  %v3648_v47 = vmul.f32 %v3647_v34, %v3623_v13 }
0x1033   :  { %v4291_v35 = vclamps-f32 %v3648_v47, 1.0 }
0x1035   :  { %v3658_v46 = vadd.f32 1.0, %v4291_v35 }
0x1037   :  { %v3666_v0 = vmul.f32 %v3658_v46, %v3322_v29 }
0x1039   :  { %4303 = vmatmul.msk.f32.gmra.mxu3 %vm3680_vm9, %v3666_v0 }
0x1071   :  { %v3730_v21 = vpop.f32.mrf.mxu3 }
0x1072   :  { %v3731_v48 = vadd.f32 %v3730_v21, %v7229_v45 }
0x107a   :  { %v3733_v38 = vpop.f32.mrf.mxu3 }
0x107b   :  { %v3734_v5 = vadd.f32 %v3733_v38, %v7229_v45 }
0x1082   :  { %v3736_v19 = vpop.f32.mrf.mxu3 }
0x1083   :  { %v3737_v4 = vadd.f32 %v3736_v19, %v7229_v45 }
0x108a   :  { %v3739_v44 = vpop.f32.mrf.mxu3 }
0x108b   :  { %v3740_v41 = vadd.f32 %v3739_v44, %v7229_v45 }
0x1098   :  { %v3742_v7 = vpop.f32.mrf.mxu3 }
0x1099   :  { %v3743_v3 = vadd.f32 %v3742_v7, %v7229_v45 }
0x109b   :  { %3770 = vrot.lane.b32.xlu1 %v3743_v3, %s4788_s12 }
0x10a2   :  { %v3745_v12 = vpop.f32.mrf.mxu3 }
0x10a3   :  { %v3746_v50 = vadd.f32 %v3745_v12, %v7229_v45 }
0x10a5   :  { %3772 = vrot.lane.b32.xlu0 %v3746_v50, %s4788_s12 }
0x10ad   :  { %3766 = vrot.lane.b32.xlu0 %v3737_v4, %s4788_s12 }
0x10b4   :  { %v3748_v15 = vpop.f32.mrf.mxu3 }
0x10b5   :  { %v3749_v58 = vadd.f32 %v3748_v15, %v7229_v45 }
0x10b7   :  { %3774 = vrot.lane.b32.xlu2 %v3749_v58, %s4788_s12 }
0x10bc   :  { %v3751_v56 = vpop.f32.mrf.mxu3 }
0x10bd   :  { %v3752_v33 = vadd.f32 %v3751_v56, %v7229_v45 }
0x10bf   :  { %3768 = vrot.lane.b32.xlu2 %v3740_v41, %s4788_s12  ;;  %3776 = vrot.lane.b32.xlu1 %v3752_v33, %s4788_s12 }
0x10c7   :  { %3762 = vrot.lane.b32.xlu2 %v3731_v48, %s4788_s12  ;;  %3764 = vrot.lane.b32.xlu1 %v3734_v5, %s4788_s12 }
0x110d   :  { %v3771_v6 = vpop.permute.xlu1 %3770 }
0x1111   :  { %v3775_v28 = vpop.permute.xlu2 %3774 }
0x1117   :  { %v3773_v60 = vpop.permute.xlu0 %3772 }
0x1118   :  { %v3791_v42 = vadd.f32 %v3773_v60, %v6957_v61  ;;  %v3790_v61 = vadd.f32 %v3771_v6, %v6960_v9 }
0x1119   :  { %v3769_v30 = vpop.permute.xlu2 %3768 }
0x111a   :  { %v3789_v43 = vadd.f32 %v3769_v30, %v6928_v16 }
0x111f   :  { %v3767_v23 = vpop.permute.xlu0 %3766 }
0x1120   :  { %v3788_v26 = vadd.f32 %v3767_v23, %v6949_v53  ;;  %v3792_v53 = vadd.f32 %v3775_v28, %v6986_v54 }
0x1121   :  { %v3763_v55 = vpop.permute.xlu2 %3762 }
0x1122   :  { %3806 = vrot.lane.b32.xlu2 %v3788_v26, %s4787_s11  ;;  %v7250_v49 = vadd.f32 %v3763_v55, %v6931_v10 }
0x1124   :  { %3802 = vrot.lane.b32.xlu1 %v7250_v49, %s4787_s11 }
0x112a   :  { %3812 = vrot.lane.b32.xlu2 %v3791_v42, %s4787_s11 }
0x112c   :  { %3808 = vrot.lane.b32.xlu1 %v3789_v43, %s4787_s11 }
0x1131   :  { %v3777_v40 = vpop.permute.xlu1 %3776 }
0x1132   :  { %v7268_v16 = vadd.f32 %v3777_v40, %v6992_v32 }
0x1134   :  { %3814 = vrot.lane.b32.xlu1 %v3792_v53, %s4787_s11 }
0x1139   :  { %v3765_v36 = vpop.permute.xlu1 %3764 }
0x113a   :  { %v7261_v10 = vadd.f32 %v3765_v36, %v6940_v2 }
0x113c   :  { %3804 = vrot.lane.b32.xlu0 %v7261_v10, %s4787_s11 }
0x1144   :  { %3810 = vrot.lane.b32.xlu0 %v3790_v61, %s4787_s11 }
0x114c   :  { %3816 = vrot.lane.b32.xlu0 %v7268_v16, %s4787_s11 }
0x117c   :  { %v3807_v54 = vpop.permute.xlu2 %3806 }
0x117d   :  { %v3832_v63 = vsel %vm401_vm13, %v3807_v54, 0.0 }
0x117e   :  { %3833 = vadd.xlane.f32.xlu1 %v3832_v63 }
0x1184   :  { %v3813_v62 = vpop.permute.xlu2 %3812 }
0x1185   :  { %v3841_v2 = vsel %vm401_vm13, %v3813_v62, 0.0 }
0x1186   :  { %3842 = vadd.xlane.f32.xlu1 %v3841_v2 }
0x1196   :  { %v3803_v59 = vpop.permute.xlu1 %3802 }
0x1197   :  { %v3826_v25 = vsel %vm401_vm13, %v3803_v59, 0.0 }
0x119e   :  { %v3809_v11 = vpop.permute.xlu1 %3808 }
0x119f   :  { %v3835_v9 = vsel %vm401_vm13, %v3809_v11, 0.0 }
0x11a0   :  { %3836 = vadd.xlane.f32.xlu0 %v3835_v9 }
0x11a6   :  { %v3815_v27 = vpop.permute.xlu1 %3814 }
0x11a7   :  { %v3844_v32 = vsel %vm401_vm13, %v3815_v27, 0.0 }
0x11a8   :  { %3845 = vadd.xlane.f32.xlu0 %v3844_v32 }
0x11ae   :  { %v3805_v39 = vpop.permute.xlu0 %3804 }
0x11af   :  { %v3829_v24 = vsel %vm401_vm13, %v3805_v39, 0.0 }
0x11b0   :  { %3827 = vadd.xlane.f32.xlu0 %v3826_v25 }
0x11b6   :  { %v3811_v22 = vpop.permute.xlu0 %3810 }
0x11b7   :  { %v3838_v1 = vsel %vm401_vm13, %v3811_v22, 0.0 }
0x11b8   :  { %3839 = vadd.xlane.f32.xlu2 %v3838_v1 }
0x11be   :  { %v3817_v14 = vpop.permute.xlu0 %3816 }
0x11bf   :  { %v3847_v20 = vsel %vm401_vm13, %v3817_v14, 0.0 }
0x11c0   :  { %3848 = vadd.xlane.f32.xlu2 %v3847_v20 }
0x11c8   :  { %3830 = vadd.xlane.f32.xlu2 %v3829_v24 }
0x11f1   :  { %v3834_v8 = vpop.xlane.xlu1 %3833 }
0x11f2   :  { %v3852_v57 = vmul.f32 %v3834_v8, %v6106_v52 }
0x11f4   :  { %v7287_v17 = vsub.f32 %v3788_v26, %v3852_v57 }
0x11f6   :  { %v3868_v34 = vmul.f32 %v7287_v17, %v7287_v17 }
0x11f9   :  { %v3843_v18 = vpop.xlane.xlu1 %3842 }
0x11fa   :  { %v3855_v51 = vmul.f32 %v3843_v18, %v6106_v52 }
0x11fc   :  { %v7281_v31 = vsub.f32 %v3791_v42, %v3855_v51 }
0x11fe   :  { %v3871_v13 = vmul.f32 %v7281_v31, %v7281_v31 }
0x1200   :  { %3892 = vrot.lane.b32.xlu0 %v3871_v13, %s4787_s11 }
0x1208   :  { %3886 = vrot.lane.b32.xlu0 %v3868_v34, %s4787_s11 }
0x1213   :  { %v3837_v47 = vpop.xlane.xlu0 %3836 }
0x1214   :  { %v3853_v0 = vmul.f32 %v3837_v47, %v6106_v52 }
0x1216   :  { %v7299_v38 = vsub.f32 %v3789_v43, %v3853_v0 }
0x1218   :  { %v3869_v44 = vmul.f32 %v7299_v38, %v7299_v38 }
0x121b   :  { %v3846_v35 = vpop.xlane.xlu0 %3845 }
0x121c   :  { %v3856_v29 = vmul.f32 %v3846_v35, %v6106_v52 }
0x121e   :  { %v7293_v46 = vsub.f32 %v3792_v53, %v3856_v29 }
0x1220   :  { %v3872_v21 = vmul.f32 %v7293_v46, %v7293_v46 }
0x1222   :  { %3894 = vrot.lane.b32.xlu2 %v3872_v21, %s4787_s11 }
0x1223   :  { %v3828_v19 = vpop.xlane.xlu0 %3827 }
0x1224   :  { %v3850_v7 = vmul.f32 %v3828_v19, %v6106_v52 }
0x1226   :  { %v7306_v3 = vsub.f32 %v7250_v49, %v3850_v7 }
0x1228   :  { %v3866_v15 = vmul.f32 %v7306_v3, %v7306_v3 }
0x122a   :  { %3888 = vrot.lane.b32.xlu2 %v3869_v44, %s4787_s11 }
0x122b   :  { %v3840_v12 = vpop.xlane.xlu2 %3839 }
0x122c   :  { %v3854_v50 = vmul.f32 %v3840_v12, %v6106_v52 }
0x122e   :  { %v7309_v4 = vsub.f32 %v3790_v61, %v3854_v50 }
0x1230   :  { %v3870_v58 = vmul.f32 %v7309_v4, %v7309_v4 }
0x1232   :  { %3882 = vrot.lane.b32.xlu2 %v3866_v15, %s4787_s11  ;;  %3890 = vrot.lane.b32.xlu1 %v3870_v58, %s4787_s11 }
0x1233   :  { %v3849_v41 = vpop.xlane.xlu2 %3848 }
0x1234   :  { %v3857_v5 = vmul.f32 %v3849_v41, %v6106_v52 }
0x1236   :  { %v7326_v60 = vsub.f32 %v7268_v16, %v3857_v5 }
0x1238   :  { %v3873_v30 = vmul.f32 %v7326_v60, %v7326_v60 }
0x123b   :  { %v3831_v56 = vpop.xlane.xlu2 %3830 }
0x123c   :  { %v3851_v33 = vmul.f32 %v3831_v56, %v6106_v52 }
0x123e   :  { %v7319_v48 = vsub.f32 %v7261_v10, %v3851_v33  ;;  %v4034_v10 = vperm.slane %v7226_v37, 2 }
0x1240   :  { %v3867_v28 = vmul.f32 %v7319_v48, %v7319_v48 }
0x1242   :  { %3884 = vrot.lane.b32.xlu1 %v3867_v28, %s4787_s11 }
0x124a   :  { %3896 = vrot.lane.b32.xlu1 %v3873_v30, %s4787_s11 }
0x1272   :  { %v3893_v23 = vpop.permute.xlu0 %3892 }
0x1273   :  { %v3921_v26 = vsel %vm401_vm13, %v3893_v23, 0.0 }
0x1274   :  { %3922 = vadd.xlane.f32.xlu2 %v3921_v26 }
0x127a   :  { %v3887_v55 = vpop.permute.xlu0 %3886 }
0x127b   :  { %v3912_v49 = vsel %vm401_vm13, %v3887_v55, 0.0 }
0x127c   :  { %3913 = vadd.xlane.f32.xlu1 %v3912_v49  ;;  %v3895_v42 = vpop.permute.xlu2 %3894 }
0x127d   :  { %v3924_v6 = vsel %vm401_vm13, %v3895_v42, 0.0 }
0x1284   :  { %3925 = vadd.xlane.f32.xlu1 %v3924_v6  ;;  %v3889_v43 = vpop.permute.xlu2 %3888 }
0x1285   :  { %v3915_v53 = vsel %vm401_vm13, %v3889_v43, 0.0 }
0x1286   :  { %3916 = vadd.xlane.f32.xlu2 %v3915_v53 }
0x128c   :  { %v3883_v40 = vpop.permute.xlu2 %3882 }
0x128d   :  { %v3906_v36 = vsel %vm401_vm13, %v3883_v40, 0.0 }
0x128e   :  { %3907 = vadd.xlane.f32.xlu2 %v3906_v36 }
0x129d   :  { %4036 = vrot.lane.b32.xlu1 %v4034_v10, %s4788_s12 }
0x12a4   :  { %v3891_v61 = vpop.permute.xlu1 %3890 }
0x12a5   :  { %v3918_v16 = vsel %vm401_vm13, %v3891_v61, 0.0 }
0x12a6   :  { %3919 = vadd.xlane.f32.xlu0 %v3918_v16 }
0x12b4   :  { %v3885_v54 = vpop.permute.xlu1 %3884 }
0x12b5   :  { %v3909_v63 = vsel %vm401_vm13, %v3885_v54, 0.0 }
0x12b6   :  { %3910 = vadd.xlane.f32.xlu0 %v3909_v63 }
0x12bc   :  { %v3897_v62 = vpop.permute.xlu1 %3896 }
0x12bd   :  { %v3927_v2 = vsel %vm401_vm13, %v3897_v62, 0.0 }
0x12be   :  { %3928 = vadd.xlane.f32.xlu0 %v3927_v2 }
0x12d2   :  { %4047 = vrot.lane.b32.xlu0 %v4034_v10, %s4789_s13 }
0x12e7   :  { %v3923_v59 = vpop.xlane.xlu2 %3922 }
0x12e8   :  { %v3935_v37 = vmul.f32 %v3923_v59, %v6106_v52 }
0x12ea   :  { %v7345_v25 = vadd.f32 1e-05, %v3935_v37 }
0x12ec   :  { %4680 = vrsqrt.f32 %v7345_v25  ;;  %vm4002_vm0 = vweird.f32 %v7345_v25 }
0x12ef   :  { %v3914_v9 = vpop.xlane.xlu1 %3913 }
0x12f0   :  { %v3932_v27 = vmul.f32 %v3914_v9, %v6106_v52 }
0x12f2   :  { %v7347_v1 = vadd.f32 1e-05, %v3932_v27  ;;  %v7364_v34 = vpop.eup %4680 }
0x12f3   :  { %v3997_v0 = vmul.f32 %v7364_v34, %v7345_v25  ;;  %vm4003_vm15 = vweird.f32 %v7364_v34 }
0x12f4   :  { %4682 = vrsqrt.f32 %v7347_v1  ;;  %vm3972_vm2 = vweird.f32 %v7347_v1  ;;  %vm7409_vm4 = vmor %vm4002_vm0, %vm4003_vm15 }
0x12f5   :  { %v3998_v58 = vmul.f32 %v7364_v34, %v3997_v0 }
0x12f7   :  { %v3926_v14 = vpop.xlane.xlu1 %3925  ;;  %v3999_v23 = vmul.f32 0.5, %v3998_v58 }
0x12f8   :  { %v3936_v51 = vmul.f32 %v3926_v14, %v6106_v52 }
0x12f9   :  { %v3917_v11 = vpop.xlane.xlu2 %3916  ;;  %v4000_v40 = vsub.f32 1.5, %v3999_v23 }
0x12fa   :  { %v3933_v32 = vmul.f32 %v3917_v11, %v6106_v52  ;;  %v7362_v13 = vadd.f32 1e-05, %v3936_v51  ;;  %v7366_v47 = vpop.eup %4682 }
0x12fb   :  { %v3967_v21 = vmul.f32 %v7366_v47, %v7347_v1  ;;  %v4001_v59 = vmul.f32 %v7364_v34, %v4000_v40  ;;  %vm3973_vm1 = vweird.f32 %v7366_v47 }
0x12fc   :  { %v7350_v24 = vadd.f32 1e-05, %v3933_v32  ;;  %vm7415_vm6 = vmor %vm3972_vm2, %vm3973_vm1  ;;  %vm4012_vm1 = vweird.f32 %v7362_v13 }
0x12fd   :  { %v3968_v41 = vmul.f32 %v7366_v47, %v3967_v21  ;;  %v4005_v1 = vsel %vm7409_vm4, %v7364_v34, %v4001_v59 }
0x12fe   :  { %vm3982_vm8 = vweird.f32 %v7350_v24 }
0x12ff   :  { %v3969_v26 = vmul.f32 0.5, %v3968_v41 }
0x1301   :  { %v3908_v39 = vpop.xlane.xlu2 %3907  ;;  %v3970_v10 = vsub.f32 1.5, %v3969_v26 }
0x1302   :  { %v3930_v8 = vmul.f32 %v3908_v39, %v6106_v52 }
0x1303   :  { %v3971_v11 = vmul.f32 %v7366_v47, %v3970_v10 }
0x1304   :  { %v7360_v57 = vadd.f32 1e-05, %v3930_v8 }
0x1305   :  { %v3975_v51 = vsel %vm7415_vm6, %v7366_v47, %v3971_v11  ;;  %v366_v11 = vld [vmem:[%s7494_s4 + $0x38] sm:$0xff] }
0x1306   :  { %vm3952_vm2 = vweird.f32 %v7360_v57 }
0x1319   :  { %v3920_v22 = vpop.xlane.xlu0 %3919 }
0x131a   :  { %v3934_v20 = vmul.f32 %v3920_v22, %v6106_v52 }
0x131c   :  { %v7353_v18 = vadd.f32 1e-05, %v3934_v20 }
0x131e   :  { %4684 = vrsqrt.f32 %v7353_v18  ;;  %vm3992_vm7 = vweird.f32 %v7353_v18 }
0x131f   :  { %4686 = vrsqrt.f32 %v7350_v24 }
0x1320   :  { %4688 = vrsqrt.f32 %v7360_v57 }
0x1321   :  { %4690 = vrsqrt.f32 %v7362_v13 }
0x1324   :  { %v7369_v35 = vpop.eup %4684 }
0x1325   :  { %v7372_v29 = vpop.eup %4686  ;;  %v3987_v19 = vmul.f32 %v7369_v35, %v7353_v18  ;;  %vm3993_vm3 = vweird.f32 %v7369_v35 }
0x1326   :  { %v3977_v44 = vmul.f32 %v7372_v29, %v7350_v24  ;;  %v7382_v12 = vpop.eup %4688  ;;  %vm3983_vm5 = vweird.f32 %v7372_v29  ;;  %vm7424_vm10 = vmor %vm3992_vm7, %vm3993_vm3 }
0x1327   :  { %v7385_v15 = vpop.eup %4690  ;;  %v3988_v56 = vmul.f32 %v7369_v35, %v3987_v19  ;;  %v3947_v28 = vmul.f32 %v7382_v12, %v7360_v57  ;;  %vm7431_vm11 = vmor %vm3982_vm8, %vm3983_vm5  ;;  %vm3953_vm12 = vweird.f32 %v7382_v12 }
0x1328   :  { %v3978_v5 = vmul.f32 %v7372_v29, %v3977_v44  ;;  %v4007_v30 = vmul.f32 %v7385_v15, %v7362_v13  ;;  %vm4013_vm15 = vweird.f32 %v7385_v15  ;;  %vm3954_vm4 = vmor %vm3952_vm2, %vm3953_vm12 }
0x1329   :  { %v3911_v7 = vpop.xlane.xlu0 %3910  ;;  %v3989_v55 = vmul.f32 0.5, %v3988_v56  ;;  %v3948_v42 = vmul.f32 %v7382_v12, %v3947_v28  ;;  %vm7454_vm5 = vmor %vm4012_vm1, %vm4013_vm15 }
0x132a   :  { %v3931_v50 = vmul.f32 %v3911_v7, %v6106_v52  ;;  %v3979_v49 = vmul.f32 0.5, %v3978_v5  ;;  %v4008_v43 = vmul.f32 %v7385_v15, %v4007_v30 }
0x132b   :  { %v3990_v61 = vsub.f32 1.5, %v3989_v55  ;;  %v3949_v63 = vmul.f32 0.5, %v3948_v42 }
0x132c   :  { %v3939_v33 = vadd.f32 1e-05, %v3931_v50  ;;  %v3980_v54 = vsub.f32 1.5, %v3979_v49  ;;  %v4009_v2 = vmul.f32 0.5, %v4008_v43  ;;  %v4028_v50 = vmul.f32 %v3975_v51, %v7287_v17 }
0x132d   :  { %v3991_v9 = vmul.f32 %v7369_v35, %v3990_v61  ;;  %v3950_v32 = vsub.f32 1.5, %v3949_v63 }
0x132e   :  { %4692 = vrsqrt.f32 %v3939_v33  ;;  %v3981_v27 = vmul.f32 %v7372_v29, %v3980_v54  ;;  %v4010_v22 = vsub.f32 1.5, %v4009_v2  ;;  %vm3962_vm0 = vweird.f32 %v3939_v33  ;;  %v370_v2 = vld [vmem:[%s7494_s4 + $0x58] sm:$0xff] }
0x132f   :  { %v3995_v24 = vsel %vm7424_vm10, %v7369_v35, %v3991_v9  ;;  %v3951_v34 = vmul.f32 %v7382_v12, %v3950_v32  ;;  %v4037_v35 = vpop.permute.xlu1 %4036  ;;  %vm4140_vm10 = vcmask 15360  }
0x1330   :  { %v3985_v18 = vsel %vm7431_vm11, %v7372_v29, %v3981_v27  ;;  %v4011_v19 = vmul.f32 %v7385_v15, %v4010_v22  ;;  %v4030_v44 = vmul.f32 %v3995_v24, %v7309_v4  ;;  %v4031_v29 = vmul.f32 %v4005_v1, %v7281_v31 }
0x1331   :  { %v3929_v6 = vpop.xlane.xlu0 %3928  ;;  %v4029_v58 = vmul.f32 %v3985_v18, %v7299_v38  ;;  %v3955_v57 = vsel %vm3954_vm4, %v7382_v12, %v3951_v34 }
0x1332   :  { %v3937_v53 = vmul.f32 %v3929_v6, %v6106_v52  ;;  %v4015_v4 = vsel %vm7454_vm5, %v7385_v15, %v4011_v19  ;;  %v4044_v31 = vmul.f32 %v4037_v35, %v4031_v29  ;;  %v4043_v5 = vmul.f32 %v4037_v35, %v4030_v44 }
0x1333   :  { %v4026_v28 = vmul.f32 %v3955_v57, %v7306_v3  ;;  %v4042_v23 = vmul.f32 %v4037_v35, %v4029_v58  ;;  %v4032_v42 = vmul.f32 %v4015_v4, %v7293_v46 }
0x1334   :  { %v4693_v36 = vpop.eup %4692  ;;  %v7398_v16 = vadd.f32 1e-05, %v3937_v53 }
0x1335   :  { %v3957_v62 = vmul.f32 %v4693_v36, %v3939_v33  ;;  %vm3963_vm14 = vweird.f32 %v4693_v36  ;;  %v4041_v33 = vmul.f32 %v4037_v35, %v4028_v50  ;;  %v4039_v3 = vmul.f32 %v4037_v35, %v4026_v28 }
0x1336   :  { %4694 = vrsqrt.f32 %v7398_v16  ;;  %vm3964_vm3 = vmor %vm3962_vm0, %vm3963_vm14  ;;  %vm4022_vm7 = vweird.f32 %v7398_v16 }
0x1337   :  { %v3958_v52 = vmul.f32 %v4693_v36, %v3957_v62 }
0x1339   :  { %v3959_v25 = vmul.f32 0.5, %v3958_v52 }
0x133b   :  { %v3960_v20 = vsub.f32 1.5, %v3959_v25 }
0x133c   :  { %v4695_v8 = vpop.eup %4694 }
0x133d   :  { %v3961_v21 = vmul.f32 %v4693_v36, %v3960_v20  ;;  %v4017_v47 = vmul.f32 %v4695_v8, %v7398_v16  ;;  %vm4023_vm6 = vweird.f32 %v4695_v8 }
0x133e   :  { %vm4024_vm8 = vmor %vm4022_vm7, %vm4023_vm6 }
0x133f   :  { %v4018_v7 = vmul.f32 %v4695_v8, %v4017_v47  ;;  %v3965_v41 = vsel %vm3964_vm3, %v4693_v36, %v3961_v21  ;;  %v4045_v36 = vmul.f32 %v4037_v35, %v4032_v42 }
0x1340   :  { %v4027_v17 = vmul.f32 %v3965_v41, %v7319_v48 }
0x1341   :  { %v4019_v13 = vmul.f32 0.5, %v4018_v7 }
0x1342   :  { %v4040_v48 = vmul.f32 %v4037_v35, %v4027_v17 }
0x1343   :  { %v4020_v38 = vsub.f32 1.5, %v4019_v13 }
0x1344   :  { %v4048_v30 = vpop.permute.xlu0 %4047 }
0x1345   :  { %v4021_v26 = vmul.f32 %v4695_v8, %v4020_v38  ;;  %v4054_v12 = vadd.f32 %v4048_v30, %v4043_v5  ;;  %v4055_v55 = vadd.f32 %v4048_v30, %v4044_v31  ;;  %v4052_v49 = vadd.f32 %v4048_v30, %v4041_v33 }
0x1346   :  { %v4053_v15 = vadd.f32 %v4048_v30, %v4042_v23  ;;  %v4050_v61 = vadd.f32 %v4048_v30, %v4039_v3  ;;  %v4051_v16 = vadd.f32 %v4048_v30, %v4040_v48  ;;  %v4056_v54 = vadd.f32 %v4048_v30, %v4045_v36 }
0x1347   :  { %v4025_v6 = vsel %vm4024_vm8, %v4695_v8, %v4021_v26  ;;  %v4519_v43 = vpack.i.bf16 %v4054_v12, %v4055_v55  ;;  %v376_v8 = vld [vmem:[#allocation4 + $0x8] sm:$0xff] }
0x1348   :  { %v4033_v53 = vmul.f32 %v4025_v6, %v7326_v60  ;;  %v4524_v40 = vpack.i.bf16 %v4052_v49, %v4053_v15  ;;  %v4529_v62 = vpack.i.bf16 %v4050_v61, %v4051_v16  ;;  %v374_v60 = vld [vmem:[%s7494_s4 + $0x78] sm:$0xff] }
0x1349   :  { %4520 = vrot.lane.b32.xlu0 %v4519_v43, %s4787_s11  ;;  %4132 = vmatpush.msra.mxu2 %v374_v60 }
0x134a   :  { %4525 = vrot.lane.b32.xlu1 %v4524_v40, %s4787_s11  ;;  %v4046_v10 = vmul.f32 %v4037_v35, %v4033_v53 }
0x134b   :  { %4133 = vmatpush.msra.mxu2 %v370_v2 }
0x134c   :  { %v4057_v63 = vadd.f32 %v4048_v30, %v4046_v10 }
0x134d   :  { %4134 = vmatpush.msra.mxu2 %v366_v11 }
0x134e   :  { %v4514_v46 = vpack.i.bf16 %v4056_v54, %v4057_v63 }
0x1350   :  { %4515 = vrot.lane.b32.xlu2 %v4514_v46, %s4787_s11 }
0x1351   :  { %4530 = vrot.lane.b32.xlu0 %v4529_v62, %s4787_s11 }
0x1358   :  { %4114 = vrot.lane.b32.xlu2 %v7229_v45, %s4788_s12  ;;  %v362_v45 = vld [vmem:[%s7494_s4 + $0x18] sm:$0xff] }
0x1359   :  { %4135 = vmatpush.msra.mxu2 %v362_v45 }
0x13aa   :  { %v4516_v59 = vpop.permute.xlu2 %4515 }
0x13ab   :  { %v4517_v52 = vunpack.i.l.bf16 %v4516_v59  ;;  %v4518_v9 = vunpack.i.h.bf16 %v4516_v59 }
0x13ad   :  { %4101 = vmatpush.msrb.mxu0 %v4517_v52 }
0x13af   :  { %4102 = vmatpush.msrb.mxu0 %v4518_v9 }
0x13b2   :  { %v4115_v0 = vpop.permute.xlu2 %4114 }
0x13bb   :  { %v4521_v37 = vpop.permute.xlu0 %4520 }
0x13bc   :  { %v4522_v27 = vunpack.i.l.bf16 %v4521_v37  ;;  %v4526_v32 = vpop.permute.xlu1 %4525  ;;  %v4523_v25 = vunpack.i.h.bf16 %v4521_v37 }
0x13bd   :  { %v4527_v39 = vunpack.i.l.bf16 %v4526_v32  ;;  %v4528_v22 = vunpack.i.h.bf16 %v4526_v32 }
0x13be   :  { %4103 = vmatpush.msrb.mxu0 %v4522_v27 }
0x13c0   :  { %4104 = vmatpush.msrb.mxu0 %v4523_v25 }
0x13c2   :  { %4105 = vmatpush.msrb.mxu0 %v4527_v39 }
0x13c3   :  { %v4531_v1 = vpop.permute.xlu0 %4530 }
0x13c4   :  { %v4532_v14 = vunpack.i.l.bf16 %v4531_v1  ;;  %4106 = vmatpush.msrb.mxu0 %v4528_v22  ;;  %v4533_v20 = vunpack.i.h.bf16 %v4531_v1 }
0x13c6   :  { %4107 = vmatpush.msrb.mxu0 %v4532_v14 }
0x13c8   :  { %4108 = vmatpush.msrb.mxu0 %v4533_v20 }
0x13c9   :  { %4304 = vmatmul.msk.f32.vlgmr.msrb.gmra.mxu0 %vm3680_vm9, %v376_v8 }
0x1446   :  { %v4110_v51 = vpop.f32.mrf.mxu0 }
0x1447   :  { %4305 = vmatmul.msk.f32.vlgmr.msra.gmra.mxu2 %vm401_vm13, %v4110_v51 }
0x14ca   :  { %v4137_v24 = vpop.f32.mrf.mxu2 }
0x14cb   :  { %v4138_v18 = vadd.f32 %v4137_v24, %v4115_v0 }
0x14cd   :  { %4141 = vst.msk [vmem:[%s7496_s6] sm:$0xff] %vm4140_vm10, %v4138_v18 }
0x14ce   :  { %4146 = vsyncpa [#allocation3], 1 }
0x14cf   :  { %4147 = vsyncpa [#allocation5], 1 }

</bundles_post_ra>
